<compile_context>
chip_gen: v7x
topology: tpu7x:2x2x1
jax: 0.10.0
libtpu: 0.0.40
codegen_flags: <defaults>
</compile_context>

<pallas_src>
import numpy as np
import jax
import jax.numpy as jnp
from jax.experimental import pallas as pl
from jax.experimental.pallas import tpu as pltpu


def _round_up(x, m):
    return (x + m - 1) // m * m


# -----------------------------------------------------------------------------
# Synthetic S4 group data (replaces groups.npy / cayley.csv / pairs.json):
# 24 integer rotation matrices, Cayley table, inverse indices, sampling grids.
# -----------------------------------------------------------------------------
def build_group(kernel_size):
    gens = [
        np.array([[0, -1, 0], [1, 0, 0], [0, 0, 1]], dtype=np.int64),   # Rz(90)
        np.array([[1, 0, 0], [0, 0, -1], [0, 1, 0]], dtype=np.int64),   # Rx(90)
    ]
    elems = [np.eye(3, dtype=np.int64)]
    changed = True
    while changed:
        changed = False
        for e in list(elems):
            for g in gens:
                c = g @ e
                if not any(np.array_equal(c, h) for h in elems):
                    elems.append(c)
                    changed = True
    elems = np.stack(elems)                      # (24, 3, 3)
    G = elems.shape[0]

    def index_of(m):
        for i in range(G):
            if np.array_equal(m, elems[i]):
                return i
        raise ValueError("group not closed")

    cayley = np.zeros((G, G), dtype=np.int32)    # cayley[a, b] = index of R_a @ R_b
    for a in range(G):
        for b in range(G):
            cayley[a, b] = index_of(elems[a] @ elems[b])
    pairs = np.array([index_of(elems[g].T) for g in range(G)], dtype=np.int32)  # inverses

    # normalized sampling grids (align_corners=True convention, last dim = (x, y, z))
    lin = np.linspace(-1.0, 1.0, kernel_size)
    zz, yy, xx = np.meshgrid(lin, lin, lin, indexing="ij")
    base = np.stack([xx, yy, zz], axis=-1)                         # (k, k, k, 3)
    grids = np.einsum("gij,dhwj->gdhwi", elems.astype(np.float32), base)
    return elems.astype(np.float32), cayley, pairs, grids.astype(np.float32)


# -----------------------------------------------------------------------------
# torch.nn.functional.grid_sample (3D, mode='bilinear', padding='zeros',
# align_corners=True) in plain JAX — used only for kernel-weight rotation.
# -----------------------------------------------------------------------------
def grid_sample_3d(inp, grid):
    N, C, D, H, W = inp.shape

    def one(inp_n, grid_n):
        x = (grid_n[..., 0] + 1.0) * (W - 1) * 0.5
        y = (grid_n[..., 1] + 1.0) * (H - 1) * 0.5
        z = (grid_n[..., 2] + 1.0) * (D - 1) * 0.5
        x0 = jnp.floor(x)
        y0 = jnp.floor(y)
        z0 = jnp.floor(z)
        out = jnp.zeros((C,) + grid_n.shape[:-1], inp_n.dtype)
        for dz in (0, 1):
            for dy in (0, 1):
                for dx in (0, 1):
                    xi = x0 + dx
                    yi = y0 + dy
                    zi = z0 + dz
                    wx = (x - x0) if dx else (x0 + 1.0 - x)
                    wy = (y - y0) if dy else (y0 + 1.0 - y)
                    wz = (z - z0) if dz else (z0 + 1.0 - z)
                    wgt = wx * wy * wz
                    valid = ((xi >= 0) & (xi <= W - 1) &
                             (yi >= 0) & (yi <= H - 1) &
                             (zi >= 0) & (zi <= D - 1))
                    xc = jnp.clip(xi, 0, W - 1).astype(jnp.int32)
                    yc = jnp.clip(yi, 0, H - 1).astype(jnp.int32)
                    zc = jnp.clip(zi, 0, D - 1).astype(jnp.int32)
                    vals = inp_n[:, zc, yc, xc]                    # (C, Do, Ho, Wo)
                    out = out + vals * (wgt * valid.astype(inp_n.dtype))[None]
        return out

    return jax.vmap(one)(inp, grid)


# -----------------------------------------------------------------------------
# Pallas kernel: fused in-VMEM im2col (static lane-shifted tap slices into a bf16 scratch)
# followed by a single bf16 MXU matmul with f32 accumulation per output tile.
# -----------------------------------------------------------------------------
def _make_conv_kernel(tap_offsets, cin, tn):
    def kernel(w_ref, x0_ref, x1_ref, o_ref, col_ref):
        # 2*TN-wide padded-flat window covering every tap shift for this output tile (bf16).
        xcat = jnp.concatenate([x0_ref[...], x1_ref[...]], axis=-1)        # (cin, 2*tn)
        # In-VMEM im2col: unrolled static slices, one per conv tap.
        for t, off in enumerate(tap_offsets):
            col_ref[t * cin:(t + 1) * cin, :] = xcat[:, off:off + tn]
        # One MXU matmul, contraction dim K = 27*cin, f32 accumulation.
        o_ref[...] = jnp.dot(w_ref[...], col_ref[...],
                             preferred_element_type=jnp.float32)
    return kernel


def pallas_conv3d(x, w, padding):
    """conv3d(x, w, stride=1, padding=padding, groups=1) with im2col fused into the kernel."""
    B, Cin, D, H, W = x.shape
    Cout, Cin_w, k, _, _ = w.shape
    assert Cin == Cin_w
    p = padding
    Do, Ho, Wo = D + 2 * p - k + 1, H + 2 * p - k + 1, W + 2 * p - k + 1
    Dp, Hp, Wp = D + 2 * p, H + 2 * p, W + 2 * p
    T = k ** 3

    # Flat-space tap offsets: out[q] needs x_flat[q + off_t]  (q = d*Hp*Wp + h*Wp + w).
    tap_offsets = [a * Hp * Wp + b * Wp + c
                   for a in range(k) for b in range(k) for c in range(k)]
    max_off = tap_offsets[-1]
    n_valid = Do * Hp * Wp

    # Lane tile: multiple of 128, >= max tap offset (so every shifted window fits inside two
    # consecutive blocks), capped so buffers stay small on v7x (64 MiB VMEM per TensorCore).
    TN = max(_round_up(max_off, 128), min(_round_up(n_valid, 128), 2048))
    NT = pl.cdiv(n_valid, TN)
    NQ = NT * TN                 # lane-dense output width
    NP_in = (NT + 1) * TN        # padded input width (one extra block for the j+1 window)

    # Zero-padded flat input slab, bf16 (halves HBM input bytes; MXU multiply is bf16 anyway).
    x_flat = jnp.pad(x, ((0, 0), (0, 0), (p, p), (p, p), (p, p))).reshape(B, Cin, Dp * Hp * Wp)
    xp = jnp.pad(x_flat, ((0, 0), (0, 0), (0, NP_in - Dp * Hp * Wp))).astype(jnp.bfloat16)

    # Tap-major weights: row index = tap*Cin + cin, matching the im2col scratch layout.
    w2 = jnp.transpose(w, (0, 2, 3, 4, 1)).reshape(Cout, T * Cin).astype(jnp.bfloat16)

    flops = 2 * B * NT * Cout * (T * Cin) * TN
    bytes_accessed = (2 * B * NT * Cin * TN * 2      # two bf16 input blocks per grid step
                      + Cout * T * Cin * 2           # weights (VMEM-resident, fetched once)
                      + B * NT * Cout * TN * 4)      # f32 output writeback

    out_flat = pl.pallas_call(
        _make_conv_kernel(tap_offsets, Cin, TN),
        out_shape=jax.ShapeDtypeStruct((B, Cout, NQ), jnp.float32),
        grid=(B, NT),
        in_specs=[
            pl.BlockSpec((Cout, T * Cin), lambda b, j: (0, 0)),        # weights stay resident
            pl.BlockSpec((None, Cin, TN), lambda b, j: (b, 0, j)),     # window block j
            pl.BlockSpec((None, Cin, TN), lambda b, j: (b, 0, j + 1)), # window block j+1
        ],
        out_specs=pl.BlockSpec((None, Cout, TN), lambda b, j: (b, 0, j)),
        scratch_shapes=[pltpu.VMEM((T * Cin, TN), jnp.bfloat16)],      # im2col scratch
        compiler_params=pltpu.CompilerParams(
            dimension_semantics=("parallel", "parallel")),
        cost_estimate=pl.CostEstimate(
            flops=flops, bytes_accessed=bytes_accessed, transcendentals=0),
    )(w2, xp, xp)

    # Keep only valid flat positions (h < Ho, w < Wo were computed in padded-plane coords).
    out = out_flat[:, :, :n_valid].reshape(B, Cout, Do, Hp, Wp)[:, :, :, :Ho, :Wo]
    return out


# -----------------------------------------------------------------------------
# S4Conv forward (partition=1): weight permutation + grid_sample in JAX,
# convolution hot path in the Pallas kernel.
# -----------------------------------------------------------------------------
def make_new_weight(weight, grids, cayley, pairs):
    out_ch, in_ch, G, k = weight.shape[0], weight.shape[1], weight.shape[2], weight.shape[3]
    perm = cayley[pairs]                                   # (G, G): perm[g, h] = inv(g) * h
    w_perm = weight[:, :, perm]                            # (out, in, G_g, G_h, k, k, k)
    w_perm = jnp.moveaxis(w_perm, 2, 0)                    # (G_g, out, in, G_h, k, k, k)
    w_flat = w_perm.reshape(G, out_ch * in_ch * G, k, k, k)
    grid = grids[pairs]                                    # (G, k, k, k, 3)
    w_samp = grid_sample_3d(w_flat, grid)                  # (G, out*in*G, k, k, k)
    w_samp = w_samp.reshape(G, out_ch, in_ch, G, k, k, k)
    w_samp = jnp.swapaxes(w_samp, 0, 1)                    # (out, G, in, G, k, k, k)
    return w_samp.reshape(out_ch * G, in_ch * G, k, k, k)


def s4conv_forward(feature_maps, weight, grids, cayley, pairs, padding):
    # TODO(synk): only partition=1 (conv groups=1) is implemented in the Pallas path.
    out_ch, in_ch, G = weight.shape[0], weight.shape[1], weight.shape[2]
    new_weight = make_new_weight(weight, grids, cayley, pairs)
    B = feature_maps.shape[0]
    x = feature_maps.reshape(B, in_ch * G, *feature_maps.shape[3:])
    conv = pallas_conv3d(x, new_weight, padding)
    return conv.reshape(B, out_ch, G, *conv.shape[-3:]), new_weight, x


if __name__ == "__main__":
    # Small, module-consistent shapes.
    in_ch, out_ch, k, padding = 2, 2, 3, 1
    B, D, H, W = 2, 8, 8, 8

    elements, cayley, pairs, grids_np = build_group(k)
    G = elements.shape[0]                                  # 24
    grids = jnp.asarray(grids_np)

    key = jax.random.PRNGKey(0)
    kx, kw = jax.random.split(key)

    # kaiming_normal_(nonlinearity='leaky_relu', a=0) on a (out, G*in, k, k, k) tensor:
    fan_in = G * in_ch * k ** 3
    std = (2.0 / fan_in) ** 0.5
    weight = std * jax.random.normal(kw, (out_ch, in_ch, G, k, k, k), dtype=jnp.float32)

    # feature maps: (B, in_channels, |G|, D, H, W)
    x = jax.random.normal(kx, (B, in_ch, G, D, H, W), dtype=jnp.float32)

    out, new_weight, x_flat = s4conv_forward(x, weight, grids, cayley, pairs, padding)
    out = jax.block_until_ready(out)

    # Reference: XLA conv3d with the same (bf16-rounded) operands the kernel consumes,
    # so the comparison isolates the kernel math from bf16 input rounding.
    xq = x_flat.astype(jnp.bfloat16).astype(jnp.float32)
    wq = new_weight.astype(jnp.bfloat16).astype(jnp.float32)
    ref = jax.lax.conv_general_dilated(
        xq, wq, window_strides=(1, 1, 1),
        padding=[(padding, padding)] * 3,
        dimension_numbers=("NCDHW", "OIDHW", "NCDHW"),
        precision=jax.lax.Precision.HIGHEST,
    ).reshape(B, out_ch, G, D, H, W)
    ref = jax.block_until_ready(ref)

    assert out.shape == (B, out_ch, G, D, H, W), out.shape
    if not bool(jnp.allclose(out, ref, rtol=1e-2, atol=1e-2)):
        raise RuntimeError(f"mismatch: max abs err {float(jnp.max(jnp.abs(out - ref)))}")
    print("KERNEL_OK")
</pallas_src>

<mosaic_0001>
module attributes {stable_mosaic.version = 11 : i64} {
  func.func @kernel(%arg0: i32, %arg1: i32, %arg2: memref<48x1296xbf16, #tpu.memory_space<vmem>>, %arg3: memref<1x48x896xbf16, #tpu.memory_space<vmem>>, %arg4: memref<1x48x896xbf16, #tpu.memory_space<vmem>>, %arg5: memref<1x48x896xf32, #tpu.memory_space<vmem>>, %arg6: memref<1296x896xbf16, #tpu.memory_space<vmem>>) attributes {dimension_semantics = [#tpu.dimension_semantics<parallel>, #tpu.dimension_semantics<parallel>], iteration_bounds = array<i64: 2, 1>, scalar_prefetch = 0 : i64, scratch_operands = 1 : i64, tpu.core_type = #tpu.core_type<tc>, window_params = [{pipeline_mode = #tpu.pipeline_mode<synchronous>, transform_indices = @transform_0, window_bounds = array<i64: 48, 1296>}, {transform_indices = @transform_1, window_bounds = array<i64: 1, 48, 896>}, {transform_indices = @transform_2, window_bounds = array<i64: 1, 48, 896>}, {transform_indices = @transform_3, window_bounds = array<i64: 1, 48, 896>}]} {
    %c0 = arith.constant 0 : index
    %c0_0 = arith.constant 0 : index
    %c0_1 = arith.constant 0 : index
    %0 = vector.load %arg3[%c0, %c0_0, %c0_1] : memref<1x48x896xbf16, #tpu.memory_space<vmem>>, vector<1x48x896xbf16>
    %1 = vector.shape_cast %0 : vector<1x48x896xbf16> to vector<48x896xbf16>
    %c0_2 = arith.constant 0 : index
    %c0_3 = arith.constant 0 : index
    %c0_4 = arith.constant 0 : index
    %2 = vector.load %arg4[%c0_2, %c0_3, %c0_4] : memref<1x48x896xbf16, #tpu.memory_space<vmem>>, vector<1x48x896xbf16>
    %3 = vector.shape_cast %2 : vector<1x48x896xbf16> to vector<48x896xbf16>
    %4 = tpu.concatenate %1, %3 in 1 : vector<48x896xbf16>, vector<48x896xbf16> -> vector<48x1792xbf16>
    %5 = vector.extract_strided_slice %4 {offsets = [0, 0], sizes = [48, 896], strides = [1, 1]} : vector<48x1792xbf16> to vector<48x896xbf16>
    %c0_5 = arith.constant 0 : index
    %c0_6 = arith.constant 0 : index
    %6 = vector.load %arg6[%c0_5, %c0_6] : memref<1296x896xbf16, #tpu.memory_space<vmem>>, vector<48x896xbf16>
    tpu.vector_store %arg6[%c0_5, %c0_6], %5 {strides = array<i32>} : memref<1296x896xbf16, #tpu.memory_space<vmem>>, vector<48x896xbf16>,
    %7 = vector.extract_strided_slice %4 {offsets = [0, 1], sizes = [48, 896], strides = [1, 1]} : vector<48x1792xbf16> to vector<48x896xbf16>
    %c48 = arith.constant 48 : index
    %c0_7 = arith.constant 0 : index
    %8 = vector.load %arg6[%c48, %c0_7] : memref<1296x896xbf16, #tpu.memory_space<vmem>>, vector<48x896xbf16>
    tpu.vector_store %arg6[%c48, %c0_7], %7 {strides = array<i32>} : memref<1296x896xbf16, #tpu.memory_space<vmem>>, vector<48x896xbf16>,
    %9 = vector.extract_strided_slice %4 {offsets = [0, 2], sizes = [48, 896], strides = [1, 1]} : vector<48x1792xbf16> to vector<48x896xbf16>
    %c96 = arith.constant 96 : index
    %c0_8 = arith.constant 0 : index
    %10 = vector.load %arg6[%c96, %c0_8] : memref<1296x896xbf16, #tpu.memory_space<vmem>>, vector<48x896xbf16>
    tpu.vector_store %arg6[%c96, %c0_8], %9 {strides = array<i32>} : memref<1296x896xbf16, #tpu.memory_space<vmem>>, vector<48x896xbf16>,
    %11 = vector.extract_strided_slice %4 {offsets = [0, 10], sizes = [48, 896], strides = [1, 1]} : vector<48x1792xbf16> to vector<48x896xbf16>
    %c144 = arith.constant 144 : index
    %c0_9 = arith.constant 0 : index
    %12 = vector.load %arg6[%c144, %c0_9] : memref<1296x896xbf16, #tpu.memory_space<vmem>>, vector<48x896xbf16>
    tpu.vector_store %arg6[%c144, %c0_9], %11 {strides = array<i32>} : memref<1296x896xbf16, #tpu.memory_space<vmem>>, vector<48x896xbf16>,
    %13 = vector.extract_strided_slice %4 {offsets = [0, 11], sizes = [48, 896], strides = [1, 1]} : vector<48x1792xbf16> to vector<48x896xbf16>
    %c192 = arith.constant 192 : index
    %c0_10 = arith.constant 0 : index
    %14 = vector.load %arg6[%c192, %c0_10] : memref<1296x896xbf16, #tpu.memory_space<vmem>>, vector<48x896xbf16>
    tpu.vector_store %arg6[%c192, %c0_10], %13 {strides = array<i32>} : memref<1296x896xbf16, #tpu.memory_space<vmem>>, vector<48x896xbf16>,
    %15 = vector.extract_strided_slice %4 {offsets = [0, 12], sizes = [48, 896], strides = [1, 1]} : vector<48x1792xbf16> to vector<48x896xbf16>
    %c240 = arith.constant 240 : index
    %c0_11 = arith.constant 0 : index
    %16 = vector.load %arg6[%c240, %c0_11] : memref<1296x896xbf16, #tpu.memory_space<vmem>>, vector<48x896xbf16>
    tpu.vector_store %arg6[%c240, %c0_11], %15 {strides = array<i32>} : memref<1296x896xbf16, #tpu.memory_space<vmem>>, vector<48x896xbf16>,
    %17 = vector.extract_strided_slice %4 {offsets = [0, 20], sizes = [48, 896], strides = [1, 1]} : vector<48x1792xbf16> to vector<48x896xbf16>
    %c288 = arith.constant 288 : index
    %c0_12 = arith.constant 0 : index
    %18 = vector.load %arg6[%c288, %c0_12] : memref<1296x896xbf16, #tpu.memory_space<vmem>>, vector<48x896xbf16>
    tpu.vector_store %arg6[%c288, %c0_12], %17 {strides = array<i32>} : memref<1296x896xbf16, #tpu.memory_space<vmem>>, vector<48x896xbf16>,
    %19 = vector.extract_strided_slice %4 {offsets = [0, 21], sizes = [48, 896], strides = [1, 1]} : vector<48x1792xbf16> to vector<48x896xbf16>
    %c336 = arith.constant 336 : index
    %c0_13 = arith.constant 0 : index
    %20 = vector.load %arg6[%c336, %c0_13] : memref<1296x896xbf16, #tpu.memory_space<vmem>>, vector<48x896xbf16>
    tpu.vector_store %arg6[%c336, %c0_13], %19 {strides = array<i32>} : memref<1296x896xbf16, #tpu.memory_space<vmem>>, vector<48x896xbf16>,
    %21 = vector.extract_strided_slice %4 {offsets = [0, 22], sizes = [48, 896], strides = [1, 1]} : vector<48x1792xbf16> to vector<48x896xbf16>
    %c384 = arith.constant 384 : index
    %c0_14 = arith.constant 0 : index
    %22 = vector.load %arg6[%c384, %c0_14] : memref<1296x896xbf16, #tpu.memory_space<vmem>>, vector<48x896xbf16>
    tpu.vector_store %arg6[%c384, %c0_14], %21 {strides = array<i32>} : memref<1296x896xbf16, #tpu.memory_space<vmem>>, vector<48x896xbf16>,
    %23 = vector.extract_strided_slice %4 {offsets = [0, 100], sizes = [48, 896], strides = [1, 1]} : vector<48x1792xbf16> to vector<48x896xbf16>
    %c432 = arith.constant 432 : index
    %c0_15 = arith.constant 0 : index
    %24 = vector.load %arg6[%c432, %c0_15] : memref<1296x896xbf16, #tpu.memory_space<vmem>>, vector<48x896xbf16>
    tpu.vector_store %arg6[%c432, %c0_15], %23 {strides = array<i32>} : memref<1296x896xbf16, #tpu.memory_space<vmem>>, vector<48x896xbf16>,
    %25 = vector.extract_strided_slice %4 {offsets = [0, 101], sizes = [48, 896], strides = [1, 1]} : vector<48x1792xbf16> to vector<48x896xbf16>
    %c480 = arith.constant 480 : index
    %c0_16 = arith.constant 0 : index
    %26 = vector.load %arg6[%c480, %c0_16] : memref<1296x896xbf16, #tpu.memory_space<vmem>>, vector<48x896xbf16>
    tpu.vector_store %arg6[%c480, %c0_16], %25 {strides = array<i32>} : memref<1296x896xbf16, #tpu.memory_space<vmem>>, vector<48x896xbf16>,
    %27 = vector.extract_strided_slice %4 {offsets = [0, 102], sizes = [48, 896], strides = [1, 1]} : vector<48x1792xbf16> to vector<48x896xbf16>
    %c528 = arith.constant 528 : index
    %c0_17 = arith.constant 0 : index
    %28 = vector.load %arg6[%c528, %c0_17] : memref<1296x896xbf16, #tpu.memory_space<vmem>>, vector<48x896xbf16>
    tpu.vector_store %arg6[%c528, %c0_17], %27 {strides = array<i32>} : memref<1296x896xbf16, #tpu.memory_space<vmem>>, vector<48x896xbf16>,
    %29 = vector.extract_strided_slice %4 {offsets = [0, 110], sizes = [48, 896], strides = [1, 1]} : vector<48x1792xbf16> to vector<48x896xbf16>
    %c576 = arith.constant 576 : index
    %c0_18 = arith.constant 0 : index
    %30 = vector.load %arg6[%c576, %c0_18] : memref<1296x896xbf16, #tpu.memory_space<vmem>>, vector<48x896xbf16>
    tpu.vector_store %arg6[%c576, %c0_18], %29 {strides = array<i32>} : memref<1296x896xbf16, #tpu.memory_space<vmem>>, vector<48x896xbf16>,
    %31 = vector.extract_strided_slice %4 {offsets = [0, 111], sizes = [48, 896], strides = [1, 1]} : vector<48x1792xbf16> to vector<48x896xbf16>
    %c624 = arith.constant 624 : index
    %c0_19 = arith.constant 0 : index
    %32 = vector.load %arg6[%c624, %c0_19] : memref<1296x896xbf16, #tpu.memory_space<vmem>>, vector<48x896xbf16>
    tpu.vector_store %arg6[%c624, %c0_19], %31 {strides = array<i32>} : memref<1296x896xbf16, #tpu.memory_space<vmem>>, vector<48x896xbf16>,
    %33 = vector.extract_strided_slice %4 {offsets = [0, 112], sizes = [48, 896], strides = [1, 1]} : vector<48x1792xbf16> to vector<48x896xbf16>
    %c672 = arith.constant 672 : index
    %c0_20 = arith.constant 0 : index
    %34 = vector.load %arg6[%c672, %c0_20] : memref<1296x896xbf16, #tpu.memory_space<vmem>>, vector<48x896xbf16>
    tpu.vector_store %arg6[%c672, %c0_20], %33 {strides = array<i32>} : memref<1296x896xbf16, #tpu.memory_space<vmem>>, vector<48x896xbf16>,
    %35 = vector.extract_strided_slice %4 {offsets = [0, 120], sizes = [48, 896], strides = [1, 1]} : vector<48x1792xbf16> to vector<48x896xbf16>
    %c720 = arith.constant 720 : index
    %c0_21 = arith.constant 0 : index
    %36 = vector.load %arg6[%c720, %c0_21] : memref<1296x896xbf16, #tpu.memory_space<vmem>>, vector<48x896xbf16>
    tpu.vector_store %arg6[%c720, %c0_21], %35 {strides = array<i32>} : memref<1296x896xbf16, #tpu.memory_space<vmem>>, vector<48x896xbf16>,
    %37 = vector.extract_strided_slice %4 {offsets = [0, 121], sizes = [48, 896], strides = [1, 1]} : vector<48x1792xbf16> to vector<48x896xbf16>
    %c768 = arith.constant 768 : index
    %c0_22 = arith.constant 0 : index
    %38 = vector.load %arg6[%c768, %c0_22] : memref<1296x896xbf16, #tpu.memory_space<vmem>>, vector<48x896xbf16>
    tpu.vector_store %arg6[%c768, %c0_22], %37 {strides = array<i32>} : memref<1296x896xbf16, #tpu.memory_space<vmem>>, vector<48x896xbf16>,
    %39 = vector.extract_strided_slice %4 {offsets = [0, 122], sizes = [48, 896], strides = [1, 1]} : vector<48x1792xbf16> to vector<48x896xbf16>
    %c816 = arith.constant 816 : index
    %c0_23 = arith.constant 0 : index
    %40 = vector.load %arg6[%c816, %c0_23] : memref<1296x896xbf16, #tpu.memory_space<vmem>>, vector<48x896xbf16>
    tpu.vector_store %arg6[%c816, %c0_23], %39 {strides = array<i32>} : memref<1296x896xbf16, #tpu.memory_space<vmem>>, vector<48x896xbf16>,
    %41 = vector.extract_strided_slice %4 {offsets = [0, 200], sizes = [48, 896], strides = [1, 1]} : vector<48x1792xbf16> to vector<48x896xbf16>
    %c864 = arith.constant 864 : index
    %c0_24 = arith.constant 0 : index
    %42 = vector.load %arg6[%c864, %c0_24] : memref<1296x896xbf16, #tpu.memory_space<vmem>>, vector<48x896xbf16>
    tpu.vector_store %arg6[%c864, %c0_24], %41 {strides = array<i32>} : memref<1296x896xbf16, #tpu.memory_space<vmem>>, vector<48x896xbf16>,
    %43 = vector.extract_strided_slice %4 {offsets = [0, 201], sizes = [48, 896], strides = [1, 1]} : vector<48x1792xbf16> to vector<48x896xbf16>
    %c912 = arith.constant 912 : index
    %c0_25 = arith.constant 0 : index
    %44 = vector.load %arg6[%c912, %c0_25] : memref<1296x896xbf16, #tpu.memory_space<vmem>>, vector<48x896xbf16>
    tpu.vector_store %arg6[%c912, %c0_25], %43 {strides = array<i32>} : memref<1296x896xbf16, #tpu.memory_space<vmem>>, vector<48x896xbf16>,
    %45 = vector.extract_strided_slice %4 {offsets = [0, 202], sizes = [48, 896], strides = [1, 1]} : vector<48x1792xbf16> to vector<48x896xbf16>
    %c960 = arith.constant 960 : index
    %c0_26 = arith.constant 0 : index
    %46 = vector.load %arg6[%c960, %c0_26] : memref<1296x896xbf16, #tpu.memory_space<vmem>>, vector<48x896xbf16>
    tpu.vector_store %arg6[%c960, %c0_26], %45 {strides = array<i32>} : memref<1296x896xbf16, #tpu.memory_space<vmem>>, vector<48x896xbf16>,
    %47 = vector.extract_strided_slice %4 {offsets = [0, 210], sizes = [48, 896], strides = [1, 1]} : vector<48x1792xbf16> to vector<48x896xbf16>
    %c1008 = arith.constant 1008 : index
    %c0_27 = arith.constant 0 : index
    %48 = vector.load %arg6[%c1008, %c0_27] : memref<1296x896xbf16, #tpu.memory_space<vmem>>, vector<48x896xbf16>
    tpu.vector_store %arg6[%c1008, %c0_27], %47 {strides = array<i32>} : memref<1296x896xbf16, #tpu.memory_space<vmem>>, vector<48x896xbf16>,
    %49 = vector.extract_strided_slice %4 {offsets = [0, 211], sizes = [48, 896], strides = [1, 1]} : vector<48x1792xbf16> to vector<48x896xbf16>
    %c1056 = arith.constant 1056 : index
    %c0_28 = arith.constant 0 : index
    %50 = vector.load %arg6[%c1056, %c0_28] : memref<1296x896xbf16, #tpu.memory_space<vmem>>, vector<48x896xbf16>
    tpu.vector_store %arg6[%c1056, %c0_28], %49 {strides = array<i32>} : memref<1296x896xbf16, #tpu.memory_space<vmem>>, vector<48x896xbf16>,
    %51 = vector.extract_strided_slice %4 {offsets = [0, 212], sizes = [48, 896], strides = [1, 1]} : vector<48x1792xbf16> to vector<48x896xbf16>
    %c1104 = arith.constant 1104 : index
    %c0_29 = arith.constant 0 : index
    %52 = vector.load %arg6[%c1104, %c0_29] : memref<1296x896xbf16, #tpu.memory_space<vmem>>, vector<48x896xbf16>
    tpu.vector_store %arg6[%c1104, %c0_29], %51 {strides = array<i32>} : memref<1296x896xbf16, #tpu.memory_space<vmem>>, vector<48x896xbf16>,
    %53 = vector.extract_strided_slice %4 {offsets = [0, 220], sizes = [48, 896], strides = [1, 1]} : vector<48x1792xbf16> to vector<48x896xbf16>
    %c1152 = arith.constant 1152 : index
    %c0_30 = arith.constant 0 : index
    %54 = vector.load %arg6[%c1152, %c0_30] : memref<1296x896xbf16, #tpu.memory_space<vmem>>, vector<48x896xbf16>
    tpu.vector_store %arg6[%c1152, %c0_30], %53 {strides = array<i32>} : memref<1296x896xbf16, #tpu.memory_space<vmem>>, vector<48x896xbf16>,
    %55 = vector.extract_strided_slice %4 {offsets = [0, 221], sizes = [48, 896], strides = [1, 1]} : vector<48x1792xbf16> to vector<48x896xbf16>
    %c1200 = arith.constant 1200 : index
    %c0_31 = arith.constant 0 : index
    %56 = vector.load %arg6[%c1200, %c0_31] : memref<1296x896xbf16, #tpu.memory_space<vmem>>, vector<48x896xbf16>
    tpu.vector_store %arg6[%c1200, %c0_31], %55 {strides = array<i32>} : memref<1296x896xbf16, #tpu.memory_space<vmem>>, vector<48x896xbf16>,
    %57 = vector.extract_strided_slice %4 {offsets = [0, 222], sizes = [48, 896], strides = [1, 1]} : vector<48x1792xbf16> to vector<48x896xbf16>
    %c1248 = arith.constant 1248 : index
    %c0_32 = arith.constant 0 : index
    %58 = vector.load %arg6[%c1248, %c0_32] : memref<1296x896xbf16, #tpu.memory_space<vmem>>, vector<48x896xbf16>
    tpu.vector_store %arg6[%c1248, %c0_32], %57 {strides = array<i32>} : memref<1296x896xbf16, #tpu.memory_space<vmem>>, vector<48x896xbf16>,
    %c0_33 = arith.constant 0 : index
    %c0_34 = arith.constant 0 : index
    %59 = vector.load %arg2[%c0_33, %c0_34] : memref<48x1296xbf16, #tpu.memory_space<vmem>>, vector<48x1296xbf16>
    %c0_35 = arith.constant 0 : index
    %c0_36 = arith.constant 0 : index
    %60 = vector.load %arg6[%c0_35, %c0_36] : memref<1296x896xbf16, #tpu.memory_space<vmem>>, vector<1296x896xbf16>
    %cst = arith.constant dense<0.000000e+00> : vector<48x896xf32>
    %61 = tpu.matmul %59, %60, %cst {dimension_numbers = #tpu.dot_dimension_numbers<[1], [0], [0], [1], [0, 0, 1, 1], [], []>} : vector<48x1296xbf16>, vector<1296x896xbf16>, vector<48x896xf32> -> vector<48x896xf32>
    %c0_37 = arith.constant 0 : index
    %c0_38 = arith.constant 0 : index
    %c0_39 = arith.constant 0 : index
    %62 = vector.load %arg5[%c0_37, %c0_38, %c0_39] : memref<1x48x896xf32, #tpu.memory_space<vmem>>, vector<1x48x896xf32>
    %63 = vector.shape_cast %62 : vector<1x48x896xf32> to vector<48x896xf32>
    %64 = vector.shape_cast %61 : vector<48x896xf32> to vector<1x48x896xf32>
    tpu.vector_store %arg5[%c0_37, %c0_38, %c0_39], %64 {strides = array<i32>} : memref<1x48x896xf32, #tpu.memory_space<vmem>>, vector<1x48x896xf32>,
    return
  }
  func.func @transform_0(%arg0: i32, %arg1: i32) -> (i32, i32) {
    %c0_i32 = arith.constant 0 : i32
    %c0_i32_0 = arith.constant 0 : i32
    %c0_i32_1 = arith.constant 0 : i32
    return %c0_i32, %c0_i32_0 : i32, i32
  }
  func.func @transform_1(%arg0: i32, %arg1: i32) -> (i32, i32, i32) {
    %c0_i32 = arith.constant 0 : i32
    %c0_i32_0 = arith.constant 0 : i32
    return %arg0, %c0_i32, %arg1 : i32, i32, i32
  }
  func.func @transform_2(%arg0: i32, %arg1: i32) -> (i32, i32, i32) {
    %c1_i32 = arith.constant 1 : i32
    %0 = arith.addi %arg1, %c1_i32 : i32
    %c0_i32 = arith.constant 0 : i32
    %c0_i32_0 = arith.constant 0 : i32
    return %arg0, %c0_i32, %0 : i32, i32, i32
  }
  func.func @transform_3(%arg0: i32, %arg1: i32) -> (i32, i32, i32) {
    %c0_i32 = arith.constant 0 : i32
    %c0_i32_0 = arith.constant 0 : i32
    return %arg0, %c0_i32, %arg1 : i32, i32, i32
  }
}

</mosaic_0001>

<bundles_post_ra>
// kernel: tpu_custom_call.1
= control target key start
LH: loop header
LB: loop body
LE: loop exit
PB: predicated region body
PF: predicated region fallthrough
CT: control target
= control target key end

     0   :  { %s10467_s0 = inlined_call_operand.hbm [shape: bf16[48,1296], index: 0, kind: input, shape index: {}]   ;;  %s10468_s1 = inlined_call_operand.hbm [shape: bf16[2,48,1792], index: 1, kind: input, shape index: {}]   ;;  %s10469_s2 = inlined_call_operand.hbm [shape: bf16[2,48,1792], index: 2, kind: input, shape index: {}]   ;;  %s10470_s3 = inlined_call_operand.hbm [shape: f32[2,48,896], index: 3, kind: output, shape index: {}]  }
   0x1   :  { %10680 = sst [smem:[#allocation136_spill]] %s10468_s1 }
   0x2   :  { %8 = vsyncpa [#allocation4], 0 }
   0x3   :  { %9 = vsyncpa [#allocation7], 0 }
   0x4   :  { %11 = vsyncpa [#allocation7 + $0x1], 0 }
   0x5   :  { %12 = vsyncpa [#allocation5], 0 }
   0x6   :  { %14 = vsyncpa [#allocation5 + $0x1], 0  ;;  %s6807_s12 = smov 0   ;;  %s6809_s13 = smov 0  }
   0x7   :  { %s6811_s14 = smov 0   ;;  %s6813_s15 = smov 0  }
   0x8   :  { %s6815_s16 = smov 0   ;;  %s6817_s17 = smov 0  }
   0x9 LB: > { %10681 = sst [smem:[#allocation13_spill]] %s6742_s16  ;;  %s32_s18 = sadd.s32 1, %s6742_s16  ;;  %s6746_s17 = sphi %s6817_s17, %s20_s17   ;;  %s6742_s16 = sphi %s6815_s16, %s11239_s16   ;;  %s6738_s15 = sphi %s6813_s15, %s11238_s15   ;;  %s6734_s14 = sphi %s6811_s14, %s11242_s14   ;;  %s6730_s13 = sphi %s6809_s13, %s11241_s13   ;;  %s6726_s12 = sphi %s6807_s12, %s11240_s12  }
   0xa   : > { %s62_s19 = sadd.s32 1, %s6734_s14  ;;  %p34_p0 = scmp.ge.s32.totalorder %s32_s18, 2 }
   0xb   : > { %p69_p1 = scmp.ne.s32.totalorder %s6734_s14, %s6730_s13  ;;  %p70_p2 = scmp.eq.s32.totalorder %s6746_s17, 0 }
   0xc   : > { %s11244_s18 = smov (%p34_p0, %s32_s18), 0  ;;  %p6287_p5 = scmp.lt.s32.totalorder %s6746_s17, 2 }
   0xd   : > { %10682 = sst [smem:[#allocation14_spill]] %s11244_s18  ;;  %p71_p4 = por %p70_p2, %p69_p1 }
   0xe   : > { %s57_s20 = ssub.s32 %s6742_s16, %s11244_s18  ;;  %s170_s21 = sand.u32 1, %s6746_s17  }
   0xf   : > { %p60_p6 = scmp.eq.s32.totalorder %s57_s20, 0  ;;  %s172_s22 = sand.u32 1, %s6734_s14  }
  0x10   : > { %s6256_s23 = smul.u32 5376, %s6742_s16  ;;  %s10683_s1 = sld [smem:[#allocation136_spill]] }
  0x11   : > { %s6855_s24 = scalar_select %p60_p6, %s6734_s14, %s62_s19  }
  0x12   : > { %s6857_s25 = smul.u32 168, %s172_s22  ;;  %p6866_p7 = pnand %p6287_p5, %p71_p4 }
  0x13   : > { %s6873_s5 = scalar_lea.sflag [#allocation7], %s170_s21 }
  0x14   : > { %s10684_s29 = scalar_select %p6866_p7, 1, 0 }
  0x15   : > { %s174_s30 = scalar_lea.vmem [#allocation6], %s6857_s25  ;;  %p10475_p9 = pneg %p6866_p7 }
  0x16   : > { %s6864_s28 = scalar_lea.hbm %s10683_s1, %s6256_s23  ;;  %s183_s4 = sshll.u32 %s174_s30, 4  ;;  %s6871_s4 = int_to_ptr.vmem [resolvable:$true] %s183_s4 }
  0x17   : > { %s6571_s6 = scalar_lea.hbm %s6864_s28, 2688  ;;  %s6576_s9 = scalar_lea.hbm %s10683_s1, 10752 }
  0x18   : > { %p6572_p8 = scmp.ne.s32.totalorder %s6864_s28, %s6571_s6  ;;  %p6577_p12 = scmp.lt.u32.totalorder %s6864_s28, %s10683_s1 }
  0x19   : > { %p6578_p13 = scmp.lt.u32.totalorder %s6576_s9, %s6571_s6  ;;  %p6580_p2 = scmp.lt.u32.totalorder %s6571_s6, %s6864_s28 }
  0x1a   : > { %p6574_p10 = pnand %p10475_p9, %p6572_p8 }
  0x1b   : > { %p6579_p0 = por %p6578_p13, %p6577_p12 }
  0x1c   : > { %p6575_p11 = pneg %p6574_p10 }
  0x1d   : > { %p6581_p4 = por %p6580_p2, %p6579_p0 }
  0x1f   : > { %p6582_p5 = pnand %p6581_p4, %p6575_p11 }
  0x21   : > { %6585 = shalt.err (!%p6582_p5)
}
  0x22   : > { %s6586_s19 = scalar_lea.vmem %s6871_s4, 2688  ;;  %s6748_s20 = smov [#allocation6]  }
  0x23   : > { %p6587_p6 = scmp.ne.s32.totalorder %s6871_s4, %s6586_s19  ;;  %s6591_s21 = sshll.u32 %s6748_s20, 4  ;;  %s6592_s21 = int_to_ptr.vmem [resolvable:$false] %s6591_s21 }
  0x24   : > { %s6593_s22 = scalar_lea.vmem %s6592_s21, 5376  ;;  %p6594_p3 = scmp.lt.s32.totalorder %s6871_s4, %s6592_s21 }
  0x25   : > { %p6589_p8 = pnand %p6587_p6, %p10475_p9  ;;  %p6595_p12 = scmp.lt.s32.totalorder %s6593_s22, %s6586_s19 }
  0x27   : > { %p6590_p10 = pneg %p6589_p8  ;;  %p6596_p13 = por %p6595_p12, %p6594_p3 }
  0x29   : > { %p6597_p0 = pnand %p6596_p13, %p6590_p10 }
  0x2b   : > { %6600 = shalt.err (!%p6597_p0)
}
  0x2c   : > { %s10471_s26 = smov 896   ;;  %s10472_s27 = smov 448  }
  0x2d   : > { %s10473_s30 = smov 28   ;;  %s6905_s6 = sadd.s32 4294967295, %s6746_s17  }
  0x2e   : > { %6278 = dma.hbm_to_vmem [thread:$0]  (!%p6866_p7), %s6864_s28, 2688, %s6871_s4, %s6873_s5, %s10471_s26, %s10472_s27, %s10473_s30  }
  0x2f   : > { %s5802_s7 = sadd.s32 4294967294, %s6746_s17   ;;  %p75_p3 = scmp.ne.s32.totalorder %s6730_s13, %s6726_s12 }
  0x30   : > { %p10474_p11 = scmp.eq.s32.totalorder %s6905_s6, 0  ;;  %p131_p2 = scmp.eq.s32.totalorder %s6905_s6, 1 }
  0x31   : > { %p137_p4 = scmp.eq.s32.totalorder %s5802_s7, 1  ;;  %p5803_p6 = scmp.ge.s32.totalorder %s6746_s17, 1 }
  0x32   : > { %p6914_p5 = por %p10474_p11, %p75_p3  ;;  %p6922_p8 = por %p131_p2, %p69_p1 }
  0x33   : > { %p6926_p10 = por %p137_p4, %p75_p3  ;;  %p144_p12 = scmp.lt.s32.totalorder %s6746_s17, 3 }
  0x34   : > { %s10685_s8 = scalar_select %p6914_p5, 1, 0 }
  0x35   : > { %s10686_s28 = scalar_select %p6922_p8, 1, 0 }
  0x36   : > { %s10687_s4 = scalar_select %p6926_p10, 1, 0 }
  0x37   : > { %p6931_p13 = pnand %p5803_p6, %p144_p12  ;;  %s6752_s10 = smov [#allocation3]  }
  0x38   : > { %s156_s11 = sshll.u32 %s6752_s10, 4  ;;  %s6944_s21 = scalar_lea.hbm %s10469_s2, %s6256_s23  ;;  %s6935_s11 = int_to_ptr.vmem [resolvable:$true] %s156_s11 }
  0x39   : > { %s10688_s9 = scalar_select %p6931_p13, 1, 0 }
  0x3a   : > { %p6271_p0 = pneg %p6931_p13  ;;  %s197_s22 = scalar_lea.vmem [#allocation8], %s6857_s25 }
  0x3b   : > { %s207_s7 = sshll.u32 %s197_s22, 4  ;;  %s6954_s10 = scalar_lea.hbm %s6944_s21, 448  ;;  %s6956_s7 = int_to_ptr.vmem [resolvable:$true] %s207_s7 }
  0x3c   : > { %p6949_p1 = pnand %p6271_p0, %p10474_p11  ;;  %s6601_s1 = scalar_lea.hbm %s10467_s0, 4224 }
  0x3d   : > { %p6602_p3 = scmp.ne.s32.totalorder %s10467_s0, %s6601_s1  ;;  %p6608_p12 = scmp.lt.u32.totalorder %s6601_s1, %s10467_s0 }
  0x3e   : > { %p6603_p2 = pneg %p6949_p1 }
  0x40   : > { %p6604_p4 = pnand %p6603_p2, %p6602_p3 }
  0x42   : > { %p6605_p6 = pneg %p6604_p4 }
  0x44   : > { %p6610_p0 = pnand %p6608_p12, %p6605_p6 }
  0x46   : > { %6613 = shalt.err (!%p6610_p0)
}
  0x47   : > { %s6614_s22 = scalar_lea.vmem %s6935_s11, 4224  ;;  %p6622_p8 = scmp.lt.s32.totalorder %s6935_s11, %s6935_s11 }
  0x48   : > { %p6615_p11 = scmp.ne.s32.totalorder %s6935_s11, %s6614_s22  ;;  %p6623_p5 = scmp.lt.s32.totalorder %s6614_s22, %s6614_s22 }
  0x4a   : > { %p6617_p9 = pnand %p6615_p11, %p6603_p2  ;;  %p6624_p13 = por %p6623_p5, %p6622_p8 }
  0x4c   : > { %p6618_p10 = pneg %p6617_p9 }
  0x4e   : > { %p6625_p7 = pnand %p6624_p13, %p6618_p10 }
  0x50   : > { %6628 = shalt.err (!%p6625_p7)
}
  0x51   : > { %s6753_s27 = smov 704   ;;  %s6754_s1 = smov 44  }
  0x52   : > { %6274 = dma.hbm_to_vmem [thread:$0]  (!%p6949_p1), %s10467_s0, 4224, %s6935_s11, [#allocation4], %s6753_s27, %s6753_s27, %s6754_s1  }
  0x53   : > { %s6659_s23 = scalar_lea.hbm %s6944_s21, 3136  ;;  %p10690_p11 = scmp.ne.s32.totalorder %s10684_s29, 0 }
  0x54   : > { %p6630_p9 = scmp.ne.s32.totalorder %s6954_s10, %s6659_s23  ;;  %s6634_s22 = scalar_lea.hbm %s10469_s2, 10752 }
  0x55   : > { %p10691_p5 = pneg %p10690_p11  ;;  %p6635_p10 = scmp.lt.u32.totalorder %s6954_s10, %s10469_s2 }
  0x56   : > { %p6636_p13 = scmp.lt.u32.totalorder %s6634_s22, %s6659_s23  ;;  %p6638_p2 = scmp.lt.u32.totalorder %s6659_s23, %s6954_s10 }
  0x57   : > { %p6632_p8 = pnand %p6630_p9, %p10691_p5 }
  0x58   : > { %p6637_p3 = por %p6636_p13, %p6635_p10 }
  0x59   : > { %p6633_p7 = pneg %p6632_p8 }
  0x5a   : > { %p6639_p4 = por %p6638_p2, %p6637_p3 }
  0x5c   : > { %p6640_p6 = pnand %p6639_p4, %p6633_p7 }
  0x5e   : > { %6643 = shalt.err (!%p6640_p6)
}
  0x5f   : > { %s6644_s26 = scalar_lea.vmem %s6956_s7, 2688  ;;  %p10692_p12 = pmov %p10691_p5 }
  0x60   : > { %p6645_p1 = scmp.ne.s32.totalorder %s6956_s7, %s6644_s26  ;;  %s6755_s11 = smov [#allocation8]  }
  0x61   : > { %s6649_s21 = sshll.u32 %s6755_s11, 4  ;;  %s6650_s21 = int_to_ptr.vmem [resolvable:$false] %s6649_s21 }
  0x62   : > { %p6647_p0 = pnand %p6645_p1, %p10692_p12  ;;  %s6651_s16 = scalar_lea.vmem %s6650_s21, 5376 }
  0x63   : > { %p6652_p5 = scmp.lt.s32.totalorder %s6956_s7, %s6650_s21  ;;  %p6653_p8 = scmp.lt.s32.totalorder %s6651_s16, %s6644_s26 }
  0x64   : > { %p6648_p9 = pneg %p6647_p0 }
  0x65   : > { %p6654_p10 = por %p6653_p8, %p6652_p5 }
  0x67   : > { %p6655_p13 = pnand %p6654_p10, %p6648_p9 }
  0x69   : > { %6658 = shalt.err (!%p6655_p13)
}
  0x6a   : > { %s10693_s18 = smov 28   ;;  %s10694_s27 = smov 448  }
  0x6b   : > { %s10695_s1 = smov 896   ;;  %p10696_p7 = scmp.ne.s32.totalorder %s10688_s9, 0 }
  0x6c   : > { %6281 = dma.hbm_to_vmem [thread:$0]  (!%p10690_p11), %s6954_s10, 2688, %s6956_s7, %s6873_s5, %s10695_s1, %s10694_s27, %s10693_s18  }
  0x6d   : > { %219 = sbr.rel (%p10696_p7) target bundleno = 1748 (0x6d4), region = 32 }
  0x74   : > { %p10697_p3 = scmp.eq.s32.totalorder %s6905_s6, 0 }
  0x76   : > { %6713 = dma.done.wait (%p10697_p3), [#allocation4], 4224   ;;  %p10698_p2 = pmov %p10697_p3 }
  0x77   : > { %s225_s29 = sand.u32 1, %s6905_s6   ;;  %s7014_s30 = sand.u32 1, %s6730_s13  }
  0x78   : > { %6715 = vsyncadd (%p10698_p2), [#allocation4], 4294963072  ;;  %s6258_s19 = smul.u32 168, %s7014_s30  ;;  %s226_s23 = scalar_lea.sflag [#allocation7], %s225_s29 }
  0x79   : > { %p10699_p11 = scmp.ne.s32.totalorder %s10685_s8, 0 }
  0x7a   : > { %s7017_s25 = scalar_lea.vmem [#allocation6], %s6258_s19 }
  0x7b   : > { %6717 = dma.done.wait (%p10699_p11), %s226_s23, 5376  }
  0x7c   : > { %6719 = vsyncadd (%p10699_p11), %s226_s23, 4294961920  ;;  %v7024_v0 = vld [vmem:[%s7017_s25 + $0x8] ss:$28 sps:$4 sm:$0xff]   ;;  %v7027_v1 = vld [vmem:[%s7017_s25] ss:$28 sps:$4 sm:$0xff]   ;;  %s6756_s5 = smov 127  }
  0x7d   : > { %458 = vrot.lane.b32.xlu1 %v7024_v0, %s6756_s5  ;;  %v7032_v2 = vld [vmem:[%s7017_s25 + $0x4] ss:$28 sps:$4 sm:$0xff]   ;;  %v7035_v3 = vld [vmem:[%s7017_s25 + $0xc] ss:$28 sps:$4 sm:$0xff]   ;;  %454 = vrot.lane.b32.xlu0 %v7027_v1, %s6756_s5  ;;  %s7042_s6 = scalar_lea.vmem [#allocation8], %s6258_s19  ;;  %s6757_s8 = smov 126  }
  0x7e   : > { %v7040_v4 = vld [vmem:[%s7017_s25 + $0x14] ss:$28 sps:$4 sm:$0xff]   ;;  %4144 = vmatprep.subr.bf16.mxu1 %v7032_v2  ;;  %v7052_v6 = vld [vmem:[%s7017_s25 + $0x3c] ss:$28 sps:$4 sm:$0xff]   ;;  %v7084_v12 = vld [vmem:[%s7017_s25 + $0x44] ss:$28 sps:$4 sm:$0xff]  }
  0x7f   : > { %v7046_v5 = vld [vmem:[%s7017_s25 + $0x10] ss:$28 sps:$4 sm:$0xff]   ;;  %4145 = vmatpush1.bf16.msra.mxu1 %v7027_v1  ;;  %v7057_v7 = vld [vmem:[%s7017_s25 + $0x38] ss:$28 sps:$4 sm:$0xff]   ;;  %v7087_v13 = vld [vmem:[%s7017_s25 + $0x40] ss:$28 sps:$4 sm:$0xff]  }
  0x80   : > { %4146 = vmatprep.subr.bf16.mxu1 %v7052_v6  ;;  %v7064_v8 = vld [vmem:[%s7042_s6] ss:$28 sps:$4 sm:$0xff]   ;;  %v7069_v9 = vld [vmem:[%s7017_s25 + $0x18] ss:$28 sps:$4 sm:$0xff]   ;;  %v7097_v15 = vld [vmem:[%s7017_s25 + $0x48] ss:$28 sps:$4 sm:$0xff]  }
  0x81   : > { %460 = vrot.lane.b32.xlu1 %v7035_v3, %s6756_s5  ;;  %456 = vrot.lane.b32.xlu0 %v7032_v2, %s6756_s5  ;;  %v7072_v10 = vld [vmem:[%s7017_s25 + $0x74] ss:$28 sps:$4 sm:$0xff]   ;;  %v7094_v14 = vld [vmem:[%s7017_s25 + $0x4c] ss:$28 sps:$4 sm:$0xff]   ;;  %s6758_s9 = smov 118   ;;  %vm10622_vm0 = vcmask 1039360  }
  0x82   : > { %v7075_v11 = vld [vmem:[%s7017_s25 + $0x70] ss:$28 sps:$4 sm:$0xff]   ;;  %v7104_v16 = vld [vmem:[%s7042_s6 + $0x38] ss:$28 sps:$4 sm:$0xff]   ;;  %v7120_v18 = vld [vmem:[%s7017_s25 + $0x7c] ss:$28 sps:$4 sm:$0xff]  }
  0x83   : > { %4147 = vmatpush1.bf16.msra.mxu1 %v7057_v7  ;;  %v7107_v17 = vld [vmem:[%s7017_s25 + $0x50] ss:$28 sps:$4 sm:$0xff]   ;;  %v7125_v19 = vld [vmem:[%s7017_s25 + $0x78] ss:$28 sps:$4 sm:$0xff]   ;;  %v7130_v20 = vld [vmem:[%s7017_s25 + $0x84] ss:$28 sps:$4 sm:$0xff]  }
  0x84   : > { %4148 = vmatprep.subr.bf16.mxu1 %v7072_v10  ;;  %v7135_v21 = vld [vmem:[%s7017_s25 + $0x80] ss:$28 sps:$4 sm:$0xff]   ;;  %v7145_v23 = vld [vmem:[%s7017_s25 + $0x88] ss:$28 sps:$4 sm:$0xff]   ;;  %s6759_s7 = smov 117   ;;  %vm614_vm1 = vcmask 1031168  }
  0x85   : > { %464 = vrot.lane.b32.xlu1 %v7040_v4, %s6756_s5  ;;  %462 = vrot.lane.b32.xlu0 %v7046_v5, %s6756_s5  ;;  %v7140_v22 = vld [vmem:[%s7042_s6 + $0x70] ss:$28 sps:$4 sm:$0xff]   ;;  %s6760_s10 = smov 116   ;;  %vm10583_vm2 = vcmask 965632   ;;  %s6761_s20 = smov 108   ;;  %vm838_vm3 = vcmask 957440  }
  0x86   : > { %s6762_s22 = smov 107   ;;  %vm10584_vm4 = vcmask 949248   ;;  %s6763_s26 = smov 106   ;;  %vm10585_vm5 = vcmask 883712   ;;  %vm10587_vm6 = vcmask 875520   ;;  %vm10586_vm7 = vcmask 867328  }
  0x87   : > { %4149 = vmatpush1.bf16.msra.mxu1 %v7075_v11  ;;  %s6764_s11 = smov 28   ;;  %s6765_s21 = smov 27   ;;  %vm10596_vm8 = vcmask 228352   ;;  %vm10601_vm9 = vcmask 220160   ;;  %vm10605_vm10 = vcmask 211968   ;;  %vm1734_vm11 = vcmask 146432  }
  0x88   : > { %s10588_s16 = smov 26   ;;  %s6767_s18 = smov 18   ;;  %vm3302_vm12 = vcmask 277504   ;;  %vm1958_vm13 = vcmask 130048   ;;  %vm1846_vm14 = vcmask 138240   ;;  %vm2070_vm15 = vcmask 64512  }
  0x89   : > { %468 = vrot.lane.b32.xlu1 %v7064_v8, %s6756_s5  ;;  %466 = vrot.lane.b32.xlu0 %v7069_v9, %s6756_s5  ;;  %s6769_s27 = smov 34   ;;  %s6770_s1 = smov 17  }
  0x8a   : > { %s6771_s29 = smov 16   ;;  %s6772_s19 = smov 8  }
  0x8b   : > { %s6773_s23 = smov 7   ;;  %p11235_p6 = scmp.ne.s32.totalorder %s10686_s28, 0 }
  0x8d   : > { %472 = vrot.lane.b32.xlu1 %v7052_v6, %s6756_s5  ;;  %470 = vrot.lane.b32.xlu0 %v7057_v7, %s6756_s5 }
  0x91   : > { %476 = vrot.lane.b32.xlu1 %v7084_v12, %s6756_s5  ;;  %474 = vrot.lane.b32.xlu0 %v7087_v13, %s6756_s5 }
  0x95   : > { %480 = vrot.lane.b32.xlu1 %v7094_v14, %s6756_s5  ;;  %478 = vrot.lane.b32.xlu0 %v7097_v15, %s6756_s5 }
  0x99   : > { %484 = vrot.lane.b32.xlu1 %v7104_v16, %s6756_s5  ;;  %482 = vrot.lane.b32.xlu0 %v7107_v17, %s6756_s5 }
  0x9d   : > { %488 = vrot.lane.b32.xlu1 %v7072_v10, %s6756_s5  ;;  %486 = vrot.lane.b32.xlu0 %v7075_v11, %s6756_s5 }
  0xa1   : > { %492 = vrot.lane.b32.xlu1 %v7120_v18, %s6756_s5  ;;  %490 = vrot.lane.b32.xlu0 %v7125_v19, %s6756_s5 }
  0xa5   : > { %496 = vrot.lane.b32.xlu1 %v7130_v20, %s6756_s5  ;;  %494 = vrot.lane.b32.xlu0 %v7135_v21, %s6756_s5 }
  0xa9   : > { %500 = vrot.lane.b32.xlu1 %v7140_v22, %s6756_s5  ;;  %498 = vrot.lane.b32.xlu0 %v7145_v23, %s6756_s5  ;;  %s6774_s5 = smov 6  }
  0xad   : > { %568 = vrot.lane.b32.xlu1 %v7032_v2, %s6757_s8  ;;  %566 = vrot.lane.b32.xlu0 %v7027_v1, %s6757_s8 }
  0xb1   : > { %572 = vrot.lane.b32.xlu1 %v7035_v3, %s6757_s8  ;;  %570 = vrot.lane.b32.xlu0 %v7024_v0, %s6757_s8 }
  0xb5   : > { %576 = vrot.lane.b32.xlu1 %v7040_v4, %s6757_s8  ;;  %574 = vrot.lane.b32.xlu0 %v7046_v5, %s6757_s8 }
  0xb9   : > { %580 = vrot.lane.b32.xlu1 %v7064_v8, %s6757_s8  ;;  %578 = vrot.lane.b32.xlu0 %v7069_v9, %s6757_s8 }
  0xbd   : > { %584 = vrot.lane.b32.xlu1 %v7052_v6, %s6757_s8  ;;  %582 = vrot.lane.b32.xlu0 %v7057_v7, %s6757_s8 }
  0xc1   : > { %588 = vrot.lane.b32.xlu1 %v7084_v12, %s6757_s8  ;;  %586 = vrot.lane.b32.xlu0 %v7087_v13, %s6757_s8 }
  0xc5   : > { %592 = vrot.lane.b32.xlu1 %v7094_v14, %s6757_s8  ;;  %590 = vrot.lane.b32.xlu0 %v7097_v15, %s6757_s8 }
  0xc9   : > { %596 = vrot.lane.b32.xlu1 %v7104_v16, %s6757_s8  ;;  %594 = vrot.lane.b32.xlu0 %v7107_v17, %s6757_s8 }
  0xcd   : > { %600 = vrot.lane.b32.xlu1 %v7072_v10, %s6757_s8  ;;  %598 = vrot.lane.b32.xlu0 %v7075_v11, %s6757_s8 }
  0xd1   : > { %604 = vrot.lane.b32.xlu1 %v7120_v18, %s6757_s8  ;;  %602 = vrot.lane.b32.xlu0 %v7125_v19, %s6757_s8 }
  0xd5   : > { %608 = vrot.lane.b32.xlu1 %v7130_v20, %s6757_s8  ;;  %606 = vrot.lane.b32.xlu0 %v7135_v21, %s6757_s8 }
  0xd9   : > { %612 = vrot.lane.b32.xlu1 %v7140_v22, %s6757_s8  ;;  %610 = vrot.lane.b32.xlu0 %v7145_v23, %s6757_s8  ;;  %s6775_s8 = smov 56  }
  0xdd   : > { %680 = vrot.lane.b32.xlu1 %v7032_v2, %s6758_s9  ;;  %678 = vrot.lane.b32.xlu0 %v7027_v1, %s6758_s9 }
  0xe1   : > { %684 = vrot.lane.b32.xlu1 %v7035_v3, %s6758_s9  ;;  %682 = vrot.lane.b32.xlu0 %v7024_v0, %s6758_s9 }
  0xe5   : > { %688 = vrot.lane.b32.xlu1 %v7040_v4, %s6758_s9  ;;  %686 = vrot.lane.b32.xlu0 %v7046_v5, %s6758_s9 }
  0xe9   : > { %692 = vrot.lane.b32.xlu1 %v7064_v8, %s6758_s9  ;;  %690 = vrot.lane.b32.xlu0 %v7069_v9, %s6758_s9 }
  0xed   : > { %696 = vrot.lane.b32.xlu1 %v7052_v6, %s6758_s9  ;;  %694 = vrot.lane.b32.xlu0 %v7057_v7, %s6758_s9 }
  0xef   : > { %v7195_v24 = vpop.permute.xlu1 %458  ;;  %v455_v25 = vpop.permute.xlu0 %454 }
  0xf1   : > { %700 = vrot.lane.b32.xlu1 %v7084_v12, %s6758_s9  ;;  %698 = vrot.lane.b32.xlu0 %v7087_v13, %s6758_s9 }
  0xf3   : > { %v7201_v26 = vpop.permute.xlu1 %460  ;;  %v457_v27 = vpop.permute.xlu0 %456 }
  0xf4   : > { %v504_v28 = vsel %vm10622_vm0, %v457_v27, %v7195_v24  ;;  %v503_v29 = vsel %vm10622_vm0, %v455_v25, %v457_v27 }
  0xf5   : > { %704 = vrot.lane.b32.xlu1 %v7094_v14, %s6758_s9  ;;  %702 = vrot.lane.b32.xlu0 %v7097_v15, %s6758_s9 }
  0xf6   : > { %4150 = vmatprep.subr.bf16.mxu1 %v504_v28 }
  0xf7   : > { %4151 = vmatpush1.bf16.msra.mxu1 %v503_v29  ;;  %v7210_v30 = vpop.permute.xlu1 %464  ;;  %v7212_v31 = vpop.permute.xlu0 %462 }
  0xf8   : > { %10700 = vst [vmem:[#allocation15_spill] sm:$0xff] %v7210_v30  ;;  %10701 = vst [vmem:[#allocation16_spill] sm:$0xff] %v7212_v31 }
  0xf9   : > { %708 = vrot.lane.b32.xlu1 %v7104_v16, %s6758_s9  ;;  %706 = vrot.lane.b32.xlu0 %v7107_v17, %s6758_s9 }
  0xfb   : > { %v7218_v32 = vpop.permute.xlu1 %468  ;;  %v7220_v33 = vpop.permute.xlu0 %466 }
  0xfc   : > { %10702 = vst [vmem:[#allocation17_spill] sm:$0xff] %v7218_v32  ;;  %10703 = vst [vmem:[#allocation18_spill] sm:$0xff] %v7220_v33 }
  0xfd   : > { %712 = vrot.lane.b32.xlu1 %v7072_v10, %s6758_s9  ;;  %710 = vrot.lane.b32.xlu0 %v7075_v11, %s6758_s9 }
  0xff   : > { %v473_v34 = vpop.permute.xlu1 %472  ;;  %v471_v35 = vpop.permute.xlu0 %470 }
 0x100   : > { %v510_v39 = vsel %vm10622_vm0, %v471_v35, %v473_v34 }
 0x101   : > { %716 = vrot.lane.b32.xlu1 %v7120_v18, %s6758_s9  ;;  %714 = vrot.lane.b32.xlu0 %v7125_v19, %s6758_s9 }
 0x103   : > { %v7230_v36 = vpop.permute.xlu1 %476  ;;  %v7232_v37 = vpop.permute.xlu0 %474 }
 0x104   : > { %v511_v38 = vsel %vm10622_vm0, %v473_v34, %v7232_v37 }
 0x105   : > { %720 = vrot.lane.b32.xlu1 %v7130_v20, %s6758_s9  ;;  %718 = vrot.lane.b32.xlu0 %v7135_v21, %s6758_s9 }
 0x106   : > { %4152 = vmatprep.subr.bf16.mxu1 %v511_v38 }
 0x107   : > { %4153 = vmatpush1.bf16.msra.mxu1 %v510_v39  ;;  %v7241_v40 = vpop.permute.xlu1 %480  ;;  %v7243_v41 = vpop.permute.xlu0 %478 }
 0x108   : > { %10704 = vst [vmem:[#allocation19_spill] sm:$0xff] %v7241_v40 }
 0x109   : > { %724 = vrot.lane.b32.xlu1 %v7140_v22, %s6758_s9  ;;  %722 = vrot.lane.b32.xlu0 %v7145_v23, %s6758_s9  ;;  %s6776_s9 = smov 55  }
 0x10b   : > { %v7249_v42 = vpop.permute.xlu1 %484  ;;  %v7251_v43 = vpop.permute.xlu0 %482 }
 0x10c   : > { %10705 = vst [vmem:[#allocation20_spill] sm:$0xff] %v7249_v42  ;;  %10706 = vst [vmem:[#allocation21_spill] sm:$0xff] %v7251_v43 }
 0x10d   : > { %792 = vrot.lane.b32.xlu1 %v7032_v2, %s6759_s7  ;;  %790 = vrot.lane.b32.xlu0 %v7027_v1, %s6759_s7 }
 0x10f   : > { %v489_v44 = vpop.permute.xlu1 %488  ;;  %v487_v45 = vpop.permute.xlu0 %486 }
 0x110   : > { %v517_v49 = vsel %vm10622_vm0, %v487_v45, %v489_v44 }
 0x111   : > { %796 = vrot.lane.b32.xlu1 %v7035_v3, %s6759_s7  ;;  %794 = vrot.lane.b32.xlu0 %v7024_v0, %s6759_s7 }
 0x113   : > { %v7261_v46 = vpop.permute.xlu1 %492  ;;  %v7263_v47 = vpop.permute.xlu0 %490 }
 0x114   : > { %v518_v48 = vsel %vm10622_vm0, %v489_v44, %v7263_v47 }
 0x115   : > { %800 = vrot.lane.b32.xlu1 %v7040_v4, %s6759_s7  ;;  %798 = vrot.lane.b32.xlu0 %v7046_v5, %s6759_s7 }
 0x116   : > { %4154 = vmatprep.subr.bf16.mxu1 %v518_v48 }
 0x117   : > { %4155 = vmatpush1.bf16.msra.mxu1 %v517_v49  ;;  %v7272_v50 = vpop.permute.xlu1 %496  ;;  %v7274_v51 = vpop.permute.xlu0 %494 }
 0x118   : > { %10707 = vst [vmem:[#allocation22_spill] sm:$0xff] %v7272_v50 }
 0x119   : > { %804 = vrot.lane.b32.xlu1 %v7064_v8, %s6759_s7  ;;  %802 = vrot.lane.b32.xlu0 %v7069_v9, %s6759_s7 }
 0x11b   : > { %v7280_v52 = vpop.permute.xlu1 %500  ;;  %v7282_v53 = vpop.permute.xlu0 %498 }
 0x11c   : > { %10708 = vst [vmem:[#allocation23_spill] sm:$0xff] %v7280_v52  ;;  %10709 = vst [vmem:[#allocation24_spill] sm:$0xff] %v7282_v53 }
 0x11d   : > { %808 = vrot.lane.b32.xlu1 %v7052_v6, %s6759_s7  ;;  %806 = vrot.lane.b32.xlu0 %v7057_v7, %s6759_s7 }
 0x11f   : > { %v569_v54 = vpop.permute.xlu1 %568  ;;  %v567_v55 = vpop.permute.xlu0 %566 }
 0x120   : > { %v615_v59 = vsel %vm614_vm1, %v567_v55, %v569_v54 }
 0x121   : > { %812 = vrot.lane.b32.xlu1 %v7084_v12, %s6759_s7  ;;  %810 = vrot.lane.b32.xlu0 %v7087_v13, %s6759_s7 }
 0x123   : > { %v7292_v56 = vpop.permute.xlu1 %572  ;;  %v7294_v57 = vpop.permute.xlu0 %570 }
 0x124   : > { %v616_v58 = vsel %vm614_vm1, %v569_v54, %v7294_v57 }
 0x125   : > { %816 = vrot.lane.b32.xlu1 %v7094_v14, %s6759_s7  ;;  %814 = vrot.lane.b32.xlu0 %v7097_v15, %s6759_s7 }
 0x126   : > { %4156 = vmatprep.subr.bf16.mxu1 %v616_v58 }
 0x127   : > { %4157 = vmatpush1.bf16.msra.mxu1 %v615_v59  ;;  %v7303_v60 = vpop.permute.xlu1 %576  ;;  %v7305_v61 = vpop.permute.xlu0 %574 }
 0x128   : > { %10710 = vst [vmem:[#allocation25_spill] sm:$0xff] %v7303_v60 }
 0x129   : > { %820 = vrot.lane.b32.xlu1 %v7104_v16, %s6759_s7  ;;  %818 = vrot.lane.b32.xlu0 %v7107_v17, %s6759_s7 }
 0x12b   : > { %v7311_v62 = vpop.permute.xlu1 %580  ;;  %v7313_v63 = vpop.permute.xlu0 %578 }
 0x12c   : > { %10711 = vst [vmem:[#allocation26_spill] sm:$0xff] %v7311_v62  ;;  %10712 = vst [vmem:[#allocation27_spill] sm:$0xff] %v7313_v63 }
 0x12d   : > { %824 = vrot.lane.b32.xlu1 %v7072_v10, %s6759_s7  ;;  %822 = vrot.lane.b32.xlu0 %v7075_v11, %s6759_s7 }
 0x12f   : > { %v585_v25 = vpop.permute.xlu1 %584  ;;  %v583_v27 = vpop.permute.xlu0 %582 }
 0x130   : > { %v622_v35 = vsel %vm614_vm1, %v583_v27, %v585_v25 }
 0x131   : > { %828 = vrot.lane.b32.xlu1 %v7120_v18, %s6759_s7  ;;  %826 = vrot.lane.b32.xlu0 %v7125_v19, %s6759_s7 }
 0x133   : > { %v7323_v28 = vpop.permute.xlu1 %588  ;;  %v7325_v29 = vpop.permute.xlu0 %586 }
 0x134   : > { %v623_v34 = vsel %vm614_vm1, %v585_v25, %v7325_v29 }
 0x135   : > { %832 = vrot.lane.b32.xlu1 %v7130_v20, %s6759_s7  ;;  %830 = vrot.lane.b32.xlu0 %v7135_v21, %s6759_s7 }
 0x136   : > { %4158 = vmatprep.subr.bf16.mxu1 %v623_v34 }
 0x137   : > { %4159 = vmatpush1.bf16.msra.mxu1 %v622_v35  ;;  %v7334_v38 = vpop.permute.xlu1 %592  ;;  %v7336_v39 = vpop.permute.xlu0 %590 }
 0x138   : > { %10713 = vst [vmem:[#allocation28_spill] sm:$0xff] %v7334_v38 }
 0x139   : > { %836 = vrot.lane.b32.xlu1 %v7140_v22, %s6759_s7  ;;  %834 = vrot.lane.b32.xlu0 %v7145_v23, %s6759_s7  ;;  %s6777_s7 = smov 54  }
 0x13b   : > { %v7342_v44 = vpop.permute.xlu1 %596  ;;  %v7344_v45 = vpop.permute.xlu0 %594 }
 0x13c   : > { %10714 = vst [vmem:[#allocation29_spill] sm:$0xff] %v7342_v44  ;;  %10715 = vst [vmem:[#allocation30_spill] sm:$0xff] %v7344_v45 }
 0x13d   : > { %904 = vrot.lane.b32.xlu1 %v7032_v2, %s6760_s10  ;;  %902 = vrot.lane.b32.xlu0 %v7027_v1, %s6760_s10 }
 0x13f   : > { %v601_v48 = vpop.permute.xlu1 %600  ;;  %v599_v49 = vpop.permute.xlu0 %598 }
 0x140   : > { %v629_v59 = vsel %vm614_vm1, %v599_v49, %v601_v48 }
 0x141   : > { %908 = vrot.lane.b32.xlu1 %v7035_v3, %s6760_s10  ;;  %906 = vrot.lane.b32.xlu0 %v7024_v0, %s6760_s10 }
 0x143   : > { %v7354_v54 = vpop.permute.xlu1 %604  ;;  %v7356_v55 = vpop.permute.xlu0 %602 }
 0x144   : > { %v630_v58 = vsel %vm614_vm1, %v601_v48, %v7356_v55 }
 0x145   : > { %912 = vrot.lane.b32.xlu1 %v7040_v4, %s6760_s10  ;;  %910 = vrot.lane.b32.xlu0 %v7046_v5, %s6760_s10 }
 0x146   : > { %4160 = vmatprep.subr.bf16.mxu1 %v630_v58 }
 0x147   : > { %4161 = vmatpush1.bf16.msra.mxu1 %v629_v59  ;;  %v7365_v25 = vpop.permute.xlu1 %608  ;;  %v7367_v27 = vpop.permute.xlu0 %606 }
 0x148   : > { %10716 = vst [vmem:[#allocation31_spill] sm:$0xff] %v7365_v25 }
 0x149   : > { %916 = vrot.lane.b32.xlu1 %v7064_v8, %s6760_s10  ;;  %914 = vrot.lane.b32.xlu0 %v7069_v9, %s6760_s10 }
 0x14b   : > { %v7373_v34 = vpop.permute.xlu1 %612  ;;  %v7375_v35 = vpop.permute.xlu0 %610 }
 0x14c   : > { %10717 = vst [vmem:[#allocation32_spill] sm:$0xff] %v7373_v34  ;;  %10718 = vst [vmem:[#allocation33_spill] sm:$0xff] %v7375_v35 }
 0x14d   : > { %920 = vrot.lane.b32.xlu1 %v7052_v6, %s6760_s10  ;;  %918 = vrot.lane.b32.xlu0 %v7057_v7, %s6760_s10 }
 0x14f   : > { %v681_v48 = vpop.permute.xlu1 %680  ;;  %v679_v49 = vpop.permute.xlu0 %678 }
 0x150   : > { %v727_v62 = vsel %vm10583_vm2, %v679_v49, %v681_v48 }
 0x151   : > { %924 = vrot.lane.b32.xlu1 %v7084_v12, %s6760_s10  ;;  %922 = vrot.lane.b32.xlu0 %v7087_v13, %s6760_s10 }
 0x153   : > { %v7385_v58 = vpop.permute.xlu1 %684  ;;  %v7387_v59 = vpop.permute.xlu0 %682 }
 0x154   : > { %v728_v44 = vsel %vm10583_vm2, %v681_v48, %v7387_v59 }
 0x155   : > { %928 = vrot.lane.b32.xlu1 %v7094_v14, %s6760_s10  ;;  %926 = vrot.lane.b32.xlu0 %v7097_v15, %s6760_s10 }
 0x156   : > { %4162 = vmatprep.subr.bf16.mxu1 %v728_v44 }
 0x157   : > { %4163 = vmatpush1.bf16.msra.mxu1 %v727_v62  ;;  %v7396_v52 = vpop.permute.xlu1 %688  ;;  %v7398_v42 = vpop.permute.xlu0 %686 }
 0x158   : > { %10719 = vst [vmem:[#allocation34_spill] sm:$0xff] %v7396_v52 }
 0x159   : > { %932 = vrot.lane.b32.xlu1 %v7104_v16, %s6760_s10  ;;  %930 = vrot.lane.b32.xlu0 %v7107_v17, %s6760_s10 }
 0x15b   : > { %v7404_v32 = vpop.permute.xlu1 %692  ;;  %v7406_v34 = vpop.permute.xlu0 %690 }
 0x15c   : > { %10720 = vst [vmem:[#allocation35_spill] sm:$0xff] %v7404_v32  ;;  %10721 = vst [vmem:[#allocation36_spill] sm:$0xff] %v7406_v34 }
 0x15d   : > { %936 = vrot.lane.b32.xlu1 %v7072_v10, %s6760_s10  ;;  %934 = vrot.lane.b32.xlu0 %v7075_v11, %s6760_s10 }
 0x15f   : > { %v697_v62 = vpop.permute.xlu1 %696  ;;  %v695_v44 = vpop.permute.xlu0 %694 }
 0x160   : > { %v734_v52 = vsel %vm10583_vm2, %v695_v44, %v697_v62 }
 0x161   : > { %940 = vrot.lane.b32.xlu1 %v7120_v18, %s6760_s10  ;;  %938 = vrot.lane.b32.xlu0 %v7125_v19, %s6760_s10 }
 0x163   : > { %v7416_v48 = vpop.permute.xlu1 %700  ;;  %v7418_v49 = vpop.permute.xlu0 %698 }
 0x164   : > { %v735_v32 = vsel %vm10583_vm2, %v697_v62, %v7418_v49 }
 0x165   : > { %944 = vrot.lane.b32.xlu1 %v7130_v20, %s6760_s10  ;;  %942 = vrot.lane.b32.xlu0 %v7135_v21, %s6760_s10 }
 0x166   : > { %4164 = vmatprep.subr.bf16.mxu1 %v735_v32 }
 0x167   : > { %4165 = vmatpush1.bf16.msra.mxu1 %v734_v52  ;;  %v7427_v34 = vpop.permute.xlu1 %704  ;;  %v7429_v25 = vpop.permute.xlu0 %702 }
 0x168   : > { %10722 = vst [vmem:[#allocation37_spill] sm:$0xff] %v7427_v34 }
 0x169   : > { %948 = vrot.lane.b32.xlu1 %v7140_v22, %s6760_s10  ;;  %946 = vrot.lane.b32.xlu0 %v7145_v23, %s6760_s10  ;;  %s6778_s10 = smov 46  }
 0x16b   : > { %v7435_v35 = vpop.permute.xlu1 %708  ;;  %v7437_v38 = vpop.permute.xlu0 %706 }
 0x16c   : > { %10723 = vst [vmem:[#allocation38_spill] sm:$0xff] %v7435_v35  ;;  %10724 = vst [vmem:[#allocation39_spill] sm:$0xff] %v7437_v38 }
 0x16d   : > { %1016 = vrot.lane.b32.xlu1 %v7032_v2, %s6761_s20  ;;  %1014 = vrot.lane.b32.xlu0 %v7027_v1, %s6761_s20 }
 0x16f   : > { %v713_v32 = vpop.permute.xlu1 %712  ;;  %v711_v52 = vpop.permute.xlu0 %710 }
 0x170   : > { %v741_v34 = vsel %vm10583_vm2, %v711_v52, %v713_v32 }
 0x171   : > { %1020 = vrot.lane.b32.xlu1 %v7035_v3, %s6761_s20  ;;  %1018 = vrot.lane.b32.xlu0 %v7024_v0, %s6761_s20 }
 0x173   : > { %v7447_v62 = vpop.permute.xlu1 %716  ;;  %v7449_v44 = vpop.permute.xlu0 %714 }
 0x174   : > { %v742_v35 = vsel %vm10583_vm2, %v713_v32, %v7449_v44 }
 0x175   : > { %1024 = vrot.lane.b32.xlu1 %v7040_v4, %s6761_s20  ;;  %1022 = vrot.lane.b32.xlu0 %v7046_v5, %s6761_s20 }
 0x176   : > { %4166 = vmatprep.subr.bf16.mxu1 %v742_v35 }
 0x177   : > { %4167 = vmatpush1.bf16.msra.mxu1 %v741_v34  ;;  %v7458_v38 = vpop.permute.xlu1 %720  ;;  %v7460_v45 = vpop.permute.xlu0 %718 }
 0x178   : > { %10725 = vst [vmem:[#allocation40_spill] sm:$0xff] %v7458_v38 }
 0x179   : > { %1028 = vrot.lane.b32.xlu1 %v7064_v8, %s6761_s20  ;;  %1026 = vrot.lane.b32.xlu0 %v7069_v9, %s6761_s20 }
 0x17b   : > { %v7466_v60 = vpop.permute.xlu1 %724  ;;  %v7468_v63 = vpop.permute.xlu0 %722 }
 0x17c   : > { %10726 = vst [vmem:[#allocation41_spill] sm:$0xff] %v7466_v60  ;;  %10727 = vst [vmem:[#allocation42_spill] sm:$0xff] %v7468_v63 }
 0x17d   : > { %1032 = vrot.lane.b32.xlu1 %v7052_v6, %s6761_s20  ;;  %1030 = vrot.lane.b32.xlu0 %v7057_v7, %s6761_s20 }
 0x17f   : > { %v793_v34 = vpop.permute.xlu1 %792  ;;  %v791_v35 = vpop.permute.xlu0 %790 }
 0x180   : > { %v839_v38 = vsel %vm838_vm3, %v791_v35, %v793_v34 }
 0x181   : > { %1036 = vrot.lane.b32.xlu1 %v7084_v12, %s6761_s20  ;;  %1034 = vrot.lane.b32.xlu0 %v7087_v13, %s6761_s20 }
 0x183   : > { %v7478_v32 = vpop.permute.xlu1 %796  ;;  %v7480_v52 = vpop.permute.xlu0 %794 }
 0x184   : > { %v840_v60 = vsel %vm838_vm3, %v793_v34, %v7480_v52 }
 0x185   : > { %1040 = vrot.lane.b32.xlu1 %v7094_v14, %s6761_s20  ;;  %1038 = vrot.lane.b32.xlu0 %v7097_v15, %s6761_s20 }
 0x186   : > { %4168 = vmatprep.subr.bf16.mxu1 %v840_v60 }
 0x187   : > { %4169 = vmatpush1.bf16.msra.mxu1 %v839_v38  ;;  %v7489_v63 = vpop.permute.xlu1 %800  ;;  %v7491_v50 = vpop.permute.xlu0 %798 }
 0x188   : > { %10728 = vst [vmem:[#allocation43_spill] sm:$0xff] %v7489_v63 }
 0x189   : > { %1044 = vrot.lane.b32.xlu1 %v7104_v16, %s6761_s20  ;;  %1042 = vrot.lane.b32.xlu0 %v7107_v17, %s6761_s20 }
 0x18b   : > { %v7497_v53 = vpop.permute.xlu1 %804  ;;  %v7499_v40 = vpop.permute.xlu0 %802 }
 0x18c   : > { %10729 = vst [vmem:[#allocation44_spill] sm:$0xff] %v7497_v53  ;;  %10730 = vst [vmem:[#allocation45_spill] sm:$0xff] %v7499_v40 }
 0x18d   : > { %1048 = vrot.lane.b32.xlu1 %v7072_v10, %s6761_s20  ;;  %1046 = vrot.lane.b32.xlu0 %v7075_v11, %s6761_s20 }
 0x18f   : > { %v809_v60 = vpop.permute.xlu1 %808  ;;  %v807_v38 = vpop.permute.xlu0 %806 }
 0x190   : > { %v846_v63 = vsel %vm838_vm3, %v807_v38, %v809_v60 }
 0x191   : > { %1052 = vrot.lane.b32.xlu1 %v7120_v18, %s6761_s20  ;;  %1050 = vrot.lane.b32.xlu0 %v7125_v19, %s6761_s20 }
 0x193   : > { %v7509_v34 = vpop.permute.xlu1 %812  ;;  %v7511_v35 = vpop.permute.xlu0 %810 }
 0x194   : > { %10731 = vst [vmem:[#allocation46_spill] sm:$0xff] %v7511_v35  ;;  %v847_v53 = vsel %vm838_vm3, %v809_v60, %v7511_v35 }
 0x195   : > { %1056 = vrot.lane.b32.xlu1 %v7130_v20, %s6761_s20  ;;  %1054 = vrot.lane.b32.xlu0 %v7135_v21, %s6761_s20 }
 0x196   : > { %4170 = vmatprep.subr.bf16.mxu1 %v847_v53 }
 0x197   : > { %4171 = vmatpush1.bf16.msra.mxu1 %v846_v63  ;;  %v7520_v40 = vpop.permute.xlu1 %816  ;;  %v7522_v43 = vpop.permute.xlu0 %814 }
 0x198   : > { %10732 = vst [vmem:[#allocation47_spill] sm:$0xff] %v7520_v40 }
 0x199   : > { %1060 = vrot.lane.b32.xlu1 %v7140_v22, %s6761_s20  ;;  %1058 = vrot.lane.b32.xlu0 %v7145_v23, %s6761_s20  ;;  %s6779_s20 = smov 45  }
 0x19b   : > { %v7528_v30 = vpop.permute.xlu1 %820  ;;  %v7530_v33 = vpop.permute.xlu0 %818 }
 0x19c   : > { %10733 = vst [vmem:[#allocation48_spill] sm:$0xff] %v7528_v30  ;;  %10734 = vst [vmem:[#allocation49_spill] sm:$0xff] %v7530_v33 }
 0x19d   : > { %1128 = vrot.lane.b32.xlu1 %v7032_v2, %s6762_s22  ;;  %1126 = vrot.lane.b32.xlu0 %v7027_v1, %s6762_s22 }
 0x19f   : > { %v825_v53 = vpop.permute.xlu1 %824  ;;  %v823_v63 = vpop.permute.xlu0 %822 }
 0x1a0   : > { %v853_v40 = vsel %vm838_vm3, %v823_v63, %v825_v53 }
 0x1a1   : > { %1132 = vrot.lane.b32.xlu1 %v7035_v3, %s6762_s22  ;;  %1130 = vrot.lane.b32.xlu0 %v7024_v0, %s6762_s22 }
 0x1a3   : > { %v7540_v60 = vpop.permute.xlu1 %828  ;;  %v7542_v38 = vpop.permute.xlu0 %826 }
 0x1a4   : > { %10735 = vst [vmem:[#allocation50_spill] sm:$0xff] %v7540_v60  ;;  %10736 = vst [vmem:[#allocation51_spill] sm:$0xff] %v7542_v38  ;;  %v854_v30 = vsel %vm838_vm3, %v825_v53, %v7542_v38 }
 0x1a5   : > { %1136 = vrot.lane.b32.xlu1 %v7040_v4, %s6762_s22  ;;  %1134 = vrot.lane.b32.xlu0 %v7046_v5, %s6762_s22 }
 0x1a6   : > { %4172 = vmatprep.subr.bf16.mxu1 %v854_v30 }
 0x1a7   : > { %4173 = vmatpush1.bf16.msra.mxu1 %v853_v40  ;;  %v7551_v33 = vpop.permute.xlu1 %832  ;;  %v7553_v35 = vpop.permute.xlu0 %830 }
 0x1a8   : > { %10737 = vst [vmem:[#allocation52_spill] sm:$0xff] %v7551_v33  ;;  %10738 = vst [vmem:[#allocation53_spill] sm:$0xff] %v7553_v35 }
 0x1a9   : > { %1140 = vrot.lane.b32.xlu1 %v7064_v8, %s6762_s22  ;;  %1138 = vrot.lane.b32.xlu0 %v7069_v9, %s6762_s22 }
 0x1ab   : > { %v7559_v60 = vpop.permute.xlu1 %836  ;;  %v7561_v38 = vpop.permute.xlu0 %834 }
 0x1ac   : > { %10739 = vst [vmem:[#allocation54_spill] sm:$0xff] %v7559_v60  ;;  %10740 = vst [vmem:[#allocation55_spill] sm:$0xff] %v7561_v38 }
 0x1ad   : > { %1144 = vrot.lane.b32.xlu1 %v7052_v6, %s6762_s22  ;;  %1142 = vrot.lane.b32.xlu0 %v7057_v7, %s6762_s22 }
 0x1af   : > { %v905_v30 = vpop.permute.xlu1 %904  ;;  %v903_v40 = vpop.permute.xlu0 %902 }
 0x1b0   : > { %v951_v33 = vsel %vm10584_vm4, %v903_v40, %v905_v30 }
 0x1b1   : > { %1148 = vrot.lane.b32.xlu1 %v7084_v12, %s6762_s22  ;;  %1146 = vrot.lane.b32.xlu0 %v7087_v13, %s6762_s22 }
 0x1b3   : > { %v7571_v53 = vpop.permute.xlu1 %908  ;;  %v7573_v63 = vpop.permute.xlu0 %906 }
 0x1b4   : > { %10741 = vst [vmem:[#allocation56_spill] sm:$0xff] %v7571_v53  ;;  %10742 = vst [vmem:[#allocation57_spill] sm:$0xff] %v7573_v63  ;;  %v952_v60 = vsel %vm10584_vm4, %v905_v30, %v7573_v63 }
 0x1b5   : > { %1152 = vrot.lane.b32.xlu1 %v7094_v14, %s6762_s22  ;;  %1150 = vrot.lane.b32.xlu0 %v7097_v15, %s6762_s22 }
 0x1b6   : > { %4174 = vmatprep.subr.bf16.mxu1 %v952_v60 }
 0x1b7   : > { %4175 = vmatpush1.bf16.msra.mxu1 %v951_v33  ;;  %v7582_v38 = vpop.permute.xlu1 %912  ;;  %v7584_v35 = vpop.permute.xlu0 %910 }
 0x1b8   : > { %10743 = vst [vmem:[#allocation58_spill] sm:$0xff] %v7582_v38  ;;  %10744 = vst [vmem:[#allocation59_spill] sm:$0xff] %v7584_v35 }
 0x1b9   : > { %1156 = vrot.lane.b32.xlu1 %v7104_v16, %s6762_s22  ;;  %1154 = vrot.lane.b32.xlu0 %v7107_v17, %s6762_s22 }
 0x1bb   : > { %v7590_v53 = vpop.permute.xlu1 %916  ;;  %v7592_v63 = vpop.permute.xlu0 %914 }
 0x1bc   : > { %10745 = vst [vmem:[#allocation60_spill] sm:$0xff] %v7590_v53  ;;  %10746 = vst [vmem:[#allocation61_spill] sm:$0xff] %v7592_v63 }
 0x1bd   : > { %1160 = vrot.lane.b32.xlu1 %v7072_v10, %s6762_s22  ;;  %1158 = vrot.lane.b32.xlu0 %v7075_v11, %s6762_s22 }
 0x1bf   : > { %v921_v33 = vpop.permute.xlu1 %920  ;;  %v919_v60 = vpop.permute.xlu0 %918 }
 0x1c0   : > { %v958_v38 = vsel %vm10584_vm4, %v919_v60, %v921_v33 }
 0x1c1   : > { %1164 = vrot.lane.b32.xlu1 %v7120_v18, %s6762_s22  ;;  %1162 = vrot.lane.b32.xlu0 %v7125_v19, %s6762_s22 }
 0x1c3   : > { %v7602_v30 = vpop.permute.xlu1 %924  ;;  %v7604_v40 = vpop.permute.xlu0 %922 }
 0x1c4   : > { %10747 = vst [vmem:[#allocation62_spill] sm:$0xff] %v7602_v30  ;;  %10748 = vst [vmem:[#allocation63_spill] sm:$0xff] %v7604_v40  ;;  %v959_v53 = vsel %vm10584_vm4, %v921_v33, %v7604_v40 }
 0x1c5   : > { %1168 = vrot.lane.b32.xlu1 %v7130_v20, %s6762_s22  ;;  %1166 = vrot.lane.b32.xlu0 %v7135_v21, %s6762_s22 }
 0x1c6   : > { %4207 = vmatprep.subr.bf16.mxu0 %v959_v53 }
 0x1c7   : > { %4208 = vmatpush1.bf16.msra.mxu0 %v958_v38  ;;  %v7613_v63 = vpop.permute.xlu1 %928  ;;  %v7615_v35 = vpop.permute.xlu0 %926 }
 0x1c8   : > { %10749 = vst [vmem:[#allocation64_spill] sm:$0xff] %v7613_v63  ;;  %10750 = vst [vmem:[#allocation65_spill] sm:$0xff] %v7615_v35 }
 0x1c9   : > { %1172 = vrot.lane.b32.xlu1 %v7140_v22, %s6762_s22  ;;  %1170 = vrot.lane.b32.xlu0 %v7145_v23, %s6762_s22  ;;  %s6780_s22 = smov 44  }
 0x1cb   : > { %v7621_v30 = vpop.permute.xlu1 %932  ;;  %v7623_v40 = vpop.permute.xlu0 %930 }
 0x1cc   : > { %10751 = vst [vmem:[#allocation66_spill] sm:$0xff] %v7621_v30  ;;  %10752 = vst [vmem:[#allocation67_spill] sm:$0xff] %v7623_v40 }
 0x1cd   : > { %1240 = vrot.lane.b32.xlu1 %v7032_v2, %s6763_s26  ;;  %1238 = vrot.lane.b32.xlu0 %v7027_v1, %s6763_s26 }
 0x1cf   : > { %v937_v38 = vpop.permute.xlu1 %936  ;;  %v935_v53 = vpop.permute.xlu0 %934 }
 0x1d0   : > { %v965_v63 = vsel %vm10584_vm4, %v935_v53, %v937_v38 }
 0x1d1   : > { %1244 = vrot.lane.b32.xlu1 %v7035_v3, %s6763_s26  ;;  %1242 = vrot.lane.b32.xlu0 %v7024_v0, %s6763_s26 }
 0x1d3   : > { %v7633_v33 = vpop.permute.xlu1 %940  ;;  %v7635_v60 = vpop.permute.xlu0 %938 }
 0x1d4   : > { %10753 = vst [vmem:[#allocation68_spill] sm:$0xff] %v7633_v33  ;;  %10754 = vst [vmem:[#allocation69_spill] sm:$0xff] %v7635_v60  ;;  %v966_v30 = vsel %vm10584_vm4, %v937_v38, %v7635_v60 }
 0x1d5   : > { %1248 = vrot.lane.b32.xlu1 %v7040_v4, %s6763_s26  ;;  %1246 = vrot.lane.b32.xlu0 %v7046_v5, %s6763_s26 }
 0x1d6   : > { %4209 = vmatprep.subr.bf16.mxu0 %v966_v30 }
 0x1d7   : > { %4210 = vmatpush1.bf16.msra.mxu0 %v965_v63  ;;  %v7644_v40 = vpop.permute.xlu1 %944  ;;  %v7646_v35 = vpop.permute.xlu0 %942 }
 0x1d8   : > { %10755 = vst [vmem:[#allocation70_spill] sm:$0xff] %v7644_v40 }
 0x1d9   : > { %1252 = vrot.lane.b32.xlu1 %v7064_v8, %s6763_s26  ;;  %1250 = vrot.lane.b32.xlu0 %v7069_v9, %s6763_s26 }
 0x1db   : > { %v7652_v33 = vpop.permute.xlu1 %948  ;;  %v7654_v60 = vpop.permute.xlu0 %946 }
 0x1dc   : > { %10756 = vst [vmem:[#allocation71_spill] sm:$0xff] %v7652_v33  ;;  %10757 = vst [vmem:[#allocation72_spill] sm:$0xff] %v7654_v60  ;;  %v7826_v60 = vld [vmem:[#allocation3] ss:$44 sps:$4 sm:$0xff]  }
 0x1dd   : > { %1256 = vrot.lane.b32.xlu1 %v7052_v6, %s6763_s26  ;;  %1254 = vrot.lane.b32.xlu0 %v7057_v7, %s6763_s26 }
 0x1df   : > { %v1017_v63 = vpop.permute.xlu1 %1016  ;;  %v1015_v30 = vpop.permute.xlu0 %1014 }
 0x1e1   : > { %1260 = vrot.lane.b32.xlu1 %v7084_v12, %s6763_s26  ;;  %1258 = vrot.lane.b32.xlu0 %v7087_v13, %s6763_s26  ;;  %v1063_v12 = vsel %vm10585_vm5, %v1015_v30, %v1017_v63 }
 0x1e3   : > { %v7664_v8 = vpop.permute.xlu1 %1020  ;;  %v7666_v9 = vpop.permute.xlu0 %1018 }
 0x1e4   : > { %v1064_v38 = vsel %vm10585_vm5, %v1017_v63, %v7666_v9 }
 0x1e5   : > { %1264 = vrot.lane.b32.xlu1 %v7094_v14, %s6763_s26  ;;  %1262 = vrot.lane.b32.xlu0 %v7097_v15, %s6763_s26 }
 0x1e6   : > { %4211 = vmatprep.subr.bf16.mxu0 %v1064_v38 }
 0x1e7   : > { %4212 = vmatpush1.bf16.msra.mxu0 %v1063_v12  ;;  %v7675_v53 = vpop.permute.xlu1 %1024  ;;  %v7677_v33 = vpop.permute.xlu0 %1022 }
 0x1e8   : > { %10758 = vst [vmem:[#allocation73_spill] sm:$0xff] %v7675_v53 }
 0x1e9   : > { %1268 = vrot.lane.b32.xlu1 %v7104_v16, %s6763_s26  ;;  %1266 = vrot.lane.b32.xlu0 %v7107_v17, %s6763_s26 }
 0x1eb   : > { %v7683_v14 = vpop.permute.xlu1 %1028  ;;  %v7685_v40 = vpop.permute.xlu0 %1026 }
 0x1ec   : > { %10759 = vst [vmem:[#allocation74_spill] sm:$0xff] %v7683_v14  ;;  %10760 = vst [vmem:[#allocation75_spill] sm:$0xff] %v7685_v40 }
 0x1ed   : > { %1272 = vrot.lane.b32.xlu1 %v7072_v10, %s6763_s26  ;;  %1270 = vrot.lane.b32.xlu0 %v7075_v11, %s6763_s26 }
 0x1ef   : > { %v1033_v15 = vpop.permute.xlu1 %1032  ;;  %v1031_v63 = vpop.permute.xlu0 %1030 }
 0x1f0   : > { %v1070_v38 = vsel %vm10585_vm5, %v1031_v63, %v1033_v15 }
 0x1f1   : > { %1276 = vrot.lane.b32.xlu1 %v7120_v18, %s6763_s26  ;;  %1274 = vrot.lane.b32.xlu0 %v7125_v19, %s6763_s26 }
 0x1f3   : > { %v7695_v16 = vpop.permute.xlu1 %1036  ;;  %v7697_v17 = vpop.permute.xlu0 %1034 }
 0x1f4   : > { %v1071_v30 = vsel %vm10585_vm5, %v1033_v15, %v7697_v17 }
 0x1f5   : > { %1280 = vrot.lane.b32.xlu1 %v7130_v20, %s6763_s26  ;;  %1278 = vrot.lane.b32.xlu0 %v7135_v21, %s6763_s26 }
 0x1f6   : > { %4213 = vmatprep.subr.bf16.mxu0 %v1071_v30 }
 0x1f7   : > { %4214 = vmatpush1.bf16.msra.mxu0 %v1070_v38  ;;  %v7706_v12 = vpop.permute.xlu1 %1040  ;;  %v7708_v14 = vpop.permute.xlu0 %1038 }
 0x1f8   : > { %10761 = vst [vmem:[#allocation76_spill] sm:$0xff] %v7706_v12 }
 0x1f9   : > { %1284 = vrot.lane.b32.xlu1 %v7140_v22, %s6763_s26  ;;  %1282 = vrot.lane.b32.xlu0 %v7145_v23, %s6763_s26  ;;  %s10624_s26 = smov 36  }
 0x1fb   : > { %v7714_v20 = vpop.permute.xlu1 %1044  ;;  %v7716_v53 = vpop.permute.xlu0 %1042 }
 0x1fc   : > { %10762 = vst [vmem:[#allocation77_spill] sm:$0xff] %v7714_v20  ;;  %10763 = vst [vmem:[#allocation78_spill] sm:$0xff] %v7716_v53  ;;  %v7784_v20 = vld [vmem:[%s7017_s25] ss:$28 sps:$4 sm:$0xff]  }
 0x1fd   : > { %1352 = vrot.lane.b32.xlu1 %v7032_v2, %s6764_s11  ;;  %1350 = vrot.lane.b32.xlu0 %v7027_v1, %s6764_s11  ;;  %v7822_v53 = vld [vmem:[#allocation3 + $0x4] ss:$44 sps:$4 sm:$0xff]  }
 0x1fe   : > { %4176 = vmatprep.mubr.bf16.mxu1 %v7822_v53 }
 0x1ff   : > { %v1049_v21 = vpop.permute.xlu1 %1048  ;;  %v1047_v15 = vpop.permute.xlu0 %1046  ;;  %4177 = vmatmul.mubr.bf16.vlgmr.msra.gmra.mrb[0].mxu1 %v7826_v60 }
 0x200   : > { %v1077_v1 = vsel %vm10585_vm5, %v1047_v15, %v1049_v21 }
 0x201   : > { %1356 = vrot.lane.b32.xlu1 %v7035_v3, %s6764_s11  ;;  %1354 = vrot.lane.b32.xlu0 %v7024_v0, %s6764_s11 }
 0x203   : > { %v7726_v22 = vpop.permute.xlu1 %1052  ;;  %v7728_v23 = vpop.permute.xlu0 %1050 }
 0x204   : > { %10764 = vst [vmem:[#allocation79_spill] sm:$0xff] %v7726_v22  ;;  %10765 = vst [vmem:[#allocation80_spill] sm:$0xff] %v7728_v23  ;;  %v1078_v2 = vsel %vm10585_vm5, %v1049_v21, %v7728_v23  ;;  %v7762_v21 = vld [vmem:[%s7017_s25 + $0x8] ss:$28 sps:$4 sm:$0xff]  }
 0x205   : > { %1360 = vrot.lane.b32.xlu1 %v7040_v4, %s6764_s11  ;;  %1358 = vrot.lane.b32.xlu0 %v7046_v5, %s6764_s11  ;;  %v7872_v23 = vld [vmem:[#allocation3 + $0xb0] ss:$44 sps:$4 sm:$0xff]  }
 0x206   : > { %4215 = vmatprep.subr.bf16.mxu0 %v1078_v2  ;;  %v6410_v2 = vld [vmem:[#allocation3 + $0xc] ss:$44 sps:$4 sm:$0xff]   ;;  %10785 = vst [vmem:[#allocation100_spill] sm:$0xff] %v7872_v23 }
 0x207   : > { %4216 = vmatpush1.bf16.msra.mxu0 %v1077_v1  ;;  %v7737_v3 = vpop.permute.xlu1 %1056  ;;  %v7739_v0 = vpop.permute.xlu0 %1054  ;;  %4239 = vmatprep.mubr.bf16.mxu0 %v6410_v2 }
 0x208   : > { %10766 = vst [vmem:[#allocation81_spill] sm:$0xff] %v7737_v3  ;;  %v7815_v3 = vld [vmem:[%s7017_s25 + $0x70] ss:$28 sps:$4 sm:$0xff]  }
 0x209   : > { %1370 = vrot.lane.b32.xlu1 %v7087_v13, %s6764_s11  ;;  %1368 = vrot.lane.b32.xlu0 %v7052_v6, %s6764_s11 }
 0x20b   : > { %v7745_v4 = vpop.permute.xlu1 %1060  ;;  %v7747_v63 = vpop.permute.xlu0 %1058 }
 0x20c   : > { %10767 = vst [vmem:[#allocation82_spill] sm:$0xff] %v7745_v4  ;;  %10768 = vst [vmem:[#allocation83_spill] sm:$0xff] %v7747_v63  ;;  %v7779_v4 = vld [vmem:[%s7017_s25 + $0x3c] ss:$28 sps:$4 sm:$0xff]  }
 0x20d   : > { %1384 = vrot.lane.b32.xlu1 %v7072_v10, %s6764_s11  ;;  %1366 = vrot.lane.b32.xlu0 %v7057_v7, %s6764_s11  ;;  %v7769_v10 = vld [vmem:[%s7017_s25 + $0x4] ss:$28 sps:$4 sm:$0xff]  }
 0x20f   : > { %v1129_v5 = vpop.permute.xlu1 %1128  ;;  %v1127_v30 = vpop.permute.xlu0 %1126 }
 0x211   : > { %1382 = vrot.lane.b32.xlu1 %v7075_v11, %s6764_s11  ;;  %1386 = vrot.lane.b32.xlu0 %v7125_v19, %s6764_s11  ;;  %v1175_v11 = vsel %vm10587_vm6, %v1127_v30, %v1129_v5 }
 0x213   : > { %v7757_v6 = vpop.permute.xlu1 %1132  ;;  %v7759_v38 = vpop.permute.xlu0 %1130 }
 0x214   : > { %10769 = vst [vmem:[#allocation84_spill] sm:$0xff] %v7757_v6  ;;  %10770 = vst [vmem:[#allocation85_spill] sm:$0xff] %v7759_v38  ;;  %v1176_v7 = vsel %vm10587_vm6, %v1129_v5, %v7759_v38 }
 0x215   : > { %1466 = vrot.lane.b32.xlu1 %v7762_v21, %s6765_s21  ;;  %1464 = vrot.lane.b32.xlu0 %v7769_v10, %s6765_s21 }
 0x216   : > { %4217 = vmatprep.subr.bf16.mxu0 %v1176_v7  ;;  %v7793_v7 = vld [vmem:[%s7017_s25 + $0x38] ss:$28 sps:$4 sm:$0xff]  }
 0x217   : > { %4218 = vmatpush1.bf16.msra.mxu0 %v1175_v11  ;;  %v7774_v15 = vpop.permute.xlu1 %1136  ;;  %v7776_v1 = vpop.permute.xlu0 %1134 }
 0x218   : > { %10771 = vst [vmem:[#allocation86_spill] sm:$0xff] %v7774_v15  ;;  %10772 = vst [vmem:[#allocation87_spill] sm:$0xff] %v7776_v1  ;;  %v7802_v15 = vld [vmem:[%s7017_s25 + $0x74] ss:$28 sps:$4 sm:$0xff]  }
 0x219   : > { %1480 = vrot.lane.b32.xlu1 %v7779_v4, %s6765_s21  ;;  %1462 = vrot.lane.b32.xlu0 %v7784_v20, %s6765_s21  ;;  %v7868_v1 = vld [vmem:[#allocation3 + $0xb4] ss:$44 sps:$4 sm:$0xff]  }
 0x21b   : > { %v7788_v5 = vpop.permute.xlu1 %1140  ;;  %v7790_v30 = vpop.permute.xlu0 %1138 }
 0x21c   : > { %10773 = vst [vmem:[#allocation88_spill] sm:$0xff] %v7788_v5  ;;  %10774 = vst [vmem:[#allocation89_spill] sm:$0xff] %v7790_v30 }
 0x21d   : > { %1478 = vrot.lane.b32.xlu1 %v7793_v7, %s6765_s21  ;;  %1482 = vrot.lane.b32.xlu0 %v7087_v13, %s6765_s21 }
 0x21f   : > { %v1145_v11 = vpop.permute.xlu1 %1144  ;;  %v1143_v2 = vpop.permute.xlu0 %1142 }
 0x220   : > { %v1182_v63 = vsel %vm10587_vm6, %v1143_v2, %v1145_v11  ;;  %v7839_v2 = vld [vmem:[%s7017_s25 + $0x40] ss:$28 sps:$4 sm:$0xff]  }
 0x221   : > { %1498 = vrot.lane.b32.xlu1 %v7125_v19, %s6765_s21  ;;  %1496 = vrot.lane.b32.xlu0 %v7802_v15, %s6765_s21 }
 0x223   : > { %v7806_v5 = vpop.permute.xlu1 %1148  ;;  %v7808_v30 = vpop.permute.xlu0 %1146 }
 0x224   : > { %10775 = vst [vmem:[#allocation90_spill] sm:$0xff] %v7806_v5  ;;  %10776 = vst [vmem:[#allocation91_spill] sm:$0xff] %v7808_v30  ;;  %v1183_v13 = vsel %vm10587_vm6, %v1145_v11, %v7808_v30  ;;  %v7847_v5 = vld [vmem:[#allocation3 + $0x58] ss:$44 sps:$4 sm:$0xff]  }
 0x225   : > { %1576 = vrot.lane.b32.xlu1 %v7769_v10, %s10588_s16  ;;  %1494 = vrot.lane.b32.xlu0 %v7815_v3, %s6765_s21 }
 0x226   : > { %4219 = vmatprep.subr.bf16.mxu0 %v1183_v13 }
 0x227   : > { %4220 = vmatpush1.bf16.msra.mxu0 %v1182_v63  ;;  %v7820_v12 = vpop.permute.xlu1 %1152  ;;  %v7824_v40 = vpop.permute.xlu0 %1150 }
 0x228   : > { %10777 = vst [vmem:[#allocation92_spill] sm:$0xff] %v7820_v12  ;;  %10778 = vst [vmem:[#allocation93_spill] sm:$0xff] %v7824_v40  ;;  %v7845_v12 = vld [vmem:[#allocation3 + $0x5c] ss:$44 sps:$4 sm:$0xff]  }
 0x229   : > { %1574 = vrot.lane.b32.xlu1 %v7784_v20, %s10588_s16  ;;  %1578 = vrot.lane.b32.xlu0 %v7762_v21, %s10588_s16 }
 0x22a   : > { %4186 = vmatprep.mubr.bf16.mxu1 %v7845_v12 }
 0x22b   : > { %v7834_v11 = vpop.permute.xlu1 %1156  ;;  %v7836_v63 = vpop.permute.xlu0 %1154  ;;  %4187 = vmatmul.mubr.bf16.gmra.mrb[4].mxu1 %v7847_v5 }
 0x22c   : > { %10779 = vst [vmem:[#allocation94_spill] sm:$0xff] %v7834_v11  ;;  %10780 = vst [vmem:[#allocation95_spill] sm:$0xff] %v7836_v63  ;;  %4196 = vmatprep.mubr.bf16.mxu1 %v7868_v1 }
 0x22d   : > { %1594 = vrot.lane.b32.xlu1 %v7839_v2, %s10588_s16  ;;  %1592 = vrot.lane.b32.xlu0 %v7779_v4, %s10588_s16 }
 0x22f   : > { %v1161_v13 = vpop.permute.xlu1 %1160  ;;  %v1159_v30 = vpop.permute.xlu0 %1158 }
 0x230   : > { %v1189_v38 = vsel %vm10587_vm6, %v1159_v30, %v1161_v13 }
 0x231   : > { %1608 = vrot.lane.b32.xlu1 %v7802_v15, %s10588_s16  ;;  %1590 = vrot.lane.b32.xlu0 %v7793_v7, %s10588_s16 }
 0x233   : > { %v7855_v11 = vpop.permute.xlu1 %1164  ;;  %v7857_v63 = vpop.permute.xlu0 %1162  ;;  %4197 = vmatmul.mubr.bf16.gmra.mrb[8].mxu1 %v7872_v23  ;;  %v6423_v23 = vld [vmem:[#allocation3 + $0x64] ss:$44 sps:$4 sm:$0xff]  }
 0x234   : > { %10781 = vst [vmem:[#allocation96_spill] sm:$0xff] %v7855_v11  ;;  %10782 = vst [vmem:[#allocation97_spill] sm:$0xff] %v7857_v63  ;;  %v1190_v40 = vsel %vm10587_vm6, %v1161_v13, %v7857_v63 }
 0x235   : > { %1606 = vrot.lane.b32.xlu1 %v7815_v3, %s10588_s16  ;;  %1610 = vrot.lane.b32.xlu0 %v7125_v19, %s10588_s16 }
 0x236   : > { %4221 = vmatprep.subr.bf16.mxu0 %v1190_v40 }
 0x237   : > { %4222 = vmatpush1.bf16.msra.mxu0 %v1189_v38  ;;  %v7866_v6 = vpop.permute.xlu1 %1168  ;;  %v7870_v11 = vpop.permute.xlu0 %1166 }
 0x238   : > { %10783 = vst [vmem:[#allocation98_spill] sm:$0xff] %v7866_v6  ;;  %10784 = vst [vmem:[#allocation99_spill] sm:$0xff] %v7870_v11  ;;  %v10546_v6 = vmov 0  }
 0x239   : > { %1690 = vrot.lane.b32.xlu1 %v7762_v21, %s6767_s18  ;;  %1688 = vrot.lane.b32.xlu0 %v7769_v10, %s6767_s18 }
 0x23a   : > { %4491 = vmatprep.mubr.bf16.mxu1 %v10546_v6 }
 0x23b   : > { %v7880_v40 = vpop.permute.xlu1 %1172  ;;  %v7882_v38 = vpop.permute.xlu0 %1170 }
 0x23c   : > { %10786 = vst [vmem:[#allocation101_spill] sm:$0xff] %v7880_v40  ;;  %10787 = vst [vmem:[#allocation102_spill] sm:$0xff] %v7882_v38 }
 0x23d   : > { %1704 = vrot.lane.b32.xlu1 %v7779_v4, %s6767_s18  ;;  %1686 = vrot.lane.b32.xlu0 %v7784_v20, %s6767_s18 }
 0x23f   : > { %v1241_v30 = vpop.permute.xlu1 %1240  ;;  %v1239_v13 = vpop.permute.xlu0 %1238 }
 0x240   : > { %v1287_v6 = vsel %vm10586_vm7, %v1239_v13, %v1241_v30 }
 0x241   : > { %1702 = vrot.lane.b32.xlu1 %v7793_v7, %s6767_s18  ;;  %1706 = vrot.lane.b32.xlu0 %v7839_v2, %s6767_s18 }
 0x243   : > { %v7893_v40 = vpop.permute.xlu1 %1244  ;;  %v7895_v38 = vpop.permute.xlu0 %1242 }
 0x244   : > { %10788 = vst [vmem:[#allocation103_spill] sm:$0xff] %v7893_v40  ;;  %10789 = vst [vmem:[#allocation104_spill] sm:$0xff] %v7895_v38  ;;  %v1288_v63 = vsel %vm10586_vm7, %v1241_v30, %v7895_v38 }
 0x245   : > { %3290 = vrot.lane.b32.xlu1 %v7120_v18, %s6769_s27  ;;  %3288 = vrot.lane.b32.xlu0 %v7125_v19, %s6769_s27  ;;  %v7919_v19 = vld [vmem:[%s7017_s25 + $0x78] ss:$28 sps:$4 sm:$0xff]  }
 0x246   : > { %4223 = vmatprep.subr.bf16.mxu0 %v1288_v63 }
 0x247   : > { %4224 = vmatpush1.bf16.msra.mxu0 %v1287_v6  ;;  %v7904_v11 = vpop.permute.xlu1 %1248  ;;  %v7906_v40 = vpop.permute.xlu0 %1246 }
 0x248   : > { %10790 = vst [vmem:[#allocation105_spill] sm:$0xff] %v7904_v11  ;;  %10791 = vst [vmem:[#allocation106_spill] sm:$0xff] %v7906_v40 }
 0x249   : > { %1720 = vrot.lane.b32.xlu1 %v7802_v15, %s6767_s18  ;;  %3286 = vrot.lane.b32.xlu0 %v7802_v15, %s6769_s27 }
 0x24b   : > { %v7912_v18 = vpop.permute.xlu1 %1252  ;;  %v7914_v38 = vpop.permute.xlu0 %1250 }
 0x24c   : > { %10792 = vst [vmem:[#allocation107_spill] sm:$0xff] %v7912_v18  ;;  %10793 = vst [vmem:[#allocation108_spill] sm:$0xff] %v7914_v38 }
 0x24d   : > { %1718 = vrot.lane.b32.xlu1 %v7815_v3, %s6767_s18  ;;  %1722 = vrot.lane.b32.xlu0 %v7919_v19, %s6767_s18 }
 0x24f   : > { %v1257_v6 = vpop.permute.xlu1 %1256  ;;  %v1255_v63 = vpop.permute.xlu0 %1254 }
 0x250   : > { %v1294_v11 = vsel %vm10586_vm7, %v1255_v63, %v1257_v6 }
 0x251   : > { %1802 = vrot.lane.b32.xlu1 %v7762_v21, %s6770_s1  ;;  %1800 = vrot.lane.b32.xlu0 %v7769_v10, %s6770_s1 }
 0x253   : > { %v7927_v30 = vpop.permute.xlu1 %1260  ;;  %v7929_v13 = vpop.permute.xlu0 %1258 }
 0x254   : > { %10794 = vst [vmem:[#allocation109_spill] sm:$0xff] %v7927_v30  ;;  %10795 = vst [vmem:[#allocation110_spill] sm:$0xff] %v7929_v13  ;;  %v1295_v18 = vsel %vm10586_vm7, %v1257_v6, %v7929_v13 }
 0x255   : > { %1816 = vrot.lane.b32.xlu1 %v7779_v4, %s6770_s1  ;;  %1798 = vrot.lane.b32.xlu0 %v7784_v20, %s6770_s1 }
 0x256   : > { %4225 = vmatprep.subr.bf16.mxu0 %v1295_v18 }
 0x257   : > { %4226 = vmatpush1.bf16.msra.mxu0 %v1294_v11  ;;  %v7938_v38 = vpop.permute.xlu1 %1264  ;;  %v7940_v40 = vpop.permute.xlu0 %1262 }
 0x258   : > { %10796 = vst [vmem:[#allocation111_spill] sm:$0xff] %v7938_v38  ;;  %10797 = vst [vmem:[#allocation112_spill] sm:$0xff] %v7940_v40 }
 0x259   : > { %1814 = vrot.lane.b32.xlu1 %v7793_v7, %s6770_s1  ;;  %1818 = vrot.lane.b32.xlu0 %v7839_v2, %s6770_s1 }
 0x25b   : > { %v7946_v30 = vpop.permute.xlu1 %1268  ;;  %v7948_v13 = vpop.permute.xlu0 %1266 }
 0x25c   : > { %10798 = vst [vmem:[#allocation113_spill] sm:$0xff] %v7946_v30  ;;  %10799 = vst [vmem:[#allocation114_spill] sm:$0xff] %v7948_v13 }
 0x25d   : > { %1834 = vrot.lane.b32.xlu1 %v7919_v19, %s6770_s1  ;;  %1832 = vrot.lane.b32.xlu0 %v7802_v15, %s6770_s1 }
 0x25f   : > { %v1273_v11 = vpop.permute.xlu1 %1272  ;;  %v1271_v18 = vpop.permute.xlu0 %1270 }
 0x260   : > { %v1301_v38 = vsel %vm10586_vm7, %v1271_v18, %v1273_v11 }
 0x261   : > { %1912 = vrot.lane.b32.xlu1 %v7769_v10, %s6771_s29  ;;  %1830 = vrot.lane.b32.xlu0 %v7815_v3, %s6770_s1 }
 0x263   : > { %v7958_v6 = vpop.permute.xlu1 %1276  ;;  %v7960_v63 = vpop.permute.xlu0 %1274 }
 0x264   : > { %10800 = vst [vmem:[#allocation115_spill] sm:$0xff] %v7958_v6  ;;  %10801 = vst [vmem:[#allocation116_spill] sm:$0xff] %v7960_v63  ;;  %v1302_v30 = vsel %vm10586_vm7, %v1273_v11, %v7960_v63 }
 0x265   : > { %1910 = vrot.lane.b32.xlu1 %v7784_v20, %s6771_s29  ;;  %1914 = vrot.lane.b32.xlu0 %v7762_v21, %s6771_s29 }
 0x266   : > { %4227 = vmatprep.subr.bf16.mxu0 %v1302_v30 }
 0x267   : > { %4228 = vmatpush1.bf16.msra.mxu0 %v1301_v38  ;;  %v7969_v13 = vpop.permute.xlu1 %1280  ;;  %v7971_v40 = vpop.permute.xlu0 %1278 }
 0x268   : > { %10802 = vst [vmem:[#allocation117_spill] sm:$0xff] %v7969_v13  ;;  %10803 = vst [vmem:[#allocation118_spill] sm:$0xff] %v7971_v40 }
 0x269   : > { %1930 = vrot.lane.b32.xlu1 %v7839_v2, %s6771_s29  ;;  %1928 = vrot.lane.b32.xlu0 %v7779_v4, %s6771_s29 }
 0x26b   : > { %v7977_v6 = vpop.permute.xlu1 %1284  ;;  %v7979_v63 = vpop.permute.xlu0 %1282 }
 0x26c   : > { %10804 = vst [vmem:[#allocation119_spill] sm:$0xff] %v7977_v6  ;;  %10805 = vst [vmem:[#allocation120_spill] sm:$0xff] %v7979_v63 }
 0x26d   : > { %1944 = vrot.lane.b32.xlu1 %v7802_v15, %s6771_s29  ;;  %1926 = vrot.lane.b32.xlu0 %v7793_v7, %s6771_s29 }
 0x26f   : > { %v1353_v38 = vpop.permute.xlu1 %1352  ;;  %v1351_v30 = vpop.permute.xlu0 %1350 }
 0x270   : > { %v1399_v13 = vsel %vm10596_vm8, %v1351_v30, %v1353_v38 }
 0x271   : > { %1942 = vrot.lane.b32.xlu1 %v7815_v3, %s6771_s29  ;;  %1946 = vrot.lane.b32.xlu0 %v7919_v19, %s6771_s29 }
 0x273   : > { %v7989_v11 = vpop.permute.xlu1 %1356  ;;  %v7991_v18 = vpop.permute.xlu0 %1354 }
 0x274   : > { %10806 = vst [vmem:[#allocation121_spill] sm:$0xff] %v7989_v11  ;;  %10807 = vst [vmem:[#allocation122_spill] sm:$0xff] %v7991_v18  ;;  %v1400_v6 = vsel %vm10596_vm8, %v1353_v38, %v7991_v18 }
 0x275   : > { %2026 = vrot.lane.b32.xlu1 %v7762_v21, %s6772_s19  ;;  %2024 = vrot.lane.b32.xlu0 %v7769_v10, %s6772_s19 }
 0x276   : > { %4229 = vmatprep.subr.bf16.mxu0 %v1400_v6 }
 0x277   : > { %4230 = vmatpush1.bf16.msra.mxu0 %v1399_v13  ;;  %v8000_v63 = vpop.permute.xlu1 %1360  ;;  %v8002_v11 = vpop.permute.xlu0 %1358 }
 0x278   : > { %10808 = vst [vmem:[#allocation123_spill] sm:$0xff] %v8000_v63  ;;  %10809 = vst [vmem:[#allocation124_spill] sm:$0xff] %v8002_v11 }
 0x279   : > { %2040 = vrot.lane.b32.xlu1 %v7779_v4, %s6772_s19  ;;  %2022 = vrot.lane.b32.xlu0 %v7784_v20, %s6772_s19 }
 0x27b   : > { %v8008_v40 = vpop.permute.xlu1 %1370  ;;  %v1369_v18 = vpop.permute.xlu0 %1368 }
 0x27c   : > { %10810 = vst [vmem:[#allocation125_spill] sm:$0xff] %v8008_v40  ;;  %v1407_v6 = vsel %vm10596_vm8, %v1369_v18, %v8008_v40 }
 0x27d   : > { %2038 = vrot.lane.b32.xlu1 %v7793_v7, %s6772_s19  ;;  %2042 = vrot.lane.b32.xlu0 %v7839_v2, %s6772_s19 }
 0x27e   : > { %4231 = vmatprep.subr.bf16.mxu0 %v1407_v6 }
 0x27f   : > { %v1385_v13 = vpop.permute.xlu1 %1384  ;;  %v1367_v38 = vpop.permute.xlu0 %1366 }
 0x280   : > { %v1406_v30 = vsel %vm10596_vm8, %v1367_v38, %v1369_v18 }
 0x281   : > { %2058 = vrot.lane.b32.xlu1 %v7919_v19, %s6772_s19  ;;  %2056 = vrot.lane.b32.xlu0 %v7802_v15, %s6772_s19 }
 0x282   : > { %4232 = vmatpush1.bf16.msra.mxu0 %v1406_v30 }
 0x283   : > { %v1383_v63 = vpop.permute.xlu1 %1382  ;;  %v8021_v11 = vpop.permute.xlu0 %1386 }
 0x284   : > { %10811 = vst [vmem:[#allocation126_spill] sm:$0xff] %v8021_v11  ;;  %v1413_v40 = vsel %vm10596_vm8, %v1383_v63, %v1385_v13  ;;  %v1414_v6 = vsel %vm10596_vm8, %v1385_v13, %v8021_v11 }
 0x285   : > { %2136 = vrot.lane.b32.xlu1 %v7769_v10, %s6773_s23  ;;  %2054 = vrot.lane.b32.xlu0 %v7815_v3, %s6772_s19 }
 0x286   : > { %4233 = vmatprep.subr.bf16.mxu0 %v1414_v6 }
 0x287   : > { %4234 = vmatpush1.bf16.msra.mxu0 %v1413_v40  ;;  %v8030_v18 = vpop.permute.xlu1 %1466  ;;  %v1465_v38 = vpop.permute.xlu0 %1464 }
 0x288   : > { %10812 = vst [vmem:[#allocation127_spill] sm:$0xff] %v8030_v18  ;;  %v1512_v63 = vsel %vm10601_vm9, %v1465_v38, %v8030_v18 }
 0x289   : > { %2134 = vrot.lane.b32.xlu1 %v7784_v20, %s6773_s23  ;;  %2138 = vrot.lane.b32.xlu0 %v7762_v21, %s6773_s23 }
 0x28a   : > { %4235 = vmatprep.subr.bf16.mxu0 %v1512_v63 }
 0x28b   : > { %v1481_v13 = vpop.permute.xlu1 %1480  ;;  %v1463_v30 = vpop.permute.xlu0 %1462 }
 0x28c   : > { %v1511_v40 = vsel %vm10601_vm9, %v1463_v30, %v1465_v38  ;;  %v6412_v30 = vld [vmem:[#allocation3 + $0x8] ss:$44 sps:$4 sm:$0xff]  }
 0x28d   : > { %2154 = vrot.lane.b32.xlu1 %v7839_v2, %s6773_s23  ;;  %2152 = vrot.lane.b32.xlu0 %v7779_v4, %s6773_s23 }
 0x28e   : > { %4236 = vmatpush1.bf16.msra.mxu0 %v1511_v40 }
 0x28f   : > { %v1479_v6 = vpop.permute.xlu1 %1478  ;;  %v8043_v11 = vpop.permute.xlu0 %1482 }
 0x290   : > { %10813 = vst [vmem:[#allocation128_spill] sm:$0xff] %v8043_v11  ;;  %v1518_v18 = vsel %vm10601_vm9, %v1479_v6, %v1481_v13  ;;  %v1519_v63 = vsel %vm10601_vm9, %v1481_v13, %v8043_v11 }
 0x291   : > { %2168 = vrot.lane.b32.xlu1 %v7802_v15, %s6773_s23  ;;  %2150 = vrot.lane.b32.xlu0 %v7793_v7, %s6773_s23 }
 0x292   : > { %4237 = vmatprep.subr.bf16.mxu0 %v1519_v63 }
 0x293   : > { %4238 = vmatpush1.bf16.msra.mxu0 %v1518_v18  ;;  %v8052_v38 = vpop.permute.xlu1 %1498  ;;  %v1497_v40 = vpop.permute.xlu0 %1496 }
 0x294   : > { %10814 = vst [vmem:[#allocation129_spill] sm:$0xff] %v8052_v38  ;;  %v1526_v6 = vsel %vm10601_vm9, %v1497_v40, %v8052_v38 }
 0x295   : > { %2166 = vrot.lane.b32.xlu1 %v7815_v3, %s6773_s23  ;;  %2170 = vrot.lane.b32.xlu0 %v7919_v19, %s6773_s23 }
 0x296   : > { %4270 = vmatprep.subr.bf16.mxu0 %v1526_v6  ;;  %4240 = vmatmul.mubr.bf16.vlgmr.msra.gmra.mrb[0].mxu0 %v6412_v30  ;;  %v6425_v6 = vld [vmem:[#allocation3 + $0x60] ss:$44 sps:$4 sm:$0xff]  }
 0x297   : > { %v1577_v13 = vpop.permute.xlu1 %1576  ;;  %v1495_v11 = vpop.permute.xlu0 %1494  ;;  %4249 = vmatprep.mubr.bf16.mxu0 %v6423_v23 }
 0x298   : > { %v1525_v18 = vsel %vm10601_vm9, %v1495_v11, %v1497_v40  ;;  %v6427_v11 = vld [vmem:[#allocation3 + $0xbc] ss:$44 sps:$4 sm:$0xff]  }
 0x299   : > { %2250 = vrot.lane.b32.xlu1 %v7762_v21, %s6774_s5  ;;  %2248 = vrot.lane.b32.xlu0 %v7769_v10, %s6774_s5 }
 0x29a   : > { %4271 = vmatpush1.bf16.msra.mxu0 %v1525_v18 }
 0x29b   : > { %v1575_v63 = vpop.permute.xlu1 %1574  ;;  %v8066_v22 = vpop.permute.xlu0 %1578 }
 0x29c   : > { %v1623_v38 = vsel %vm10605_vm10, %v1575_v63, %v1577_v13  ;;  %v1624_v23 = vsel %vm10605_vm10, %v1577_v13, %v8066_v22 }
 0x29d   : > { %2264 = vrot.lane.b32.xlu1 %v7779_v4, %s6774_s5  ;;  %2246 = vrot.lane.b32.xlu0 %v7784_v20, %s6774_s5  ;;  %v6429_v20 = vld [vmem:[#allocation3 + $0xb8] ss:$44 sps:$4 sm:$0xff]  }
 0x29e   : > { %4272 = vmatprep.subr.bf16.mxu0 %v1624_v23  ;;  %4250 = vmatmul.mubr.bf16.gmra.mrb[4].mxu0 %v6425_v6  ;;  %v6433_v6 = vld [vmem:[#allocation3 + $0x14] ss:$44 sps:$4 sm:$0xff]  }
 0x29f   : > { %4273 = vmatpush1.bf16.msra.mxu0 %v1623_v38  ;;  %v8074_v30 = vpop.permute.xlu1 %1594  ;;  %v1593_v40 = vpop.permute.xlu0 %1592  ;;  %4259 = vmatprep.mubr.bf16.mxu0 %v6427_v11 }
 0x2a0   : > { %v1631_v18 = vsel %vm10605_vm10, %v1593_v40, %v8074_v30 }
 0x2a1   : > { %2262 = vrot.lane.b32.xlu1 %v7793_v7, %s6774_s5  ;;  %2266 = vrot.lane.b32.xlu0 %v7839_v2, %s6774_s5 }
 0x2a2   : > { %4274 = vmatprep.subr.bf16.mxu0 %v1631_v18 }
 0x2a3   : > { %v1609_v13 = vpop.permute.xlu1 %1608  ;;  %v1591_v63 = vpop.permute.xlu0 %1590 }
 0x2a4   : > { %v1630_v38 = vsel %vm10605_vm10, %v1591_v63, %v1593_v40 }
 0x2a5   : > { %2282 = vrot.lane.b32.xlu1 %v7919_v19, %s6774_s5  ;;  %2280 = vrot.lane.b32.xlu0 %v7802_v15, %s6774_s5 }
 0x2a6   : > { %4275 = vmatpush1.bf16.msra.mxu0 %v1630_v38  ;;  %v8103_v38 = vld [vmem:[%s7017_s25 + $0xc] ss:$28 sps:$4 sm:$0xff]  }
 0x2a7   : > { %v1607_v7 = vpop.permute.xlu1 %1606  ;;  %v8088_v11 = vpop.permute.xlu0 %1610  ;;  %4260 = vmatmul.mubr.bf16.gmra.mrb[8].mxu0 %v6429_v20 }
 0x2a8   : > { %v1637_v23 = vsel %vm10605_vm10, %v1607_v7, %v1609_v13  ;;  %10815 = vst [vmem:[#allocation130_spill] sm:$0xff] %v8088_v11  ;;  %v1638_v40 = vsel %vm10605_vm10, %v1609_v13, %v8088_v11  ;;  %4302 = vmatprep.mubr.bf16.mxu0 %v6433_v6  ;;  %v8109_v7 = vld [vmem:[%s7017_s25 + $0x44] ss:$28 sps:$4 sm:$0xff]  }
 0x2a9   : > { %2360 = vrot.lane.b32.xlu1 %v7762_v21, %s6775_s8  ;;  %2278 = vrot.lane.b32.xlu0 %v7815_v3, %s6774_s5 }
 0x2aa   : > { %4276 = vmatprep.subr.bf16.mxu0 %v1638_v40 }
 0x2ab   : > { %4277 = vmatpush1.bf16.msra.mxu0 %v1637_v23  ;;  %v8096_v18 = vpop.permute.xlu1 %1690  ;;  %v1689_v63 = vpop.permute.xlu0 %1688 }
 0x2ac   : > { %10816 = vst [vmem:[#allocation131_spill] sm:$0xff] %v8096_v18  ;;  %v1736_v20 = vsel %vm1734_vm11, %v1689_v63, %v8096_v18 }
 0x2ad   : > { %2358 = vrot.lane.b32.xlu1 %v7769_v10, %s6775_s8  ;;  %2362 = vrot.lane.b32.xlu0 %v8103_v38, %s6775_s8 }
 0x2ae   : > { %4278 = vmatprep.subr.bf16.mxu0 %v1736_v20 }
 0x2af   : > { %v1705_v13 = vpop.permute.xlu1 %1704  ;;  %v1687_v3 = vpop.permute.xlu0 %1686 }
 0x2b0   : > { %v1735_v6 = vsel %vm1734_vm11, %v1687_v3, %v1689_v63 }
 0x2b1   : > { %2378 = vrot.lane.b32.xlu1 %v8109_v7, %s6775_s8  ;;  %2376 = vrot.lane.b32.xlu0 %v7839_v2, %s6775_s8 }
 0x2b2   : > { %4279 = vmatpush1.bf16.msra.mxu0 %v1735_v6 }
 0x2b3   : > { %v1703_v23 = vpop.permute.xlu1 %1702  ;;  %v8116_v18 = vpop.permute.xlu0 %1706 }
 0x2b4   : > { %v1742_v40 = vsel %vm1734_vm11, %v1703_v23, %v1705_v13  ;;  %10817 = vst [vmem:[#allocation132_spill] sm:$0xff] %v8116_v18  ;;  %v1743_v63 = vsel %vm1734_vm11, %v1705_v13, %v8116_v18  ;;  %v8131_v23 = vld [vmem:[%s7017_s25 + $0x7c] ss:$28 sps:$4 sm:$0xff]  }
 0x2b5   : > { %2392 = vrot.lane.b32.xlu1 %v7919_v19, %s6775_s8  ;;  %2374 = vrot.lane.b32.xlu0 %v7779_v4, %s6775_s8 }
 0x2b6   : > { %4280 = vmatprep.subr.bf16.mxu0 %v1743_v63 }
 0x2b7   : > { %4281 = vmatpush1.bf16.msra.mxu0 %v1742_v40  ;;  %v8124_v20 = vpop.permute.xlu1 %3290  ;;  %v3289_v3 = vpop.permute.xlu0 %3288  ;;  %v6422_v40 = vld [vmem:[#allocation3 + $0x28] ss:$44 sps:$4 sm:$0xff]  }
 0x2b8   : > { %10818 = vst [vmem:[#allocation133_spill] sm:$0xff] %v8124_v20  ;;  %v3318_v6 = vsel %vm3302_vm12, %v3289_v3, %v8124_v20 }
 0x2b9   : > { %2390 = vrot.lane.b32.xlu1 %v7802_v15, %s6775_s8  ;;  %2394 = vrot.lane.b32.xlu0 %v8131_v23, %s6775_s8 }
 0x2ba   : > { %4459 = vmatprep.subr.bf16.mxu1 %v3318_v6 }
 0x2bb   : > { %v1721_v13 = vpop.permute.xlu1 %1720  ;;  %v3287_v18 = vpop.permute.xlu0 %3286 }
 0x2bc   : > { %v3317_v63 = vsel %vm3302_vm12, %v3287_v18, %v3289_v3 }
 0x2bd   : > { %2474 = vrot.lane.b32.xlu1 %v8103_v38, %s6776_s9  ;;  %2472 = vrot.lane.b32.xlu0 %v7762_v21, %s6776_s9 }
 0x2be   : > { %4460 = vmatpush1.bf16.msra.mxu1 %v3317_v63  ;;  %v10821_v63 = vmov 0  }
 0x2bf   : > { %v1719_v20 = vpop.permute.xlu1 %1718  ;;  %4522 = vmatprep.subr.bf16.mxu1 %v8103_v38  ;;  %v8142_v6 = vpop.permute.xlu0 %1722 }
 0x2c0   : > { %v1749_v11 = vsel %vm1734_vm11, %v1719_v20, %v1721_v13  ;;  %10819 = vst [vmem:[#allocation134_spill] sm:$0xff] %v8142_v6  ;;  %v1750_v18 = vsel %vm1734_vm11, %v1721_v13, %v8142_v6 }
 0x2c1   : > { %2488 = vrot.lane.b32.xlu1 %v7839_v2, %s6776_s9  ;;  %5870 = vmatmul.mubr.msk.bf16.vlgmr.msra.gmra.mrb[12].mxu1 %vm1958_vm13, %v6422_v40  ;;  %v6426_v40 = vld [vmem:[#allocation3 + $0x80] ss:$44 sps:$4 sm:$0xff]  }
 0x2c2   : > { %2470 = vrot.lane.b32.xlu0 %v7769_v10, %s6776_s9  ;;  %4282 = vmatprep.subr.bf16.mxu0 %v1750_v18 }
 0x2c3   : > { %4523 = vmatpush1.bf16.msra.mxu1 %v7762_v21  ;;  %4283 = vmatpush1.bf16.msra.mxu0 %v1749_v11  ;;  %v8152_v3 = vpop.permute.xlu1 %1802  ;;  %v1801_v20 = vpop.permute.xlu0 %1800 }
 0x2c4   : > { %10820 = vst [vmem:[#allocation135_spill] sm:$0xff] %v8152_v3  ;;  %4524 = vmatprep.subr.bf16.mxu1 %v8109_v7  ;;  %4501 = vmatprep.mubr.bf16.mxu1 %v10821_v63  ;;  %v1848_v13 = vsel %vm1846_vm14, %v1801_v20, %v8152_v3 }
 0x2c5   : > { %2486 = vrot.lane.b32.xlu1 %v7779_v4, %s6776_s9  ;;  %4284 = vmatprep.subr.bf16.mxu0 %v1848_v13  ;;  %v506_v13 = vsel %vm10622_vm0, %v7201_v26, %v7212_v31 }
 0x2c6   : > { %2490 = vrot.lane.b32.xlu0 %v8109_v7, %s6776_s9 }
 0x2c7   : > { %4525 = vmatpush1.bf16.msra.mxu1 %v7839_v2  ;;  %v1817_v11 = vpop.permute.xlu1 %1816  ;;  %v1799_v18 = vpop.permute.xlu0 %1798 }
 0x2c8   : > { %4526 = vmatprep.subr.bf16.mxu1 %v8131_v23  ;;  %v1847_v6 = vsel %vm1846_vm14, %v1799_v18, %v1801_v20 }
 0x2c9   : > { %2506 = vrot.lane.b32.xlu1 %v8131_v23, %s6776_s9  ;;  %5871 = vmatmul.mubr.msk.bf16.gmra.mrb[16].mxu1 %vm1958_vm13, %v6426_v40  ;;  %v6430_v40 = vld [vmem:[#allocation3 + $0xd8] ss:$44 sps:$4 sm:$0xff]  }
 0x2ca   : > { %2504 = vrot.lane.b32.xlu0 %v7919_v19, %s6776_s9  ;;  %4285 = vmatpush1.bf16.msra.mxu0 %v1847_v6 }
 0x2cb   : > { %4527 = vmatpush1.bf16.msra.mxu1 %v7919_v19  ;;  %v1815_v3 = vpop.permute.xlu1 %1814  ;;  %4511 = vmatprep.mubr.bf16.mxu1 %v10821_v63  ;;  %v8176_v18 = vpop.permute.xlu0 %1818 }
 0x2cc   : > { %4528 = vmatprep.subr.bf16.mxu1 %v506_v13  ;;  %v1854_v20 = vsel %vm1846_vm14, %v1815_v3, %v1817_v11  ;;  %v1855_v6 = vsel %vm1846_vm14, %v1817_v11, %v8176_v18  ;;  %v505_v13 = vsel %vm10622_vm0, %v7195_v24, %v7201_v26  ;;  %v513_v3 = vsel %vm10622_vm0, %v7230_v36, %v7243_v41 }
 0x2cd   : > { %2584 = vrot.lane.b32.xlu1 %v7762_v21, %s6777_s7  ;;  %4286 = vmatprep.subr.bf16.mxu0 %v1855_v6  ;;  %v512_v24 = vsel %vm10622_vm0, %v7232_v37, %v7230_v36  ;;  %v520_v26 = vsel %vm10622_vm0, %v7261_v46, %v7274_v51  ;;  %v519_v36 = vsel %vm10622_vm0, %v7263_v47, %v7261_v46 }
 0x2ce   : > { %2502 = vrot.lane.b32.xlu0 %v7802_v15, %s6776_s9  ;;  %4287 = vmatpush1.bf16.msra.mxu0 %v1854_v20  ;;  %v618_v37 = vsel %vm614_vm1, %v7292_v56, %v7305_v61  ;;  %v617_v46 = vsel %vm614_vm1, %v7294_v57, %v7292_v56  ;;  %v625_v47 = vsel %vm614_vm1, %v7323_v28, %v7336_v39 }
 0x2cf   : > { %4529 = vmatpush1.bf16.msra.mxu1 %v505_v13  ;;  %v8190_v63 = vpop.permute.xlu1 %1834  ;;  %v1833_v31 = vpop.permute.xlu0 %1832  ;;  %v624_v56 = vsel %vm614_vm1, %v7325_v29, %v7323_v28  ;;  %v632_v57 = vsel %vm614_vm1, %v7354_v54, %v7367_v27  ;;  %v631_v28 = vsel %vm614_vm1, %v7356_v55, %v7354_v54  ;;  %v730_v29 = vsel %vm10583_vm2, %v7385_v58, %v7398_v42 }
 0x2d0   : > { %4530 = vmatprep.subr.bf16.mxu1 %v513_v3  ;;  %v1862_v11 = vsel %vm1846_vm14, %v1833_v31, %v8190_v63  ;;  %v729_v54 = vsel %vm10583_vm2, %v7387_v59, %v7385_v58  ;;  %v737_v55 = vsel %vm10583_vm2, %v7416_v48, %v7429_v25  ;;  %v736_v58 = vsel %vm10583_vm2, %v7418_v49, %v7416_v48 }
 0x2d1   : > { %2582 = vrot.lane.b32.xlu1 %v7769_v10, %s6777_s7  ;;  %5872 = vmatmul.mubr.msk.bf16.gmra.mrb[20].mxu1 %vm1958_vm13, %v6430_v40  ;;  %v744_v59 = vsel %vm10583_vm2, %v7447_v62, %v7460_v45  ;;  %v743_v48 = vsel %vm10583_vm2, %v7449_v44, %v7447_v62  ;;  %v842_v49 = vsel %vm838_vm3, %v7478_v32, %v7491_v50  ;;  %vm10626_vm2 = vcmask 56320  }
 0x2d2   : > { %2586 = vrot.lane.b32.xlu0 %v8103_v38, %s6777_s7  ;;  %4288 = vmatprep.subr.bf16.mxu0 %v1862_v11  ;;  %v841_v62 = vsel %vm838_vm3, %v7480_v52, %v7478_v32  ;;  %v849_v44 = vsel %vm838_vm3, %v7509_v34, %v7522_v43  ;;  %v10822_v32 = vld [vmem:[#allocation46_spill] sm:$0xff] }
 0x2d3   : > { %4531 = vmatpush1.bf16.msra.mxu1 %v512_v24  ;;  %v1913_v20 = vpop.permute.xlu1 %1912  ;;  %4554 = vmatprep.mubr.bf16.mxu1 %v7822_v53  ;;  %v1831_v6 = vpop.permute.xlu0 %1830  ;;  %v848_v52 = vsel %vm838_vm3, %v10822_v32, %v7509_v34  ;;  %v10825_v34 = vld [vmem:[#allocation51_spill] sm:$0xff] }
 0x2d4   : > { %4532 = vmatprep.subr.bf16.mxu1 %v520_v26  ;;  %v1861_v40 = vsel %vm1846_vm14, %v1831_v6, %v1833_v31 }
 0x2d5   : > { %2602 = vrot.lane.b32.xlu1 %v8109_v7, %s6777_s7  ;;  %4289 = vmatpush1.bf16.msra.mxu0 %v1861_v40 }
 0x2d6   : > { %2600 = vrot.lane.b32.xlu0 %v7839_v2, %s6777_s7 }
 0x2d7   : > { %4533 = vmatpush1.bf16.msra.mxu1 %v519_v36  ;;  %v1911_v53 = vpop.permute.xlu1 %1910  ;;  %v8218_v13 = vpop.permute.xlu0 %1914 }
 0x2d8   : > { %4534 = vmatprep.subr.bf16.mxu1 %v618_v37  ;;  %v1959_v31 = vsel %vm1958_vm13, %v1911_v53, %v1913_v20  ;;  %v1960_v3 = vsel %vm1958_vm13, %v1913_v20, %v8218_v13 }
 0x2d9   : > { %2616 = vrot.lane.b32.xlu1 %v7919_v19, %s6777_s7  ;;  %4290 = vmatprep.subr.bf16.mxu0 %v1960_v3 }
 0x2da   : > { %2598 = vrot.lane.b32.xlu0 %v7779_v4, %s6777_s7  ;;  %4291 = vmatpush1.bf16.msra.mxu0 %v1959_v31 }
 0x2db   : > { %4535 = vmatpush1.bf16.msra.mxu1 %v617_v46  ;;  %v8232_v11 = vpop.permute.xlu1 %1930  ;;  %v1929_v24 = vpop.permute.xlu0 %1928 }
 0x2dc   : > { %4536 = vmatprep.subr.bf16.mxu1 %v625_v47  ;;  %v1967_v26 = vsel %vm1958_vm13, %v1929_v24, %v8232_v11 }
 0x2dd   : > { %2614 = vrot.lane.b32.xlu1 %v7802_v15, %s6777_s7  ;;  %4292 = vmatprep.subr.bf16.mxu0 %v1967_v26 }
 0x2de   : > { %2618 = vrot.lane.b32.xlu0 %v8131_v23, %s6777_s7 }
 0x2df   : > { %4537 = vmatpush1.bf16.msra.mxu1 %v624_v56  ;;  %v1945_v20 = vpop.permute.xlu1 %1944  ;;  %v1927_v6 = vpop.permute.xlu0 %1926 }
 0x2e0   : > { %4538 = vmatprep.subr.bf16.mxu1 %v632_v57  ;;  %v1966_v40 = vsel %vm1958_vm13, %v1927_v6, %v1929_v24 }
 0x2e1   : > { %2698 = vrot.lane.b32.xlu1 %v8103_v38, %s6778_s10  ;;  %4293 = vmatpush1.bf16.msra.mxu0 %v1966_v40 }
 0x2e2   : > { %2696 = vrot.lane.b32.xlu0 %v7762_v21, %s6778_s10 }
 0x2e3   : > { %4539 = vmatpush1.bf16.msra.mxu1 %v631_v28  ;;  %v1943_v36 = vpop.permute.xlu1 %1942  ;;  %v8258_v53 = vpop.permute.xlu0 %1946 }
 0x2e4   : > { %4540 = vmatprep.subr.bf16.mxu1 %v730_v29  ;;  %v1973_v37 = vsel %vm1958_vm13, %v1943_v36, %v1945_v20  ;;  %v1974_v31 = vsel %vm1958_vm13, %v1945_v20, %v8258_v53  ;;  %v10823_v36 = vld [vmem:[#allocation53_spill] sm:$0xff] }
 0x2e5   : > { %2712 = vrot.lane.b32.xlu1 %v7839_v2, %s6778_s10  ;;  %4294 = vmatprep.subr.bf16.mxu0 %v1974_v31 }
 0x2e6   : > { %2694 = vrot.lane.b32.xlu0 %v7769_v10, %s6778_s10  ;;  %4295 = vmatpush1.bf16.msra.mxu0 %v1973_v37  ;;  %v10824_v37 = vld [vmem:[#allocation50_spill] sm:$0xff] }
 0x2e7   : > { %4541 = vmatpush1.bf16.msra.mxu1 %v729_v54  ;;  %v8272_v3 = vpop.permute.xlu1 %2026  ;;  %v2025_v46 = vpop.permute.xlu0 %2024  ;;  %v856_v31 = vsel %vm838_vm3, %v10824_v37, %v10823_v36 }
 0x2e8   : > { %4542 = vmatprep.subr.bf16.mxu1 %v737_v55  ;;  %v2072_v47 = vsel %vm2070_vm15, %v2025_v46, %v8272_v3 }
 0x2e9   : > { %2710 = vrot.lane.b32.xlu1 %v7779_v4, %s6778_s10  ;;  %4296 = vmatprep.subr.bf16.mxu0 %v2072_v47  ;;  %v6431_v47 = vld [vmem:[#allocation3 + $0x10] ss:$44 sps:$4 sm:$0xff]  }
 0x2ea   : > { %2714 = vrot.lane.b32.xlu0 %v8109_v7, %s6778_s10 }
 0x2eb   : > { %4543 = vmatpush1.bf16.msra.mxu1 %v736_v58  ;;  %v2041_v24 = vpop.permute.xlu1 %2040  ;;  %v2023_v26 = vpop.permute.xlu0 %2022  ;;  %v8330_v58 = vld [vmem:[%s7017_s25 + $0x48] ss:$28 sps:$4 sm:$0xff]  }
 0x2ec   : > { %4544 = vmatprep.subr.bf16.mxu1 %v744_v59  ;;  %v2071_v56 = vsel %vm2070_vm15, %v2023_v26, %v2025_v46  ;;  %v855_v59 = vsel %vm838_vm3, %v10825_v34, %v10824_v37  ;;  %v10827_v26 = vld [vmem:[#allocation56_spill] sm:$0xff] }
 0x2ed   : > { %2730 = vrot.lane.b32.xlu1 %v8131_v23, %s6778_s10  ;;  %4297 = vmatpush1.bf16.msra.mxu0 %v2071_v56  ;;  %v8358_v37 = vld [vmem:[%s7017_s25 + $0x80] ss:$28 sps:$4 sm:$0xff]  }
 0x2ee   : > { %2728 = vrot.lane.b32.xlu0 %v7919_v19, %s6778_s10 }
 0x2ef   : > { %4545 = vmatpush1.bf16.msra.mxu1 %v743_v48  ;;  %v2039_v57 = vpop.permute.xlu1 %2038  ;;  %v8298_v6 = vpop.permute.xlu0 %2042 }
 0x2f0   : > { %4546 = vmatprep.subr.bf16.mxu1 %v842_v49  ;;  %v2078_v20 = vsel %vm2070_vm15, %v2039_v57, %v2041_v24  ;;  %v2079_v40 = vsel %vm2070_vm15, %v2041_v24, %v8298_v6  ;;  %v10826_v24 = vld [vmem:[#allocation59_spill] sm:$0xff] }
 0x2f1   : > { %2808 = vrot.lane.b32.xlu1 %v7762_v21, %s6779_s20  ;;  %4298 = vmatprep.subr.bf16.mxu0 %v2079_v40  ;;  %v954_v56 = vsel %vm10584_vm4, %v10827_v26, %v10826_v24  ;;  %v6434_v57 = vld [vmem:[#allocation3 + $0x6c] ss:$44 sps:$4 sm:$0xff]  }
 0x2f2   : > { %2726 = vrot.lane.b32.xlu0 %v7802_v15, %s6778_s10  ;;  %4299 = vmatpush1.bf16.msra.mxu0 %v2078_v20  ;;  %v10828_v40 = vld [vmem:[#allocation57_spill] sm:$0xff] }
 0x2f3   : > { %4547 = vmatpush1.bf16.msra.mxu1 %v841_v62  ;;  %v8312_v28 = vpop.permute.xlu1 %2058  ;;  %v2057_v21 = vpop.permute.xlu0 %2056  ;;  %v953_v62 = vsel %vm10584_vm4, %v10828_v40, %v10827_v26  ;;  %v6437_v26 = vld [vmem:[#allocation3 + $0xc4] ss:$44 sps:$4 sm:$0xff]   ;;  %v1065_v40 = vsel %vm10585_vm5, %v7666_v9, %v7664_v8  ;;  %v8409_v9 = vld [vmem:[%s7017_s25 + $0x10] ss:$28 sps:$4 sm:$0xff]  }
 0x2f4   : > { %4548 = vmatprep.subr.bf16.mxu1 %v849_v44  ;;  %v2086_v29 = vsel %vm2070_vm15, %v2057_v21, %v8312_v28  ;;  %v10829_v44 = vld [vmem:[#allocation65_spill] sm:$0xff] }
 0x2f5   : > { %1372 = vrot.lane.b32.xlu1 %v8109_v7, %s6764_s11  ;;  %4300 = vmatprep.subr.bf16.mxu0 %v2086_v29 }
 0x2f6   : > { %2810 = vrot.lane.b32.xlu0 %v8103_v38, %s6779_s20 }
 0x2f7   : > { %4549 = vmatpush1.bf16.msra.mxu1 %v848_v52  ;;  %v2137_v54 = vpop.permute.xlu1 %2136  ;;  %v2055_v55 = vpop.permute.xlu0 %2054 }
 0x2f8   : > { %4550 = vmatprep.subr.bf16.mxu1 %v856_v31  ;;  %v2085_v46 = vsel %vm2070_vm15, %v2055_v55, %v2057_v21  ;;  %v10830_v21 = vld [vmem:[#allocation62_spill] sm:$0xff]  ;;  %v10831_v31 = vld [vmem:[#allocation63_spill] sm:$0xff] }
 0x2f9   : > { %2806 = vrot.lane.b32.xlu1 %v7769_v10, %s6779_s20  ;;  %4301 = vmatpush1.bf16.msra.mxu0 %v2085_v46  ;;  %v961_v29 = vsel %vm10584_vm4, %v10830_v21, %v10829_v44  ;;  %v6436_v46 = vld [vmem:[#allocation3 + $0x68] ss:$44 sps:$4 sm:$0xff]  }
 0x2fa   : > { %1374 = vrot.lane.b32.xlu0 %v8330_v58, %s6764_s11 }
 0x2fb   : > { %4551 = vmatpush1.bf16.msra.mxu1 %v855_v59  ;;  %v2135_v48 = vpop.permute.xlu1 %2134  ;;  %v8341_v49 = vpop.permute.xlu0 %2138 }
 0x2fc   : > { %4552 = vmatprep.subr.bf16.mxu1 %v954_v56  ;;  %v2183_v10 = vsel %vm10626_vm2, %v2135_v48, %v2137_v54  ;;  %v2184_v20 = vsel %vm10626_vm2, %v2137_v54, %v8341_v49  ;;  %4303 = vmatmul.mubr.bf16.vlgmr.msra.gmra.mrb[0].mxu0 %v6431_v47  ;;  %v960_v54 = vsel %vm10584_vm4, %v10831_v31, %v10830_v21  ;;  %v10832_v47 = vld [vmem:[#allocation68_spill] sm:$0xff]  ;;  %v6439_v21 = vld [vmem:[#allocation3 + $0xc0] ss:$44 sps:$4 sm:$0xff]  }
 0x2fd   : > { %2826 = vrot.lane.b32.xlu1 %v8109_v7, %s6779_s20  ;;  %4333 = vmatprep.subr.bf16.mxu0 %v2184_v20  ;;  %v968_v34 = vsel %vm10584_vm4, %v10832_v47, %v7646_v35 }
 0x2fe   : > { %2824 = vrot.lane.b32.xlu0 %v7839_v2, %s6779_s20  ;;  %4334 = vmatpush1.bf16.msra.mxu0 %v2183_v10 }
 0x2ff   : > { %4553 = vmatpush1.bf16.msra.mxu1 %v953_v62  ;;  %v8355_v32 = vpop.permute.xlu1 %2154  ;;  %v2153_v52 = vpop.permute.xlu0 %2152  ;;  %4312 = vmatprep.mubr.bf16.mxu0 %v6434_v57 }
 0x300   : > { %4585 = vmatprep.subr.bf16.mxu1 %v961_v29  ;;  %v2191_v2 = vsel %vm10626_vm2, %v2153_v52, %v8355_v32  ;;  %v1073_v29 = vsel %vm10585_vm5, %v7695_v16, %v7708_v14 }
 0x301   : > { %1390 = vrot.lane.b32.xlu1 %v8358_v37, %s6764_s11  ;;  %4335 = vmatprep.subr.bf16.mxu0 %v2191_v2  ;;  %v6442_v2 = vld [vmem:[#allocation3 + $0x1c] ss:$44 sps:$4 sm:$0xff]  }
 0x302   : > { %1388 = vrot.lane.b32.xlu0 %v8131_v23, %s6764_s11  ;;  %4555 = vmatmul.mubr.bf16.vlgmr.msra.gmra.mrb[24].mxu1 %v7826_v60  ;;  %v10833_v60 = vld [vmem:[#allocation69_spill] sm:$0xff] }
 0x303   : > { %v2169_v55 = vpop.permute.xlu1 %2168  ;;  %4586 = vmatpush1.bf16.msra.mxu1 %v960_v54  ;;  %v2151_v59 = vpop.permute.xlu0 %2150  ;;  %4564 = vmatprep.mubr.bf16.mxu1 %v7845_v12  ;;  %v967_v48 = vsel %vm10584_vm4, %v10833_v60, %v10832_v47  ;;  %v1066_v12 = vsel %vm10585_vm5, %v7664_v8, %v7677_v33  ;;  %vm10637_vm4 = vcmask 48128  }
 0x304   : > { %4587 = vmatprep.subr.bf16.mxu1 %v968_v34  ;;  %v2190_v56 = vsel %vm10626_vm2, %v2151_v59, %v2153_v52  ;;  %4313 = vmatmul.mubr.bf16.gmra.mrb[4].mxu0 %v6436_v46  ;;  %v8423_v46 = vld [vmem:[%s7017_s25 + $0x8] ss:$28 sps:$4 sm:$0xff]  }
 0x305   : > { %2840 = vrot.lane.b32.xlu1 %v7919_v19, %s6779_s20  ;;  %4336 = vmatpush1.bf16.msra.mxu0 %v2190_v56  ;;  %v10836_v34 = vld [vmem:[#allocation100_spill] sm:$0xff]  ;;  %v10837_v59 = vld [vmem:[#allocation87_spill] sm:$0xff] }
 0x306   : > { %2822 = vrot.lane.b32.xlu0 %v7779_v4, %s6779_s20  ;;  %4322 = vmatprep.mubr.bf16.mxu0 %v6437_v26  ;;  %v10838_v26 = vld [vmem:[#allocation84_spill] sm:$0xff] }
 0x307   : > { %v2167_v10 = vpop.permute.xlu1 %2166  ;;  %4588 = vmatpush1.bf16.msra.mxu1 %v967_v48  ;;  %v8386_v20 = vpop.permute.xlu0 %2170  ;;  %v1178_v56 = vsel %vm10587_vm6, %v10838_v26, %v10837_v59 }
 0x308   : > { %v2197_v57 = vsel %vm10626_vm2, %v2167_v10, %v2169_v55  ;;  %4589 = vmatprep.subr.bf16.mxu1 %v1066_v12  ;;  %v2198_v4 = vsel %vm10626_vm2, %v2169_v55, %v8386_v20  ;;  %v6477_v10 = vld [vmem:[#allocation3 + $0xc] ss:$44 sps:$4 sm:$0xff]  }
 0x309   : > { %1468 = vrot.lane.b32.xlu1 %v8103_v38, %s6765_s21  ;;  %4337 = vmatprep.subr.bf16.mxu0 %v2198_v4 }
 0x30a   : > { %2842 = vrot.lane.b32.xlu0 %v8131_v23, %s6779_s20  ;;  %4338 = vmatpush1.bf16.msra.mxu0 %v2197_v57  ;;  %v10839_v57 = vld [vmem:[#allocation85_spill] sm:$0xff] }
 0x30b   : > { %v8397_v62 = vpop.permute.xlu1 %2250  ;;  %4565 = vmatmul.mubr.bf16.gmra.mrb[28].mxu1 %v7847_v5  ;;  %v2249_v52 = vpop.permute.xlu0 %2248  ;;  %v1072_v5 = vsel %vm10585_vm5, %v7697_v17, %v7695_v16  ;;  %v10835_v16 = vld [vmem:[#allocation80_spill] sm:$0xff]  ;;  %v1177_v4 = vsel %vm10587_vm6, %v10839_v57, %v10838_v26  ;;  %v10845_v26 = vld [vmem:[#allocation97_spill] sm:$0xff] }
 0x30c   : > { %4590 = vmatpush1.bf16.msra.mxu1 %v1065_v40  ;;  %4574 = vmatprep.mubr.bf16.mxu1 %v7868_v1  ;;  %v2296_v8 = vsel %vm10637_vm4, %v2249_v52, %v8397_v62  ;;  %v10834_v1 = vld [vmem:[#allocation79_spill] sm:$0xff] }
 0x30d   : > { %4591 = vmatprep.subr.bf16.mxu1 %v1073_v29  ;;  %2838 = vrot.lane.b32.xlu1 %v7802_v15, %s6779_s20  ;;  %v1080_v15 = vsel %vm10585_vm5, %v10834_v1, %v7739_v0  ;;  %v1079_v17 = vsel %vm10585_vm5, %v10835_v16, %v10834_v1  ;;  %v10841_v29 = vld [vmem:[#allocation90_spill] sm:$0xff]  ;;  %v10842_v1 = vld [vmem:[#allocation91_spill] sm:$0xff]  ;;  %v10844_v16 = vld [vmem:[#allocation96_spill] sm:$0xff]  ;;  %vm10636_vm5 = vcmask 457728  }
 0x30e   : > { %1470 = vrot.lane.b32.xlu0 %v8409_v9, %s6765_s21  ;;  %4339 = vmatprep.subr.bf16.mxu0 %v2296_v8  ;;  %v8452_v8 = vld [vmem:[%s7017_s25 + $0x40] ss:$28 sps:$4 sm:$0xff]  }
 0x30f   : > { %v2265_v31 = vpop.permute.xlu1 %2264  ;;  %4323 = vmatmul.mubr.bf16.gmra.mrb[8].mxu0 %v6439_v21  ;;  %v2247_v54 = vpop.permute.xlu0 %2246  ;;  %v10840_v21 = vld [vmem:[#allocation93_spill] sm:$0xff] }
 0x310   : > { %4592 = vmatpush1.bf16.msra.mxu1 %v1072_v5  ;;  %4365 = vmatprep.mubr.bf16.mxu0 %v6442_v2  ;;  %v2295_v55 = vsel %vm10637_vm4, %v2247_v54, %v2249_v52  ;;  %v1185_v52 = vsel %vm10587_vm6, %v10841_v29, %v10840_v21 }
 0x311   : > { %4593 = vmatprep.subr.bf16.mxu1 %v1080_v15  ;;  %2922 = vrot.lane.b32.xlu1 %v8103_v38, %s6780_s22  ;;  %v1184_v15 = vsel %vm10587_vm6, %v10842_v1, %v10841_v29 }
 0x312   : > { %2920 = vrot.lane.b32.xlu0 %v8423_v46, %s6780_s22  ;;  %4340 = vmatpush1.bf16.msra.mxu0 %v2295_v55  ;;  %v10843_v55 = vld [vmem:[#allocation99_spill] sm:$0xff] }
 0x313   : > { %v2263_v47 = vpop.permute.xlu1 %2262  ;;  %4575 = vmatmul.mubr.bf16.gmra.mrb[32].mxu1 %v10836_v34  ;;  %v8435_v48 = vpop.permute.xlu0 %2266 }
 0x314   : > { %4594 = vmatpush1.bf16.msra.mxu1 %v1079_v17  ;;  %v2302_v60 = vsel %vm10637_vm4, %v2263_v47, %v2265_v31  ;;  %4617 = vmatprep.mubr.bf16.mxu1 %v6477_v10  ;;  %v2303_v12 = vsel %vm10637_vm4, %v2265_v31, %v8435_v48  ;;  %v8459_v31 = vld [vmem:[%s7017_s25 + $0x4] ss:$28 sps:$4 sm:$0xff]   ;;  %v1192_v17 = vsel %vm10587_vm6, %v10844_v16, %v10843_v55  ;;  %v10846_v10 = vld [vmem:[#allocation106_spill] sm:$0xff] }
 0x315   : > { %4595 = vmatprep.subr.bf16.mxu1 %v1178_v56  ;;  %1486 = vrot.lane.b32.xlu1 %v8330_v58, %s6765_s21  ;;  %v1191_v56 = vsel %vm10587_vm6, %v10845_v26, %v10844_v16  ;;  %v10849_v16 = vld [vmem:[#allocation112_spill] sm:$0xff]  ;;  %v10851_v26 = vld [vmem:[#allocation110_spill] sm:$0xff]  ;;  %vm10593_vm6 = vcmask 441344  }
 0x316   : > { %1484 = vrot.lane.b32.xlu0 %v8109_v7, %s6765_s21  ;;  %4341 = vmatprep.subr.bf16.mxu0 %v2303_v12  ;;  %v10847_v12 = vld [vmem:[#allocation103_spill] sm:$0xff] }
 0x317   : > { %4342 = vmatpush1.bf16.msra.mxu0 %v2302_v60  ;;  %v8446_v40 = vpop.permute.xlu1 %2282  ;;  %v2281_v2 = vpop.permute.xlu0 %2280  ;;  %v1290_v57 = vsel %vm10586_vm7, %v10847_v12, %v10846_v10 }
 0x318   : > { %4596 = vmatpush1.bf16.msra.mxu1 %v1177_v4  ;;  %v2310_v5 = vsel %vm10637_vm4, %v2281_v2, %v8446_v40 }
 0x319   : > { %4597 = vmatprep.subr.bf16.mxu1 %v1185_v52  ;;  %2936 = vrot.lane.b32.xlu1 %v8452_v8, %s6780_s22  ;;  %v8484_v52 = vld [vmem:[%s7017_s25 + $0x3c] ss:$28 sps:$4 sm:$0xff]  }
 0x31a   : > { %2918 = vrot.lane.b32.xlu0 %v8459_v31, %s6780_s22  ;;  %4343 = vmatprep.subr.bf16.mxu0 %v2310_v5  ;;  %v10848_v5 = vld [vmem:[#allocation104_spill] sm:$0xff] }
 0x31b   : > { %v2361_v54 = vpop.permute.xlu1 %2360  ;;  %v2279_v47 = vpop.permute.xlu0 %2278  ;;  %v1289_v1 = vsel %vm10586_vm7, %v10848_v5, %v10847_v12  ;;  %v10852_v12 = vld [vmem:[#allocation118_spill] sm:$0xff] }
 0x31c   : > { %4598 = vmatpush1.bf16.msra.mxu1 %v1184_v15  ;;  %v2309_v34 = vsel %vm10637_vm4, %v2279_v47, %v2281_v2 }
 0x31d   : > { %4599 = vmatprep.subr.bf16.mxu1 %v1192_v17  ;;  %1500 = vrot.lane.b32.xlu1 %v8131_v23, %s6765_s21  ;;  %v10850_v17 = vld [vmem:[#allocation109_spill] sm:$0xff] }
 0x31e   : > { %2938 = vrot.lane.b32.xlu0 %v8109_v7, %s6780_s22  ;;  %4344 = vmatpush1.bf16.msra.mxu0 %v2309_v34  ;;  %v1297_v47 = vsel %vm10586_vm7, %v10850_v17, %v10849_v16 }
 0x31f   : > { %v2359_v60 = vpop.permute.xlu1 %2358  ;;  %v8481_v29 = vpop.permute.xlu0 %2362 }
 0x320   : > { %4600 = vmatpush1.bf16.msra.mxu1 %v1191_v56  ;;  %v2407_v4 = vsel %vm10636_vm5, %v2359_v60, %v2361_v54  ;;  %v2408_v2 = vsel %vm10636_vm5, %v2361_v54, %v8481_v29  ;;  %v1296_v56 = vsel %vm10586_vm7, %v10851_v26, %v10850_v17 }
 0x321   : > { %4601 = vmatprep.subr.bf16.mxu1 %v1290_v57  ;;  %2934 = vrot.lane.b32.xlu1 %v8484_v52, %s6780_s22  ;;  %v10853_v57 = vld [vmem:[#allocation115_spill] sm:$0xff] }
 0x322   : > { %1502 = vrot.lane.b32.xlu0 %v8358_v37, %s6765_s21  ;;  %4345 = vmatprep.subr.bf16.mxu0 %v2408_v2 }
 0x323   : > { %4346 = vmatpush1.bf16.msra.mxu0 %v2407_v4  ;;  %v8495_v15 = vpop.permute.xlu1 %2378  ;;  %v2377_v34 = vpop.permute.xlu0 %2376  ;;  %v1304_v4 = vsel %vm10586_vm7, %v10853_v57, %v10852_v12 }
 0x324   : > { %4602 = vmatpush1.bf16.msra.mxu1 %v1289_v1  ;;  %v2415_v54 = vsel %vm10636_vm5, %v2377_v34, %v8495_v15 }
 0x325   : > { %4603 = vmatprep.subr.bf16.mxu1 %v1297_v47  ;;  %2954 = vrot.lane.b32.xlu1 %v8131_v23, %s6780_s22  ;;  %v10855_v47 = vld [vmem:[#allocation124_spill] sm:$0xff] }
 0x326   : > { %2952 = vrot.lane.b32.xlu0 %v7919_v19, %s6780_s22  ;;  %4347 = vmatprep.subr.bf16.mxu0 %v2415_v54  ;;  %v10854_v19 = vld [vmem:[#allocation116_spill] sm:$0xff]  ;;  %v10856_v54 = vld [vmem:[#allocation121_spill] sm:$0xff] }
 0x327   : > { %v2393_v60 = vpop.permute.xlu1 %2392  ;;  %v2375_v2 = vpop.permute.xlu0 %2374  ;;  %v1303_v1 = vsel %vm10586_vm7, %v10854_v19, %v10853_v57  ;;  %v1402_v26 = vsel %vm10596_vm8, %v10856_v54, %v10855_v47  ;;  %vm10590_vm7 = vcmask 449536   ;;  %v10857_v57 = vld [vmem:[#allocation122_spill] sm:$0xff] }
 0x328   : > { %4604 = vmatpush1.bf16.msra.mxu1 %v1296_v56  ;;  %v2414_v5 = vsel %vm10636_vm5, %v2375_v2, %v2377_v34  ;;  %v8531_v2 = vld [vmem:[%s7017_s25 + $0x74] ss:$28 sps:$4 sm:$0xff]  }
 0x329   : > { %4605 = vmatprep.subr.bf16.mxu1 %v1304_v4  ;;  %1582 = vrot.lane.b32.xlu1 %v8409_v9, %s10588_s16  ;;  %v6482_v47 = vld [vmem:[%s7017_s25 + $0x78] ss:$28 sps:$4 sm:$0xff]  }
 0x32a   : > { %1580 = vrot.lane.b32.xlu0 %v8103_v38, %s10588_s16  ;;  %4348 = vmatpush1.bf16.msra.mxu0 %v2414_v5  ;;  %v1401_v5 = vsel %vm10596_vm8, %v10857_v57, %v10856_v54 }
 0x32b   : > { %v2391_v17 = vpop.permute.xlu1 %2390  ;;  %v8524_v34 = vpop.permute.xlu0 %2394 }
 0x32c   : > { %4606 = vmatpush1.bf16.msra.mxu1 %v1303_v1  ;;  %v2421_v56 = vsel %vm10636_vm5, %v2391_v17, %v2393_v60  ;;  %v2422_v4 = vsel %vm10636_vm5, %v2393_v60, %v8524_v34 }
 0x32d   : > { %4607 = vmatprep.subr.bf16.mxu1 %v1402_v26  ;;  %3032 = vrot.lane.b32.xlu1 %v8423_v46, %s10624_s26 }
 0x32e   : > { %2950 = vrot.lane.b32.xlu0 %v8531_v2, %s6780_s22  ;;  %4349 = vmatprep.subr.bf16.mxu0 %v2422_v4 }
 0x32f   : > { %4350 = vmatpush1.bf16.msra.mxu0 %v2421_v56  ;;  %v8538_v19 = vpop.permute.xlu1 %2474  ;;  %v2473_v1 = vpop.permute.xlu0 %2472 }
 0x330   : > { %4608 = vmatpush1.bf16.msra.mxu1 %v1401_v5  ;;  %v2520_v60 = vsel %vm10590_vm7, %v2473_v1, %v8538_v19 }
 0x331   : > { %1596 = vrot.lane.b32.xlu1 %v8109_v7, %s10588_s16  ;;  %4351 = vmatprep.subr.bf16.mxu0 %v2520_v60 }
 0x332   : > { %3034 = vrot.lane.b32.xlu0 %v8103_v38, %s10624_s26 }
 0x333   : > { %v2489_v17 = vpop.permute.xlu1 %2488 }
 0x334   : > { %v2471_v26 = vpop.permute.xlu0 %2470 }
 0x335   : > { %v2519_v4 = vsel %vm10590_vm7, %v2471_v26, %v2473_v1  ;;  %3030 = vrot.lane.b32.xlu1 %v8459_v31, %s10624_s26 }
 0x336   : > { %1598 = vrot.lane.b32.xlu0 %v8330_v58, %s10588_s16  ;;  %4352 = vmatpush1.bf16.msra.mxu0 %v2519_v4 }
 0x337   : > { %v2487_v54 = vpop.permute.xlu1 %2486 }
 0x338   : > { %v2526_v56 = vsel %vm10590_vm7, %v2487_v54, %v2489_v17  ;;  %v8552_v57 = vpop.permute.xlu0 %2490 }
 0x339   : > { %3050 = vrot.lane.b32.xlu1 %v8109_v7, %s10624_s26  ;;  %v2527_v5 = vsel %vm10590_vm7, %v2489_v17, %v8552_v57 }
 0x33a   : > { %3048 = vrot.lane.b32.xlu0 %v8452_v8, %s10624_s26  ;;  %4353 = vmatprep.subr.bf16.mxu0 %v2527_v5 }
 0x33b   : > { %4354 = vmatpush1.bf16.msra.mxu0 %v2526_v56  ;;  %v8560_v1 = vpop.permute.xlu1 %2506 }
 0x33c   : > { %v2505_v60 = vpop.permute.xlu0 %2504 }
 0x33d   : > { %1614 = vrot.lane.b32.xlu1 %v8358_v37, %s10588_s16  ;;  %v2534_v26 = vsel %vm10590_vm7, %v2505_v60, %v8560_v1 }
 0x33e   : > { %1612 = vrot.lane.b32.xlu0 %v8131_v23, %s10588_s16  ;;  %4355 = vmatprep.subr.bf16.mxu0 %v2534_v26  ;;  %s6782_s16 = smov 35  }
 0x33f   : > { %v2585_v4 = vpop.permute.xlu1 %2584 }
 0x340   : > { %v2503_v17 = vpop.permute.xlu0 %2502 }
 0x341   : > { %v2533_v54 = vsel %vm10590_vm7, %v2503_v17, %v2505_v60  ;;  %3064 = vrot.lane.b32.xlu1 %v6482_v47, %s10624_s26  ;;  %vm2742_vm7 = vcmask 375808  }
 0x342   : > { %3046 = vrot.lane.b32.xlu0 %v8484_v52, %s10624_s26  ;;  %4356 = vmatpush1.bf16.msra.mxu0 %v2533_v54 }
 0x343   : > { %v2583_v56 = vpop.permute.xlu1 %2582 }
 0x344   : > { %v2631_v5 = vsel %vm10593_vm6, %v2583_v56, %v2585_v4  ;;  %v8574_v12 = vpop.permute.xlu0 %2586 }
 0x345   : > { %1692 = vrot.lane.b32.xlu1 %v8103_v38, %s6767_s18  ;;  %v2632_v26 = vsel %vm10593_vm6, %v2585_v4, %v8574_v12 }
 0x346   : > { %3066 = vrot.lane.b32.xlu0 %v8131_v23, %s10624_s26  ;;  %4357 = vmatprep.subr.bf16.mxu0 %v2632_v26 }
 0x347   : > { %4358 = vmatpush1.bf16.msra.mxu0 %v2631_v5  ;;  %v8582_v60 = vpop.permute.xlu1 %2602 }
 0x348   : > { %v2601_v17 = vpop.permute.xlu0 %2600 }
 0x349   : > { %3062 = vrot.lane.b32.xlu1 %v8531_v2, %s10624_s26  ;;  %v2639_v54 = vsel %vm10593_vm6, %v2601_v17, %v8582_v60 }
 0x34a   : > { %1694 = vrot.lane.b32.xlu0 %v8409_v9, %s6767_s18  ;;  %4359 = vmatprep.subr.bf16.mxu0 %v2639_v54 }
 0x34b   : > { %v2617_v56 = vpop.permute.xlu1 %2616 }
 0x34c   : > { %v2599_v4 = vpop.permute.xlu0 %2598 }
 0x34d   : > { %v2638_v16 = vsel %vm10593_vm6, %v2599_v4, %v2601_v17  ;;  %3146 = vrot.lane.b32.xlu1 %v8103_v38, %s6782_s16 }
 0x34e   : > { %3144 = vrot.lane.b32.xlu0 %v8423_v46, %s6782_s16  ;;  %4360 = vmatpush1.bf16.msra.mxu0 %v2638_v16 }
 0x34f   : > { %v2615_v5 = vpop.permute.xlu1 %2614 }
 0x350   : > { %v2645_v26 = vsel %vm10593_vm6, %v2615_v5, %v2617_v56  ;;  %v8596_v10 = vpop.permute.xlu0 %2618 }
 0x351   : > { %1710 = vrot.lane.b32.xlu1 %v8330_v58, %s6767_s18  ;;  %v2646_v54 = vsel %vm10593_vm6, %v2617_v56, %v8596_v10  ;;  %vm2854_vm6 = vcmask 367616  }
 0x352   : > { %1708 = vrot.lane.b32.xlu0 %v8109_v7, %s6767_s18  ;;  %4361 = vmatprep.subr.bf16.mxu0 %v2646_v54 }
 0x353   : > { %4362 = vmatpush1.bf16.msra.mxu0 %v2645_v26  ;;  %v8604_v17 = vpop.permute.xlu1 %2698  ;;  %v6440_v26 = vld [vmem:[#allocation3 + $0x18] ss:$44 sps:$4 sm:$0xff]  }
 0x354   : > { %10858 = vst [vmem:[#allocation46_spill] sm:$0xff] %v8604_v17  ;;  %v2697_v16 = vpop.permute.xlu0 %2696 }
 0x355   : > { %3160 = vrot.lane.b32.xlu1 %v8452_v8, %s6782_s16  ;;  %v2744_v4 = vsel %vm2742_vm7, %v2697_v16, %v8604_v17 }
 0x356   : > { %3142 = vrot.lane.b32.xlu0 %v8459_v31, %s6782_s16  ;;  %4363 = vmatprep.subr.bf16.mxu0 %v2744_v4 }
 0x357   : > { %v2713_v56 = vpop.permute.xlu1 %2712 }
 0x358   : > { %v2695_v5 = vpop.permute.xlu0 %2694 }
 0x359   : > { %v2743_v55 = vsel %vm2742_vm7, %v2695_v5, %v2697_v16  ;;  %1724 = vrot.lane.b32.xlu1 %v8131_v23, %s6767_s18 }
 0x35a   : > { %3162 = vrot.lane.b32.xlu0 %v8109_v7, %s6782_s16  ;;  %4364 = vmatpush1.bf16.msra.mxu0 %v2743_v55 }
 0x35b   : > { %v2711_v54 = vpop.permute.xlu1 %2710 }
 0x35c   : > { %v2750_v21 = vsel %vm2742_vm7, %v2711_v54, %v2713_v56  ;;  %v8618_v17 = vpop.permute.xlu0 %2714 }
 0x35d   : > { %10859 = vst [vmem:[#allocation53_spill] sm:$0xff] %v8618_v17  ;;  %3158 = vrot.lane.b32.xlu1 %v8484_v52, %s6782_s16  ;;  %v2751_v4 = vsel %vm2742_vm7, %v2713_v56, %v8618_v17  ;;  %4366 = vmatmul.mubr.bf16.vlgmr.msra.gmra.mrb[0].mxu0 %v6440_v26  ;;  %v6443_v26 = vld [vmem:[#allocation3 + $0x74] ss:$44 sps:$4 sm:$0xff]   ;;  %v6445_v17 = vld [vmem:[#allocation3 + $0x70] ss:$44 sps:$4 sm:$0xff]  }
 0x35e   : > { %1726 = vrot.lane.b32.xlu0 %v8358_v37, %s6767_s18  ;;  %4396 = vmatprep.subr.bf16.mxu0 %v2751_v4 }
 0x35f   : > { %4397 = vmatpush1.bf16.msra.mxu0 %v2750_v21  ;;  %v8626_v16 = vpop.permute.xlu1 %2730  ;;  %4375 = vmatprep.mubr.bf16.mxu0 %v6443_v26  ;;  %v6448_v26 = vld [vmem:[#allocation3 + $0xc8] ss:$44 sps:$4 sm:$0xff]  }
 0x360   : > { %v2729_v55 = vpop.permute.xlu0 %2728 }
 0x361   : > { %3178 = vrot.lane.b32.xlu1 %v8131_v23, %s6782_s16  ;;  %v2758_v5 = vsel %vm2742_vm7, %v2729_v55, %v8626_v16 }
 0x362   : > { %3176 = vrot.lane.b32.xlu0 %v6482_v47, %s6782_s16  ;;  %4398 = vmatprep.subr.bf16.mxu0 %v2758_v5  ;;  %v6446_v5 = vld [vmem:[#allocation3 + $0xcc] ss:$44 sps:$4 sm:$0xff]  }
 0x363   : > { %v2809_v54 = vpop.permute.xlu1 %2808 }
 0x364   : > { %v2727_v56 = vpop.permute.xlu0 %2726 }
 0x365   : > { %v2757_v59 = vsel %vm2742_vm7, %v2727_v56, %v2729_v55  ;;  %1806 = vrot.lane.b32.xlu1 %v8409_v9, %s6770_s1  ;;  %4376 = vmatmul.mubr.bf16.gmra.mrb[4].mxu0 %v6445_v17 }
 0x366   : > { %1804 = vrot.lane.b32.xlu0 %v8103_v38, %s6770_s1  ;;  %4399 = vmatpush1.bf16.msra.mxu0 %v2757_v59 }
 0x367   : > { %v1373_v21 = vpop.permute.xlu1 %1372  ;;  %4385 = vmatprep.mubr.bf16.mxu0 %v6446_v5 }
 0x368   : > { %v8638_v4 = vpop.permute.xlu0 %2810 }
 0x369   : > { %3256 = vrot.lane.b32.xlu1 %v8423_v46, %s6769_s27  ;;  %v2856_v47 = vsel %vm2854_vm6, %v2809_v54, %v8638_v4 }
 0x36a   : > { %3174 = vrot.lane.b32.xlu0 %v8531_v2, %s6782_s16  ;;  %4400 = vmatprep.subr.bf16.mxu0 %v2856_v47  ;;  %v10861_v2 = vld [vmem:[#allocation125_spill] sm:$0xff] }
 0x36b   : > { %v2807_v55 = vpop.permute.xlu1 %2806  ;;  %v1408_v17 = vsel %vm10596_vm8, %v10861_v2, %v1373_v21 }
 0x36c   : > { %v2855_v59 = vsel %vm2854_vm6, %v2807_v55, %v2809_v54  ;;  %v8647_v56 = vpop.permute.xlu0 %1374 }
 0x36d   : > { %10860 = vst [vmem:[#allocation50_spill] sm:$0xff] %v8647_v56  ;;  %1820 = vrot.lane.b32.xlu1 %v8109_v7, %s6770_s1  ;;  %4401 = vmatpush1.bf16.msra.mxu0 %v2855_v59  ;;  %v1409_v46 = vsel %vm10596_vm8, %v1373_v21, %v8647_v56 }
 0x36e   : > { %3258 = vrot.lane.b32.xlu0 %v8103_v38, %s6769_s27  ;;  %4609 = vmatprep.subr.bf16.mxu1 %v1409_v46  ;;  %v6451_v46 = vld [vmem:[#allocation3 + $0x24] ss:$44 sps:$4 sm:$0xff]  }
 0x36f   : > { %4610 = vmatpush1.bf16.msra.mxu1 %v1408_v17  ;;  %v8657_v47 = vpop.permute.xlu1 %2826  ;;  %4386 = vmatmul.mubr.bf16.gmra.mrb[8].mxu0 %v6448_v26  ;;  %v10863_v26 = vld [vmem:[#allocation126_spill] sm:$0xff] }
 0x370   : > { %v2825_v54 = vpop.permute.xlu0 %2824  ;;  %4428 = vmatprep.mubr.bf16.mxu0 %v6451_v46 }
 0x371   : > { %3254 = vrot.lane.b32.xlu1 %v8459_v31, %s6769_s27  ;;  %v2863_v55 = vsel %vm2854_vm6, %v2825_v54, %v8657_v47 }
 0x372   : > { %1822 = vrot.lane.b32.xlu0 %v8330_v58, %s6770_s1  ;;  %4402 = vmatprep.subr.bf16.mxu0 %v2863_v55 }
 0x373   : > { %v8665_v59 = vpop.permute.xlu1 %1390 }
 0x374   : > { %10862 = vst [vmem:[#allocation51_spill] sm:$0xff] %v8665_v59  ;;  %v1389_v21 = vpop.permute.xlu0 %1388 }
 0x375   : > { %3274 = vrot.lane.b32.xlu1 %v8109_v7, %s6769_s27  ;;  %v1416_v5 = vsel %vm10596_vm8, %v1389_v21, %v8665_v59  ;;  %v1415_v31 = vsel %vm10596_vm8, %v10863_v26, %v1389_v21  ;;  %vm2966_vm8 = vcmask 359424  }
 0x376   : > { %3272 = vrot.lane.b32.xlu0 %v8452_v8, %s6769_s27  ;;  %4611 = vmatprep.subr.bf16.mxu1 %v1416_v5  ;;  %v10865_v5 = vld [vmem:[#allocation127_spill] sm:$0xff] }
 0x377   : > { %4612 = vmatpush1.bf16.msra.mxu1 %v1415_v31  ;;  %v2841_v2 = vpop.permute.xlu1 %2840 }
 0x378   : > { %v2823_v17 = vpop.permute.xlu0 %2822 }
 0x379   : > { %v2862_v55 = vsel %vm2854_vm6, %v2823_v17, %v2825_v54  ;;  %1838 = vrot.lane.b32.xlu1 %v8358_v37, %s6770_s1 }
 0x37a   : > { %1836 = vrot.lane.b32.xlu0 %v8131_v23, %s6770_s1  ;;  %4403 = vmatpush1.bf16.msra.mxu0 %v2862_v55 }
 0x37b   : > { %v1469_v59 = vpop.permute.xlu1 %1468 }
 0x37c   : > { %v8680_v56 = vpop.permute.xlu0 %2842 }
 0x37d   : > { %1916 = vrot.lane.b32.xlu1 %v8103_v38, %s6771_s29  ;;  %v2870_v8 = vsel %vm2854_vm6, %v2841_v2, %v8680_v56 }
 0x37e   : > { %3270 = vrot.lane.b32.xlu0 %v8484_v52, %s6769_s27  ;;  %4404 = vmatprep.subr.bf16.mxu0 %v2870_v8  ;;  %v1513_v52 = vsel %vm10601_vm9, %v10865_v5, %v1469_v59  ;;  %v10867_v8 = vld [vmem:[#allocation128_spill] sm:$0xff] }
 0x37f   : > { %v2839_v54 = vpop.permute.xlu1 %2838  ;;  %v6484_v5 = vld [vmem:[%s7017_s25 + $0x44] ss:$28 sps:$4 sm:$0xff]  }
 0x380   : > { %v2869_v46 = vsel %vm2854_vm6, %v2839_v54, %v2841_v2  ;;  %v8689_v21 = vpop.permute.xlu0 %1470 }
 0x381   : > { %10864 = vst [vmem:[#allocation59_spill] sm:$0xff] %v8689_v21  ;;  %1932 = vrot.lane.b32.xlu1 %v8109_v7, %s6771_s29  ;;  %4405 = vmatpush1.bf16.msra.mxu0 %v2869_v46  ;;  %v1514_v38 = vsel %vm10601_vm9, %v1469_v59, %v8689_v21  ;;  %v6483_v59 = vld [vmem:[%s7017_s25 + $0xc] ss:$28 sps:$4 sm:$0xff]  }
 0x382   : > { %1918 = vrot.lane.b32.xlu0 %v8409_v9, %s6771_s29  ;;  %4613 = vmatprep.subr.bf16.mxu1 %v1514_v38 }
 0x383   : > { %4614 = vmatpush1.bf16.msra.mxu1 %v1513_v52  ;;  %v8699_v26 = vpop.permute.xlu1 %2922 }
 0x384   : > { %v2921_v31 = vpop.permute.xlu0 %2920 }
 0x385   : > { %1948 = vrot.lane.b32.xlu1 %v8131_v23, %s6771_s29  ;;  %v2968_v7 = vsel %vm2966_vm8, %v2921_v31, %v8699_v26 }
 0x386   : > { %1934 = vrot.lane.b32.xlu0 %v8330_v58, %s6771_s29  ;;  %4406 = vmatprep.subr.bf16.mxu0 %v2968_v7  ;;  %v6485_v7 = vld [vmem:[#allocation3 + $0x8] ss:$44 sps:$4 sm:$0xff]  }
 0x387   : > { %v8707_v2 = vpop.permute.xlu1 %1486 }
 0x388   : > { %10866 = vst [vmem:[#allocation56_spill] sm:$0xff] %v8707_v2  ;;  %v1485_v17 = vpop.permute.xlu0 %1484 }
 0x389   : > { %2028 = vrot.lane.b32.xlu1 %v6483_v59, %s6772_s19  ;;  %v1521_v55 = vsel %vm10601_vm9, %v1485_v17, %v8707_v2  ;;  %v1520_v23 = vsel %vm10601_vm9, %v10867_v8, %v1485_v17  ;;  %v6486_v8 = vld [vmem:[#allocation3 + $0x64] ss:$44 sps:$4 sm:$0xff]  }
 0x38a   : > { %1950 = vrot.lane.b32.xlu0 %v8358_v37, %s6771_s29  ;;  %4615 = vmatprep.subr.bf16.mxu1 %v1521_v55  ;;  %v6487_v55 = vld [vmem:[%s7017_s25 + $0x7c] ss:$28 sps:$4 sm:$0xff]  }
 0x38b   : > { %4616 = vmatpush1.bf16.msra.mxu1 %v1520_v23  ;;  %v2937_v54 = vpop.permute.xlu1 %2936 }
 0x38c   : > { %v2919_v46 = vpop.permute.xlu0 %2918 }
 0x38d   : > { %v2967_v38 = vsel %vm2966_vm8, %v2919_v46, %v2921_v31  ;;  %2044 = vrot.lane.b32.xlu1 %v6484_v5, %s6772_s19 }
 0x38e   : > { %2030 = vrot.lane.b32.xlu0 %v8409_v9, %s6772_s19  ;;  %4407 = vmatpush1.bf16.msra.mxu0 %v2967_v38 }
 0x38f   : > { %v1501_v52 = vpop.permute.xlu1 %1500  ;;  %4618 = vmatmul.mubr.bf16.vlgmr.msra.gmra.mrb[24].mxu1 %v6485_v7 }
 0x390   : > { %v8722_v17 = vpop.permute.xlu0 %2938  ;;  %4627 = vmatprep.mubr.bf16.mxu1 %v6486_v8  ;;  %v10869_v8 = vld [vmem:[#allocation129_spill] sm:$0xff] }
 0x391   : > { %2060 = vrot.lane.b32.xlu1 %v6487_v55, %s6772_s19  ;;  %v2975_v31 = vsel %vm2966_vm8, %v2937_v54, %v8722_v17  ;;  %v1527_v2 = vsel %vm10601_vm9, %v10869_v8, %v1501_v52 }
 0x392   : > { %2046 = vrot.lane.b32.xlu0 %v8330_v58, %s6772_s19  ;;  %4408 = vmatprep.subr.bf16.mxu0 %v2975_v31 }
 0x393   : > { %v2935_v23 = vpop.permute.xlu1 %2934 }
 0x394   : > { %v2974_v46 = vsel %vm2966_vm8, %v2935_v23, %v2937_v54  ;;  %v8731_v38 = vpop.permute.xlu0 %1502  ;;  %v6488_v54 = vld [vmem:[#allocation3 + $0x60] ss:$44 sps:$4 sm:$0xff]  }
 0x395   : > { %10868 = vst [vmem:[#allocation57_spill] sm:$0xff] %v8731_v38  ;;  %2140 = vrot.lane.b32.xlu1 %v6483_v59, %s6773_s23  ;;  %4409 = vmatpush1.bf16.msra.mxu0 %v2974_v46  ;;  %v1528_v7 = vsel %vm10601_vm9, %v1501_v52, %v8731_v38  ;;  %v6489_v46 = vld [vmem:[#allocation3 + $0xbc] ss:$44 sps:$4 sm:$0xff]   ;;  %v6490_v38 = vld [vmem:[#allocation3 + $0xb8] ss:$44 sps:$4 sm:$0xff]   ;;  %vm3078_vm9 = vcmask 293888  }
 0x396   : > { %2062 = vrot.lane.b32.xlu0 %v8358_v37, %s6772_s19  ;;  %4648 = vmatprep.subr.bf16.mxu1 %v1528_v7 }
 0x397   : > { %4649 = vmatpush1.bf16.msra.mxu1 %v1527_v2  ;;  %v8740_v31 = vpop.permute.xlu1 %2954 }
 0x398   : > { %10870 = vst [vmem:[#allocation65_spill] sm:$0xff] %v8740_v31  ;;  %v2953_v21 = vpop.permute.xlu0 %2952  ;;  %4628 = vmatmul.mubr.bf16.gmra.mrb[28].mxu1 %v6488_v54 }
 0x399   : > { %2156 = vrot.lane.b32.xlu1 %v6484_v5, %s6773_s23  ;;  %v2982_v23 = vsel %vm2966_vm8, %v2953_v21, %v8740_v31  ;;  %4637 = vmatprep.mubr.bf16.mxu1 %v6489_v46  ;;  %v6491_v31 = vld [vmem:[#allocation3 + $0x14] ss:$44 sps:$4 sm:$0xff]  }
 0x39a   : > { %2142 = vrot.lane.b32.xlu0 %v8409_v9, %s6773_s23  ;;  %4410 = vmatprep.subr.bf16.mxu0 %v2982_v23 }
 0x39b   : > { %v8747_v7 = vpop.permute.xlu1 %1582 }
 0x39c   : > { %10871 = vst [vmem:[#allocation62_spill] sm:$0xff] %v8747_v7  ;;  %v1581_v52 = vpop.permute.xlu0 %1580 }
 0x39d   : > { %2172 = vrot.lane.b32.xlu1 %v6487_v55, %s6773_s23  ;;  %v1626_v2 = vsel %vm10605_vm10, %v1581_v52, %v8747_v7  ;;  %v1625_v8 = vsel %vm10605_vm10, %v8066_v22, %v1581_v52 }
 0x39e   : > { %2158 = vrot.lane.b32.xlu0 %v8330_v58, %s6773_s23  ;;  %4650 = vmatprep.subr.bf16.mxu1 %v1626_v2 }
 0x39f   : > { %4651 = vmatpush1.bf16.msra.mxu1 %v1625_v8  ;;  %v3033_v54 = vpop.permute.xlu1 %3032 }
 0x3a0   : > { %v2951_v46 = vpop.permute.xlu0 %2950  ;;  %4638 = vmatmul.mubr.bf16.gmra.mrb[32].mxu1 %v6490_v38 }
 0x3a1   : > { %v2981_v23 = vsel %vm2966_vm8, %v2951_v46, %v2953_v21  ;;  %2252 = vrot.lane.b32.xlu1 %v6483_v59, %s6774_s5  ;;  %4680 = vmatprep.mubr.bf16.mxu1 %v6491_v31 }
 0x3a2   : > { %2174 = vrot.lane.b32.xlu0 %v8358_v37, %s6773_s23  ;;  %4411 = vmatpush1.bf16.msra.mxu0 %v2981_v23 }
 0x3a3   : > { %v1597_v22 = vpop.permute.xlu1 %1596 }
 0x3a4   : > { %v8760_v52 = vpop.permute.xlu0 %3034 }
 0x3a5   : > { %2268 = vrot.lane.b32.xlu1 %v6484_v5, %s6774_s5  ;;  %v3080_v2 = vsel %vm3078_vm9, %v3033_v54, %v8760_v52  ;;  %v1632_v5 = vsel %vm10605_vm10, %v8074_v30, %v1597_v22 }
 0x3a6   : > { %2254 = vrot.lane.b32.xlu0 %v8409_v9, %s6774_s5  ;;  %4412 = vmatprep.subr.bf16.mxu0 %v3080_v2 }
 0x3a7   : > { %v3031_v21 = vpop.permute.xlu1 %3030 }
 0x3a8   : > { %v3079_v59 = vsel %vm3078_vm9, %v3031_v21, %v3033_v54  ;;  %v8768_v38 = vpop.permute.xlu0 %1598  ;;  %v8794_v21 = vld [vmem:[%s7017_s25 + $0x14] ss:$28 sps:$4 sm:$0xff]  }
 0x3a9   : > { %10872 = vst [vmem:[#allocation63_spill] sm:$0xff] %v8768_v38  ;;  %2284 = vrot.lane.b32.xlu1 %v6487_v55, %s6774_s5  ;;  %4413 = vmatpush1.bf16.msra.mxu0 %v3079_v59  ;;  %v1633_v31 = vsel %vm10605_vm10, %v1597_v22, %v8768_v38  ;;  %v10874_v22 = vld [vmem:[#allocation130_spill] sm:$0xff]  ;;  %v10877_v38 = vld [vmem:[#allocation131_spill] sm:$0xff] }
 0x3aa   : > { %2270 = vrot.lane.b32.xlu0 %v8330_v58, %s6774_s5  ;;  %4652 = vmatprep.subr.bf16.mxu1 %v1633_v31 }
 0x3ab   : > { %4653 = vmatpush1.bf16.msra.mxu1 %v1632_v5  ;;  %v8777_v8 = vpop.permute.xlu1 %3050 }
 0x3ac   : > { %v3049_v54 = vpop.permute.xlu0 %3048 }
 0x3ad   : > { %2364 = vrot.lane.b32.xlu1 %v8409_v9, %s6775_s8  ;;  %v3087_v55 = vsel %vm3078_vm9, %v3049_v54, %v8777_v8 }
 0x3ae   : > { %2286 = vrot.lane.b32.xlu0 %v8358_v37, %s6774_s5  ;;  %4414 = vmatprep.subr.bf16.mxu0 %v3087_v55  ;;  %v8802_v55 = vld [vmem:[%s7017_s25 + $0x4c] ss:$28 sps:$4 sm:$0xff]  }
 0x3af   : > { %v8785_v46 = vpop.permute.xlu1 %1614 }
 0x3b0   : > { %10873 = vst [vmem:[#allocation68_spill] sm:$0xff] %v8785_v46  ;;  %v1613_v23 = vpop.permute.xlu0 %1612 }
 0x3b1   : > { %2380 = vrot.lane.b32.xlu1 %v8330_v58, %s6775_s8  ;;  %v1640_v30 = vsel %vm10605_vm10, %v1613_v23, %v8785_v46  ;;  %v1639_v2 = vsel %vm10605_vm10, %v10874_v22, %v1613_v23  ;;  %vm3190_vm10 = vcmask 285696  }
 0x3b2   : > { %2366 = vrot.lane.b32.xlu0 %v8794_v21, %s6775_s8  ;;  %4654 = vmatprep.subr.bf16.mxu1 %v1640_v30 }
 0x3b3   : > { %4655 = vmatpush1.bf16.msra.mxu1 %v1639_v2  ;;  %v3065_v59 = vpop.permute.xlu1 %3064  ;;  %v8813_v2 = vld [vmem:[%s7017_s25 + $0x84] ss:$28 sps:$4 sm:$0xff]  }
 0x3b4   : > { %v3047_v31 = vpop.permute.xlu0 %3046 }
 0x3b5   : > { %v3086_v5 = vsel %vm3078_vm9, %v3047_v31, %v3049_v54  ;;  %2396 = vrot.lane.b32.xlu1 %v8358_v37, %s6775_s8 }
 0x3b6   : > { %2382 = vrot.lane.b32.xlu0 %v8802_v55, %s6775_s8  ;;  %4415 = vmatpush1.bf16.msra.mxu0 %v3086_v5 }
 0x3b7   : > { %v1693_v23 = vpop.permute.xlu1 %1692 }
 0x3b8   : > { %v8806_v22 = vpop.permute.xlu0 %3066  ;;  %v1737_v7 = vsel %vm1734_vm11, %v10877_v38, %v1693_v23  ;;  %v10880_v38 = vld [vmem:[#allocation132_spill] sm:$0xff] }
 0x3b9   : > { %10875 = vst [vmem:[#allocation69_spill] sm:$0xff] %v8806_v22  ;;  %2476 = vrot.lane.b32.xlu1 %v8409_v9, %s6776_s9  ;;  %v3094_v30 = vsel %vm3078_vm9, %v3065_v59, %v8806_v22 }
 0x3ba   : > { %2398 = vrot.lane.b32.xlu0 %v8813_v2, %s6775_s8  ;;  %4416 = vmatprep.subr.bf16.mxu0 %v3094_v30 }
 0x3bb   : > { %v3063_v54 = vpop.permute.xlu1 %3062 }
 0x3bc   : > { %v3093_v31 = vsel %vm3078_vm9, %v3063_v54, %v3065_v59  ;;  %v8818_v46 = vpop.permute.xlu0 %1694 }
 0x3bd   : > { %10876 = vst [vmem:[#allocation79_spill] sm:$0xff] %v8818_v46  ;;  %2492 = vrot.lane.b32.xlu1 %v8330_v58, %s6776_s9  ;;  %4417 = vmatpush1.bf16.msra.mxu0 %v3093_v31  ;;  %v1738_v5 = vsel %vm1734_vm11, %v1693_v23, %v8818_v46 }
 0x3be   : > { %2478 = vrot.lane.b32.xlu0 %v8794_v21, %s6776_s9  ;;  %4656 = vmatprep.subr.bf16.mxu1 %v1738_v5 }
 0x3bf   : > { %4657 = vmatpush1.bf16.msra.mxu1 %v1737_v7  ;;  %v8828_v30 = vpop.permute.xlu1 %3146 }
 0x3c0   : > { %10878 = vst [vmem:[#allocation80_spill] sm:$0xff] %v8828_v30  ;;  %v3145_v59 = vpop.permute.xlu0 %3144 }
 0x3c1   : > { %2508 = vrot.lane.b32.xlu1 %v8358_v37, %s6776_s9  ;;  %v3192_v54 = vsel %vm3190_vm10, %v3145_v59, %v8828_v30 }
 0x3c2   : > { %2494 = vrot.lane.b32.xlu0 %v8802_v55, %s6776_s9  ;;  %4418 = vmatprep.subr.bf16.mxu0 %v3192_v54 }
 0x3c3   : > { %v8836_v31 = vpop.permute.xlu1 %1710 }
 0x3c4   : > { %10879 = vst [vmem:[#allocation100_spill] sm:$0xff] %v8836_v31  ;;  %v1709_v5 = vpop.permute.xlu0 %1708 }
 0x3c5   : > { %2588 = vrot.lane.b32.xlu1 %v8409_v9, %s6777_s7  ;;  %v1745_v7 = vsel %vm1734_vm11, %v1709_v5, %v8836_v31  ;;  %v1744_v23 = vsel %vm1734_vm11, %v10880_v38, %v1709_v5 }
 0x3c6   : > { %2510 = vrot.lane.b32.xlu0 %v8813_v2, %s6776_s9  ;;  %4658 = vmatprep.subr.bf16.mxu1 %v1745_v7 }
 0x3c7   : > { %4659 = vmatpush1.bf16.msra.mxu1 %v1744_v23  ;;  %v3161_v46 = vpop.permute.xlu1 %3160  ;;  %v10883_v23 = vld [vmem:[#allocation134_spill] sm:$0xff] }
 0x3c8   : > { %v3143_v30 = vpop.permute.xlu0 %3142 }
 0x3c9   : > { %v3191_v54 = vsel %vm3190_vm10, %v3143_v30, %v3145_v59  ;;  %2604 = vrot.lane.b32.xlu1 %v8330_v58, %s6777_s7 }
 0x3ca   : > { %2590 = vrot.lane.b32.xlu0 %v8794_v21, %s6777_s7  ;;  %4419 = vmatpush1.bf16.msra.mxu0 %v3191_v54 }
 0x3cb   : > { %v1725_v31 = vpop.permute.xlu1 %1724 }
 0x3cc   : > { %v8851_v22 = vpop.permute.xlu0 %3162  ;;  %v1751_v54 = vsel %vm1734_vm11, %v10883_v23, %v1725_v31  ;;  %v10886_v23 = vld [vmem:[#allocation135_spill] sm:$0xff] }
 0x3cd   : > { %10881 = vst [vmem:[#allocation84_spill] sm:$0xff] %v8851_v22  ;;  %2620 = vrot.lane.b32.xlu1 %v8358_v37, %s6777_s7  ;;  %v3199_v5 = vsel %vm3190_vm10, %v3161_v46, %v8851_v22 }
 0x3ce   : > { %2606 = vrot.lane.b32.xlu0 %v8802_v55, %s6777_s7  ;;  %4420 = vmatprep.subr.bf16.mxu0 %v3199_v5 }
 0x3cf   : > { %v3159_v30 = vpop.permute.xlu1 %3158 }
 0x3d0   : > { %v3198_v59 = vsel %vm3190_vm10, %v3159_v30, %v3161_v46  ;;  %v8860_v7 = vpop.permute.xlu0 %1726 }
 0x3d1   : > { %10882 = vst [vmem:[#allocation85_spill] sm:$0xff] %v8860_v7  ;;  %2700 = vrot.lane.b32.xlu1 %v8409_v9, %s6778_s10  ;;  %4421 = vmatpush1.bf16.msra.mxu0 %v3198_v59  ;;  %v1752_v38 = vsel %vm1734_vm11, %v1725_v31, %v8860_v7 }
 0x3d2   : > { %2622 = vrot.lane.b32.xlu0 %v8813_v2, %s6777_s7  ;;  %4660 = vmatprep.subr.bf16.mxu1 %v1752_v38 }
 0x3d3   : > { %4661 = vmatpush1.bf16.msra.mxu1 %v1751_v54  ;;  %v8870_v5 = vpop.permute.xlu1 %3178 }
 0x3d4   : > { %10884 = vst [vmem:[#allocation90_spill] sm:$0xff] %v8870_v5  ;;  %v3177_v46 = vpop.permute.xlu0 %3176 }
 0x3d5   : > { %2716 = vrot.lane.b32.xlu1 %v8330_v58, %s6778_s10  ;;  %v3206_v30 = vsel %vm3190_vm10, %v3177_v46, %v8870_v5 }
 0x3d6   : > { %2702 = vrot.lane.b32.xlu0 %v8794_v21, %s6778_s10  ;;  %4422 = vmatprep.subr.bf16.mxu0 %v3206_v30 }
 0x3d7   : > { %v8878_v59 = vpop.permute.xlu1 %1806 }
 0x3d8   : > { %10885 = vst [vmem:[#allocation91_spill] sm:$0xff] %v8878_v59  ;;  %v1805_v38 = vpop.permute.xlu0 %1804 }
 0x3d9   : > { %2732 = vrot.lane.b32.xlu1 %v8358_v37, %s6778_s10  ;;  %v1850_v31 = vsel %vm1846_vm14, %v1805_v38, %v8878_v59  ;;  %v1849_v54 = vsel %vm1846_vm14, %v10886_v23, %v1805_v38 }
 0x3da   : > { %2718 = vrot.lane.b32.xlu0 %v8802_v55, %s6778_s10  ;;  %4662 = vmatprep.subr.bf16.mxu1 %v1850_v31 }
 0x3db   : > { %4663 = vmatpush1.bf16.msra.mxu1 %v1849_v54  ;;  %v3257_v7 = vpop.permute.xlu1 %3256 }
 0x3dc   : > { %v3175_v5 = vpop.permute.xlu0 %3174 }
 0x3dd   : > { %v3205_v30 = vsel %vm3190_vm10, %v3175_v5, %v3177_v46  ;;  %2812 = vrot.lane.b32.xlu1 %v8409_v9, %s6779_s20 }
 0x3de   : > { %2734 = vrot.lane.b32.xlu0 %v8813_v2, %s6778_s10  ;;  %4423 = vmatpush1.bf16.msra.mxu0 %v3205_v30  ;;  %v8915_v30 = vld [vmem:[%s7017_s25 + $0x18] ss:$28 sps:$4 sm:$0xff]  }
 0x3df   : > { %v1821_v59 = vpop.permute.xlu1 %1820 }
 0x3e0   : > { %v8893_v22 = vpop.permute.xlu0 %3258  ;;  %v1856_v23 = vsel %vm1846_vm14, %v8176_v18, %v1821_v59 }
 0x3e1   : > { %10887 = vst [vmem:[#allocation96_spill] sm:$0xff] %v8893_v22  ;;  %2828 = vrot.lane.b32.xlu1 %v8330_v58, %s6779_s20  ;;  %v3304_v38 = vsel %vm3302_vm12, %v3257_v7, %v8893_v22 }
 0x3e2   : > { %2814 = vrot.lane.b32.xlu0 %v8794_v21, %s6779_s20  ;;  %4424 = vmatprep.subr.bf16.mxu0 %v3304_v38 }
 0x3e3   : > { %v3255_v5 = vpop.permute.xlu1 %3254 }
 0x3e4   : > { %v3303_v46 = vsel %vm3302_vm12, %v3255_v5, %v3257_v7  ;;  %v8902_v31 = vpop.permute.xlu0 %1822 }
 0x3e5   : > { %10888 = vst [vmem:[#allocation97_spill] sm:$0xff] %v8902_v31  ;;  %2844 = vrot.lane.b32.xlu1 %v8358_v37, %s6779_s20  ;;  %4425 = vmatpush1.bf16.msra.mxu0 %v3303_v46  ;;  %v1857_v58 = vsel %vm1846_vm14, %v1821_v59, %v8902_v31  ;;  %v6449_v31 = vld [vmem:[#allocation3 + $0x20] ss:$44 sps:$4 sm:$0xff]  }
 0x3e6   : > { %2830 = vrot.lane.b32.xlu0 %v8802_v55, %s6779_s20  ;;  %4664 = vmatprep.subr.bf16.mxu1 %v1857_v58 }
 0x3e7   : > { %4665 = vmatpush1.bf16.msra.mxu1 %v1856_v23  ;;  %v8912_v54 = vpop.permute.xlu1 %3274 }
 0x3e8   : > { %10889 = vst [vmem:[#allocation103_spill] sm:$0xff] %v8912_v54  ;;  %v3273_v7 = vpop.permute.xlu0 %3272 }
 0x3e9   : > { %1362 = vrot.lane.b32.xlu1 %v8915_v30, %s6764_s11  ;;  %v3311_v37 = vsel %vm3302_vm12, %v3273_v7, %v8912_v54 }
 0x3ea   : > { %2846 = vrot.lane.b32.xlu0 %v8813_v2, %s6779_s20  ;;  %4426 = vmatprep.subr.bf16.mxu0 %v3311_v37  ;;  %v8935_v37 = vld [vmem:[%s7017_s25 + $0x50] ss:$28 sps:$4 sm:$0xff]  }
 0x3eb   : > { %v8923_v38 = vpop.permute.xlu1 %1838 }
 0x3ec   : > { %10890 = vst [vmem:[#allocation104_spill] sm:$0xff] %v8923_v38  ;;  %v1837_v18 = vpop.permute.xlu0 %1836 }
 0x3ed   : > { %2926 = vrot.lane.b32.xlu1 %v8794_v21, %s6780_s22  ;;  %v1864_v59 = vsel %vm1846_vm14, %v1837_v18, %v8923_v38  ;;  %v1863_v5 = vsel %vm1846_vm14, %v8190_v63, %v1837_v18  ;;  %v8960_v38 = vld [vmem:[%s7017_s25 + $0x88] ss:$28 sps:$4 sm:$0xff]  }
 0x3ee   : > { %2924 = vrot.lane.b32.xlu0 %v8409_v9, %s6780_s22  ;;  %4666 = vmatprep.subr.bf16.mxu1 %v1864_v59  ;;  %v6452_v59 = vld [vmem:[#allocation3 + $0x7c] ss:$44 sps:$4 sm:$0xff]  }
 0x3ef   : > { %4667 = vmatpush1.bf16.msra.mxu1 %v1863_v5  ;;  %v1917_v46 = vpop.permute.xlu1 %1916  ;;  %v8949_v5 = vld [vmem:[%s7017_s25 + $0x48] ss:$28 sps:$4 sm:$0xff]  }
 0x3f0   : > { %v3271_v58 = vpop.permute.xlu0 %3270 }
 0x3f1   : > { %v3310_v23 = vsel %vm3302_vm12, %v3271_v58, %v3273_v7  ;;  %1378 = vrot.lane.b32.xlu1 %v8935_v37, %s6764_s11  ;;  %v1961_v58 = vsel %vm1958_vm13, %v8218_v13, %v1917_v46 }
 0x3f2   : > { %1376 = vrot.lane.b32.xlu0 %v8802_v55, %s6764_s11  ;;  %4427 = vmatpush1.bf16.msra.mxu0 %v3310_v23 }
 0x3f3   : > { %v1933_v63 = vpop.permute.xlu1 %1932  ;;  %4900 = vmatprep.subr.bf16.mxu0 %v8794_v21 }
 0x3f4   : > { %v8942_v18 = vpop.permute.xlu0 %1918  ;;  %v1968_v13 = vsel %vm1958_vm13, %v8232_v11, %v1933_v63 }
 0x3f5   : > { %10891 = vst [vmem:[#allocation109_spill] sm:$0xff] %v8942_v18  ;;  %4429 = vmatmul.mubr.bf16.vlgmr.msra.gmra.mrb[0].mxu0 %v6449_v31  ;;  %2942 = vrot.lane.b32.xlu1 %v8802_v55, %s6780_s22  ;;  %v1962_v7 = vsel %vm1958_vm13, %v1917_v46, %v8942_v18  ;;  %v6454_v18 = vld [vmem:[#allocation3 + $0x78] ss:$44 sps:$4 sm:$0xff]  }
 0x3f6   : > { %2940 = vrot.lane.b32.xlu0 %v8949_v5, %s6780_s22  ;;  %4668 = vmatprep.subr.bf16.mxu1 %v1962_v7 }
 0x3f7   : > { %4901 = vmatpush1.bf16.msra.mxu0 %v8409_v9  ;;  %4669 = vmatpush1.bf16.msra.mxu1 %v1961_v58  ;;  %v1949_v23 = vpop.permute.xlu1 %1948 }
 0x3f8   : > { %v8956_v31 = vpop.permute.xlu0 %1934  ;;  %4902 = vmatprep.subr.bf16.mxu0 %v8802_v55  ;;  %4438 = vmatprep.mubr.bf16.mxu0 %v6452_v59  ;;  %v6455_v59 = vld [vmem:[#allocation3 + $0xd4] ss:$44 sps:$4 sm:$0xff]   ;;  %v1975_v11 = vsel %vm1958_vm13, %v8258_v53, %v1949_v23  ;;  %v6457_v53 = vld [vmem:[#allocation3 + $0xd0] ss:$44 sps:$4 sm:$0xff]  }
 0x3f9   : > { %10892 = vst [vmem:[#allocation110_spill] sm:$0xff] %v8956_v31  ;;  %1394 = vrot.lane.b32.xlu1 %v8960_v38, %s6764_s11  ;;  %v1969_v7 = vsel %vm1958_vm13, %v1933_v63, %v8956_v31  ;;  %v10894_v63 = vld [vmem:[#allocation18_spill] sm:$0xff] }
 0x3fa   : > { %1392 = vrot.lane.b32.xlu0 %v8813_v2, %s6764_s11  ;;  %4670 = vmatprep.subr.bf16.mxu1 %v1969_v7  ;;  %v8979_v7 = vld [vmem:[%s7017_s25 + $0x80] ss:$28 sps:$4 sm:$0xff]  }
 0x3fb   : > { %4903 = vmatpush1.bf16.msra.mxu0 %v8949_v5  ;;  %4671 = vmatpush1.bf16.msra.mxu1 %v1968_v13  ;;  %v2029_v9 = vpop.permute.xlu1 %2028 }
 0x3fc   : > { %v8971_v46 = vpop.permute.xlu0 %1950  ;;  %4904 = vmatprep.subr.bf16.mxu0 %v8813_v2 }
 0x3fd   : > { %10893 = vst [vmem:[#allocation115_spill] sm:$0xff] %v8971_v46  ;;  %4439 = vmatmul.mubr.bf16.gmra.mrb[4].mxu0 %v6454_v18  ;;  %2958 = vrot.lane.b32.xlu1 %v8813_v2, %s6780_s22  ;;  %v1976_v58 = vsel %vm1958_vm13, %v1949_v23, %v8971_v46  ;;  %v10895_v18 = vld [vmem:[#allocation15_spill] sm:$0xff]  ;;  %v10897_v23 = vld [vmem:[#allocation16_spill] sm:$0xff] }
 0x3fe   : > { %2956 = vrot.lane.b32.xlu0 %v8979_v7, %s6780_s22  ;;  %4672 = vmatprep.subr.bf16.mxu1 %v1976_v58  ;;  %v508_v13 = vsel %vm10622_vm0, %v10895_v18, %v10894_v63  ;;  %v10899_v63 = vld [vmem:[#allocation19_spill] sm:$0xff] }
 0x3ff   : > { %4905 = vmatpush1.bf16.msra.mxu0 %v8979_v7  ;;  %4673 = vmatpush1.bf16.msra.mxu1 %v1975_v11  ;;  %v2045_v31 = vpop.permute.xlu1 %2044  ;;  %v507_v11 = vsel %vm10622_vm0, %v10897_v23, %v10895_v18 }
 0x400   : > { %4906 = vmatprep.subr.bf16.mxu0 %v508_v13  ;;  %v8989_v54 = vpop.permute.xlu0 %2030  ;;  %4448 = vmatprep.mubr.bf16.mxu0 %v6455_v59  ;;  %v2073_v13 = vsel %vm2070_vm15, %v8272_v3, %v2029_v9  ;;  %v10898_v59 = vld [vmem:[#allocation21_spill] sm:$0xff]  ;;  %v514_v3 = vsel %vm10622_vm0, %v7243_v41, %v10899_v63 }
 0x401   : > { %10896 = vst [vmem:[#allocation116_spill] sm:$0xff] %v8989_v54  ;;  %1474 = vrot.lane.b32.xlu1 %v8915_v30, %s6765_s21  ;;  %v2074_v58 = vsel %vm2070_vm15, %v2029_v9, %v8989_v54  ;;  %v515_v46 = vsel %vm10622_vm0, %v10899_v63, %v10898_v59  ;;  %v2080_v9 = vsel %vm2070_vm15, %v8298_v6, %v2045_v31  ;;  %v6501_v59 = vld [vmem:[#allocation3 + $0x4] ss:$44 sps:$4 sm:$0xff]   ;;  %v10903_v63 = vld [vmem:[#allocation27_spill] sm:$0xff] }
 0x402   : > { %1472 = vrot.lane.b32.xlu0 %v8794_v21, %s6765_s21  ;;  %4674 = vmatprep.subr.bf16.mxu1 %v2074_v58  ;;  %v9012_v58 = vld [vmem:[%s7017_s25 + $0x10] ss:$28 sps:$4 sm:$0xff]  }
 0x403   : > { %4907 = vmatpush1.bf16.msra.mxu0 %v507_v11  ;;  %4675 = vmatpush1.bf16.msra.mxu1 %v2073_v13  ;;  %v2061_v22 = vpop.permute.xlu1 %2060 }
 0x404   : > { %4908 = vmatprep.subr.bf16.mxu0 %v515_v46  ;;  %v9005_v54 = vpop.permute.xlu0 %2046  ;;  %v10900_v46 = vld [vmem:[#allocation24_spill] sm:$0xff] }
 0x405   : > { %4449 = vmatmul.mubr.bf16.gmra.mrb[8].mxu0 %v6457_v53  ;;  %3038 = vrot.lane.b32.xlu1 %v8794_v21, %s10624_s26  ;;  %v2081_v18 = vsel %vm2070_vm15, %v2045_v31, %v9005_v54  ;;  %v10901_v53 = vld [vmem:[#allocation22_spill] sm:$0xff]  ;;  %v2087_v31 = vsel %vm2070_vm15, %v8312_v28, %v2061_v22  ;;  %v6502_v28 = vld [vmem:[#allocation3 + $0x10] ss:$44 sps:$4 sm:$0xff]  }
 0x406   : > { %3036 = vrot.lane.b32.xlu0 %v9012_v58, %s10624_s26  ;;  %4676 = vmatprep.subr.bf16.mxu1 %v2081_v18  ;;  %v522_v23 = vsel %vm10622_vm0, %v10901_v53, %v10900_v46  ;;  %v521_v6 = vsel %vm10622_vm0, %v7274_v51, %v10901_v53  ;;  %v10906_v53 = vld [vmem:[#allocation30_spill] sm:$0xff]  ;;  %vm10914_vm0 = vcmask 965632   ;;  %v6504_v46 = vld [vmem:[#allocation3 + $0x68] ss:$44 sps:$4 sm:$0xff]  }
 0x407   : > { %4909 = vmatpush1.bf16.msra.mxu0 %v514_v3  ;;  %4677 = vmatpush1.bf16.msra.mxu1 %v2080_v9  ;;  %v2141_v11 = vpop.permute.xlu1 %2140 }
 0x408   : > { %4910 = vmatprep.subr.bf16.mxu0 %v522_v23  ;;  %v9024_v13 = vpop.permute.xlu0 %2062  ;;  %4932 = vmatprep.mubr.bf16.mxu0 %v6501_v59  ;;  %v10904_v59 = vld [vmem:[#allocation25_spill] sm:$0xff] }
 0x409   : > { %10902 = vst [vmem:[#allocation121_spill] sm:$0xff] %v9024_v13  ;;  %1490 = vrot.lane.b32.xlu1 %v8935_v37, %s6765_s21  ;;  %v2088_v41 = vsel %vm2070_vm15, %v2061_v22, %v9024_v13  ;;  %v620_v18 = vsel %vm614_vm1, %v10904_v59, %v10903_v63  ;;  %v619_v51 = vsel %vm614_vm1, %v7305_v61, %v10904_v59  ;;  %v6503_v59 = vld [vmem:[#allocation3 + $0x6c] ss:$44 sps:$4 sm:$0xff]  }
 0x40a   : > { %1488 = vrot.lane.b32.xlu0 %v8802_v55, %s6765_s21  ;;  %4678 = vmatprep.subr.bf16.mxu1 %v2088_v41  ;;  %v2185_v22 = vsel %vm10626_vm2, %v8341_v49, %v2141_v11  ;;  %v10907_v41 = vld [vmem:[#allocation28_spill] sm:$0xff] }
 0x40b   : > { %4911 = vmatpush1.bf16.msra.mxu0 %v521_v6  ;;  %4679 = vmatpush1.bf16.msra.mxu1 %v2087_v31  ;;  %v2157_v3 = vpop.permute.xlu1 %2156  ;;  %v627_v6 = vsel %vm614_vm1, %v10907_v41, %v10906_v53  ;;  %v626_v49 = vsel %vm614_vm1, %v7336_v39, %v10907_v41  ;;  %v10912_v41 = vld [vmem:[#allocation36_spill] sm:$0xff] }
 0x40c   : > { %4912 = vmatprep.subr.bf16.mxu0 %v620_v18  ;;  %v9040_v9 = vpop.permute.xlu0 %2142 }
 0x40d   : > { %10905 = vst [vmem:[#allocation122_spill] sm:$0xff] %v9040_v9  ;;  %3054 = vrot.lane.b32.xlu1 %v8802_v55, %s10624_s26  ;;  %v2186_v23 = vsel %vm10626_vm2, %v2141_v11, %v9040_v9  ;;  %v6506_v9 = vld [vmem:[#allocation3 + $0xc0] ss:$44 sps:$4 sm:$0xff]  }
 0x40e   : > { %3052 = vrot.lane.b32.xlu0 %v8949_v5, %s10624_s26  ;;  %4711 = vmatprep.subr.bf16.mxu1 %v2186_v23  ;;  %v9062_v23 = vpop.f32.mrb[0].mxu1 }
 0x40f   : > { %4913 = vmatpush1.bf16.msra.mxu0 %v619_v51  ;;  %4681 = vmatmul.mubr.bf16.vlgmr.msra.gmra.mrb[24].mxu1 %v6502_v28  ;;  %v2173_v31 = vpop.permute.xlu1 %2172  ;;  %v9069_v11 = vpop.f32.mrb[1].mxu1  ;;  %v2192_v51 = vsel %vm10626_vm2, %v8355_v32, %v2157_v3  ;;  %v10909_v28 = vld [vmem:[#allocation33_spill] sm:$0xff] }
 0x410   : > { %4712 = vmatpush1.bf16.msra.mxu1 %v2185_v22  ;;  %4914 = vmatprep.subr.bf16.mxu0 %v627_v6  ;;  %v9056_v18 = vpop.permute.xlu0 %2158  ;;  %v10910_v22 = vld [vmem:[#allocation31_spill] sm:$0xff]  ;;  %v9076_v53 = vpop.f32.mrb[2].mxu1 }
 0x411   : > { %10908 = vst [vmem:[#allocation125_spill] sm:$0xff] %v9056_v18  ;;  %1506 = vrot.lane.b32.xlu1 %v8960_v38, %s6765_s21  ;;  %v2193_v61 = vsel %vm10626_vm2, %v2157_v3, %v9056_v18  ;;  %4690 = vmatprep.mubr.bf16.mxu1 %v6503_v59  ;;  %v634_v6 = vsel %vm614_vm1, %v10910_v22, %v10909_v28  ;;  %v9080_v63 = vpop.f32.mrb[3].mxu1 }
 0x412   : > { %1504 = vrot.lane.b32.xlu0 %v8813_v2, %s6765_s21  ;;  %4713 = vmatprep.subr.bf16.mxu1 %v2193_v61  ;;  %v633_v32 = vsel %vm614_vm1, %v7367_v27, %v10910_v22  ;;  %v2199_v3 = vsel %vm10626_vm2, %v8386_v20, %v2173_v31  ;;  %v6505_v22 = vld [vmem:[#allocation3 + $0xc4] ss:$44 sps:$4 sm:$0xff]   ;;  %v9102_v20 = vpop.f32.mrb[4].mxu1 }
 0x413   : > { %4915 = vmatpush1.bf16.msra.mxu0 %v626_v49  ;;  %v2253_v59 = vpop.permute.xlu1 %2252  ;;  %v10913_v49 = vld [vmem:[#allocation34_spill] sm:$0xff] }
 0x414   : > { %4714 = vmatpush1.bf16.msra.mxu1 %v2192_v51  ;;  %4916 = vmatprep.subr.bf16.mxu0 %v634_v6  ;;  %v9078_v61 = vpop.permute.xlu0 %2174  ;;  %v732_v51 = vsel %vm10914_vm0, %v10913_v49, %v10912_v41 }
 0x415   : > { %10911 = vst [vmem:[#allocation126_spill] sm:$0xff] %v9078_v61  ;;  %3070 = vrot.lane.b32.xlu1 %v8813_v2, %s10624_s26  ;;  %v2200_v39 = vsel %vm10626_vm2, %v2173_v31, %v9078_v61  ;;  %v9109_v31 = vpop.f32.mrb[5].mxu1  ;;  %vm10919_vm2 = vmmov %vm10914_vm0 }
 0x416   : > { %3068 = vrot.lane.b32.xlu0 %v8979_v7, %s10624_s26  ;;  %4715 = vmatprep.subr.bf16.mxu1 %v2200_v39  ;;  %s10916_s26 = smov 26   ;;  %v2297_v39 = vsel %vm10637_vm4, %v8397_v62, %v2253_v59 }
 0x417   : > { %4917 = vmatpush1.bf16.msra.mxu0 %v633_v32  ;;  %v2269_v6 = vpop.permute.xlu1 %2268  ;;  %4691 = vmatmul.mubr.bf16.gmra.mrb[28].mxu1 %v6504_v46  ;;  %v731_v46 = vsel %vm10914_vm0, %v7398_v42, %v10913_v49  ;;  %v10917_v32 = vld [vmem:[#allocation39_spill] sm:$0xff]  ;;  %v10922_v49 = vld [vmem:[#allocation42_spill] sm:$0xff] }
 0x418   : > { %4716 = vmatpush1.bf16.msra.mxu1 %v2199_v3  ;;  %4918 = vmatprep.subr.bf16.mxu0 %v732_v51  ;;  %v9096_v61 = vpop.permute.xlu0 %2254  ;;  %v10918_v3 = vld [vmem:[#allocation37_spill] sm:$0xff] }
 0x419   : > { %10915 = vst [vmem:[#allocation127_spill] sm:$0xff] %v9096_v61  ;;  %1586 = vrot.lane.b32.xlu1 %v8915_v30, %s10916_s26  ;;  %v2298_v27 = vsel %vm10637_vm4, %v2253_v59, %v9096_v61  ;;  %4700 = vmatprep.mubr.bf16.mxu1 %v6505_v22  ;;  %v739_v51 = vsel %vm10919_vm2, %v10918_v3, %v10917_v32  ;;  %v9116_v61 = vpop.f32.mrb[6].mxu1  ;;  %vm10921_vm2 = vmmov %vm10914_vm0 }
 0x41a   : > { %1584 = vrot.lane.b32.xlu0 %v8794_v21, %s10916_s26  ;;  %4717 = vmatprep.subr.bf16.mxu1 %v2298_v27  ;;  %v9120_v18 = vpop.f32.mrb[7].mxu1  ;;  %v738_v62 = vsel %vm10921_vm2, %v7429_v25, %v10918_v3  ;;  %v2304_v59 = vsel %vm10637_vm4, %v8435_v48, %v2269_v6  ;;  %v6507_v3 = vld [vmem:[#allocation3 + $0x1c] ss:$44 sps:$4 sm:$0xff]   ;;  %vm10925_vm2 = vmmov %vm10914_vm0 }
 0x41b   : > { %4919 = vmatpush1.bf16.msra.mxu0 %v731_v46  ;;  %v2285_v22 = vpop.permute.xlu1 %2284  ;;  %v10923_v46 = vld [vmem:[#allocation40_spill] sm:$0xff]  ;;  %v9142_v48 = vpop.f32.mrb[8].mxu1 }
 0x41c   : > { %4718 = vmatpush1.bf16.msra.mxu1 %v2297_v39  ;;  %4920 = vmatprep.subr.bf16.mxu0 %v739_v51  ;;  %v9118_v27 = vpop.permute.xlu0 %2270  ;;  %v746_v39 = vsel %vm10914_vm0, %v10923_v46, %v10922_v49  ;;  %vm10937_vm0 = vcmask 949248  }
 0x41d   : > { %10920 = vst [vmem:[#allocation128_spill] sm:$0xff] %v9118_v27  ;;  %3150 = vrot.lane.b32.xlu1 %v8794_v21, %s6782_s16  ;;  %v2305_v42 = vsel %vm10637_vm4, %v2269_v6, %v9118_v27  ;;  %v9149_v6 = vpop.f32.mrb[9].mxu1 }
 0x41e   : > { %3148 = vrot.lane.b32.xlu0 %v9012_v58, %s6782_s16  ;;  %4719 = vmatprep.subr.bf16.mxu1 %v2305_v42  ;;  %v2311_v42 = vsel %vm10637_vm4, %v8446_v40, %v2285_v22 }
 0x41f   : > { %4921 = vmatpush1.bf16.msra.mxu0 %v738_v62  ;;  %v2365_v51 = vpop.permute.xlu1 %2364  ;;  %4701 = vmatmul.mubr.bf16.gmra.mrb[32].mxu1 %v6506_v9  ;;  %v745_v9 = vsel %vm10925_vm2, %v7460_v45, %v10923_v46  ;;  %v10926_v62 = vld [vmem:[#allocation45_spill] sm:$0xff]  ;;  %vm10939_vm2 = vcmask 449536  }
 0x420   : > { %4720 = vmatpush1.bf16.msra.mxu1 %v2304_v59  ;;  %4922 = vmatprep.subr.bf16.mxu0 %v746_v39  ;;  %v9136_v27 = vpop.permute.xlu0 %2286  ;;  %v10927_v59 = vld [vmem:[#allocation43_spill] sm:$0xff]  ;;  %v10929_v46 = vld [vmem:[#allocation49_spill] sm:$0xff] }
 0x421   : > { %10924 = vst [vmem:[#allocation129_spill] sm:$0xff] %v9136_v27  ;;  %1602 = vrot.lane.b32.xlu1 %v8935_v37, %s10916_s26  ;;  %v2312_v25 = vsel %vm10637_vm4, %v2285_v22, %v9136_v27  ;;  %4743 = vmatprep.mubr.bf16.mxu1 %v6507_v3  ;;  %v844_v39 = vsel %vm838_vm3, %v10927_v59, %v10926_v62  ;;  %v9156_v27 = vpop.f32.mrb[10].mxu1 }
 0x422   : > { %1600 = vrot.lane.b32.xlu0 %v8802_v55, %s10916_s26  ;;  %4721 = vmatprep.subr.bf16.mxu1 %v2312_v25  ;;  %v9160_v13 = vpop.f32.mrb[11].mxu1  ;;  %v843_v40 = vsel %vm838_vm3, %v7491_v50, %v10927_v59  ;;  %v2409_v22 = vsel %vm10636_vm5, %v8481_v29, %v2365_v51 }
 0x423   : > { %4923 = vmatpush1.bf16.msra.mxu0 %v745_v9  ;;  %v2381_v3 = vpop.permute.xlu1 %2380  ;;  %v10930_v9 = vld [vmem:[#allocation47_spill] sm:$0xff]  ;;  %v9182_v50 = vpop.f32.mrb[12].mxu1 }
 0x424   : > { %4722 = vmatpush1.bf16.msra.mxu1 %v2311_v42  ;;  %4924 = vmatprep.subr.bf16.mxu0 %v844_v39  ;;  %v9158_v25 = vpop.permute.xlu0 %2366  ;;  %v851_v42 = vsel %vm838_vm3, %v10930_v9, %v10929_v46  ;;  %v850_v29 = vsel %vm838_vm3, %v7522_v43, %v10930_v9  ;;  %v2416_v59 = vsel %vm10636_vm5, %v8495_v15, %v2381_v3  ;;  %v10935_v9 = vld [vmem:[#allocation61_spill] sm:$0xff] }
 0x425   : > { %10928 = vst [vmem:[#allocation130_spill] sm:$0xff] %v9158_v25  ;;  %3166 = vrot.lane.b32.xlu1 %v8802_v55, %s6782_s16  ;;  %v2410_v45 = vsel %vm10636_vm5, %v2365_v51, %v9158_v25  ;;  %v9189_v51 = vpop.f32.mrb[13].mxu1 }
 0x426   : > { %3164 = vrot.lane.b32.xlu0 %v8949_v5, %s6782_s16  ;;  %4723 = vmatprep.subr.bf16.mxu1 %v2410_v45  ;;  %v9196_v46 = vpop.f32.mrb[14].mxu1 }
 0x427   : > { %4925 = vmatpush1.bf16.msra.mxu0 %v843_v40  ;;  %v2397_v39 = vpop.permute.xlu1 %2396  ;;  %v10932_v40 = vld [vmem:[#allocation55_spill] sm:$0xff]  ;;  %v9200_v62 = vpop.f32.mrb[15].mxu1 }
 0x428   : > { %4724 = vmatpush1.bf16.msra.mxu1 %v2409_v22  ;;  %4926 = vmatprep.subr.bf16.mxu0 %v851_v42  ;;  %v9176_v25 = vpop.permute.xlu0 %2382  ;;  %v10933_v22 = vld [vmem:[#allocation52_spill] sm:$0xff] }
 0x429   : > { %10931 = vst [vmem:[#allocation131_spill] sm:$0xff] %v9176_v25  ;;  %1618 = vrot.lane.b32.xlu1 %v8960_v38, %s10916_s26  ;;  %v2417_v45 = vsel %vm10636_vm5, %v2381_v3, %v9176_v25  ;;  %v858_v42 = vsel %vm838_vm3, %v10933_v22, %v10932_v40  ;;  %v857_v15 = vsel %vm838_vm3, %v10823_v36, %v10933_v22  ;;  %v10943_v22 = vld [vmem:[#allocation64_spill] sm:$0xff] }
 0x42a   : > { %1616 = vrot.lane.b32.xlu0 %v8813_v2, %s10916_s26  ;;  %4725 = vmatprep.subr.bf16.mxu1 %v2417_v45  ;;  %v2423_v3 = vsel %vm10636_vm5, %v8524_v34, %v2397_v39 }
 0x42b   : > { %4927 = vmatpush1.bf16.msra.mxu0 %v850_v29  ;;  %v2477_v25 = vpop.permute.xlu1 %2476  ;;  %v10936_v29 = vld [vmem:[#allocation58_spill] sm:$0xff] }
 0x42c   : > { %4726 = vmatpush1.bf16.msra.mxu1 %v2416_v59  ;;  %4928 = vmatprep.subr.bf16.mxu0 %v858_v42  ;;  %v9198_v45 = vpop.permute.xlu0 %2398  ;;  %v956_v59 = vsel %vm10937_vm0, %v10936_v29, %v10935_v9 }
 0x42d   : > { %10934 = vst [vmem:[#allocation132_spill] sm:$0xff] %v9198_v45  ;;  %3182 = vrot.lane.b32.xlu1 %v8813_v2, %s6782_s16  ;;  %v2424_v43 = vsel %vm10636_vm5, %v2397_v39, %v9198_v45  ;;  %vm10940_vm5 = vmmov %vm10937_vm0  ;;  %v10942_v39 = vld [vmem:[#allocation67_spill] sm:$0xff] }
 0x42e   : > { %3180 = vrot.lane.b32.xlu0 %v8979_v7, %s6782_s16  ;;  %4727 = vmatprep.subr.bf16.mxu1 %v2424_v43  ;;  %v955_v36 = vsel %vm10940_vm5, %v10826_v24, %v10936_v29  ;;  %vm10941_vm0 = vmmov %vm10939_vm2  ;;  %v6508_v24 = vld [vmem:[#allocation3] ss:$44 sps:$4 sm:$0xff]  }
 0x42f   : > { %4929 = vmatpush1.bf16.msra.mxu0 %v857_v15  ;;  %v2493_v42 = vpop.permute.xlu1 %2492  ;;  %v2521_v34 = vsel %vm10941_vm0, %v8538_v19, %v2477_v25  ;;  %vm10944_vm4 = vmmov %vm10940_vm5 }
 0x430   : > { %4728 = vmatpush1.bf16.msra.mxu1 %v2423_v3  ;;  %4930 = vmatprep.subr.bf16.mxu0 %v956_v59  ;;  %v9216_v45 = vpop.permute.xlu0 %2478  ;;  %v963_v15 = vsel %vm10944_vm4, %v10943_v22, %v10942_v39  ;;  %v962_v19 = vsel %vm10944_vm4, %v10829_v44, %v10943_v22  ;;  %vm10947_vm5 = vmmov %vm10941_vm0  ;;  %v6509_v22 = vld [vmem:[#allocation3 + $0x5c] ss:$44 sps:$4 sm:$0xff]  }
 0x431   : > { %10938 = vst [vmem:[#allocation134_spill] sm:$0xff] %v9216_v45  ;;  %1698 = vrot.lane.b32.xlu1 %v8915_v30, %s6767_s18  ;;  %v2522_v43 = vsel %vm10939_vm2, %v2477_v25, %v9216_v45  ;;  %vm10946_vm2 = vmmov %vm10941_vm0  ;;  %v2528_v25 = vsel %vm10947_vm5, %v8552_v57, %v2493_v42 }
 0x432   : > { %1696 = vrot.lane.b32.xlu0 %v8794_v21, %s6767_s18  ;;  %4729 = vmatprep.subr.bf16.mxu1 %v2522_v43  ;;  %vm10950_vm0 = vmmov %vm10944_vm4 }
 0x433   : > { %4931 = vmatpush1.bf16.msra.mxu0 %v955_v36  ;;  %v2509_v3 = vpop.permute.xlu1 %2508  ;;  %v10948_v36 = vld [vmem:[#allocation72_spill] sm:$0xff]  ;;  %vm10952_vm4 = vmmov %vm10950_vm0 }
 0x434   : > { %4730 = vmatpush1.bf16.msra.mxu1 %v2521_v34  ;;  %4963 = vmatprep.subr.bf16.mxu0 %v963_v15  ;;  %v9232_v59 = vpop.permute.xlu0 %2494  ;;  %v10949_v34 = vld [vmem:[#allocation70_spill] sm:$0xff]  ;;  %vm10953_vm5 = vmmov %vm10946_vm2 }
 0x435   : > { %10945 = vst [vmem:[#allocation135_spill] sm:$0xff] %v9232_v59  ;;  %3262 = vrot.lane.b32.xlu1 %v8794_v21, %s6769_s27  ;;  %v2529_v43 = vsel %vm10946_vm2, %v2493_v42, %v9232_v59  ;;  %v970_v15 = vsel %vm10950_vm0, %v10949_v34, %v10948_v36  ;;  %v969_v44 = vsel %vm10952_vm4, %v7646_v35, %v10949_v34  ;;  %vm10956_vm0 = vcmask 883712  }
 0x436   : > { %3260 = vrot.lane.b32.xlu0 %v9012_v58, %s6769_s27  ;;  %4731 = vmatprep.subr.bf16.mxu1 %v2529_v43  ;;  %v2535_v57 = vsel %vm10953_vm5, %v8560_v1, %v2509_v3  ;;  %v10954_v43 = vld [vmem:[#allocation75_spill] sm:$0xff]  ;;  %vm10959_vm4 = vmmov %vm10956_vm0 }
 0x437   : > { %4933 = vmatmul.mubr.bf16.vlgmr.msra.gmra.mrb[12].mxu0 %v6508_v24  ;;  %v2589_v29 = vpop.permute.xlu1 %2588  ;;  %v10955_v24 = vld [vmem:[#allocation73_spill] sm:$0xff] }
 0x438   : > { %4964 = vmatpush1.bf16.msra.mxu0 %v962_v19  ;;  %4732 = vmatpush1.bf16.msra.mxu1 %v2528_v25  ;;  %v9248_v59 = vpop.permute.xlu0 %2510  ;;  %v1068_v19 = vsel %vm10956_vm0, %v10955_v24, %v10954_v43  ;;  %v1067_v1 = vsel %vm10959_vm4, %v7677_v33, %v10955_v24  ;;  %vm10964_vm4 = vmmov %vm10956_vm0  ;;  %v6511_v24 = vld [vmem:[#allocation3 + $0xb4] ss:$44 sps:$4 sm:$0xff]  }
 0x439   : > { %10951 = vst [vmem:[#allocation15_spill] sm:$0xff] %v9248_v59  ;;  %4965 = vmatprep.subr.bf16.mxu0 %v970_v15  ;;  %1714 = vrot.lane.b32.xlu1 %v8935_v37, %s6767_s18  ;;  %v2536_v58 = vsel %vm10946_vm2, %v2509_v3, %v9248_v59  ;;  %vm10958_vm2 = vcmask 441344   ;;  %v6510_v15 = vld [vmem:[#allocation3 + $0x58] ss:$44 sps:$4 sm:$0xff]   ;;  %v6518_v59 = vld [vmem:[#allocation3 + $0xc8] ss:$44 sps:$4 sm:$0xff]  }
 0x43a   : > { %1712 = vrot.lane.b32.xlu0 %v8802_v55, %s6767_s18  ;;  %4733 = vmatprep.subr.bf16.mxu1 %v2536_v58  ;;  %vm10960_vm5 = vmmov %vm10958_vm2  ;;  %v10961_v58 = vld [vmem:[#allocation78_spill] sm:$0xff] }
 0x43b   : > { %v2605_v42 = vpop.permute.xlu1 %2604  ;;  %4942 = vmatprep.mubr.bf16.mxu0 %v6509_v22  ;;  %v2633_v3 = vsel %vm10960_vm5, %v8574_v12, %v2589_v29  ;;  %vm10965_vm5 = vmmov %vm10958_vm2 }
 0x43c   : > { %4966 = vmatpush1.bf16.msra.mxu0 %v969_v44  ;;  %4734 = vmatpush1.bf16.msra.mxu1 %v2535_v57  ;;  %v9264_v25 = vpop.permute.xlu0 %2590  ;;  %v10962_v44 = vld [vmem:[#allocation76_spill] sm:$0xff] }
 0x43d   : > { %10957 = vst [vmem:[#allocation16_spill] sm:$0xff] %v9264_v25  ;;  %4967 = vmatprep.subr.bf16.mxu0 %v1068_v19  ;;  %3278 = vrot.lane.b32.xlu1 %v8802_v55, %s6769_s27  ;;  %v2634_v35 = vsel %vm10958_vm2, %v2589_v29, %v9264_v25  ;;  %v1075_v57 = vsel %vm10956_vm0, %v10962_v44, %v10961_v58  ;;  %v10966_v19 = vld [vmem:[#allocation83_spill] sm:$0xff] }
 0x43e   : > { %3276 = vrot.lane.b32.xlu0 %v8949_v5, %s6769_s27  ;;  %4735 = vmatprep.subr.bf16.mxu1 %v2634_v35  ;;  %v1074_v12 = vsel %vm10964_vm4, %v7708_v14, %v10962_v44  ;;  %v2640_v5 = vsel %vm10965_vm5, %v8582_v60, %v2605_v42  ;;  %v10967_v35 = vld [vmem:[#allocation81_spill] sm:$0xff]  ;;  %vm10969_vm4 = vmmov %vm10956_vm0 }
 0x43f   : > { %v2621_v34 = vpop.permute.xlu1 %2620  ;;  %4943 = vmatmul.mubr.bf16.gmra.mrb[16].mxu0 %v6510_v15  ;;  %v1081_v60 = vsel %vm10969_vm4, %v7739_v0, %v10967_v35  ;;  %vm10970_vm5 = vmmov %vm10958_vm2  ;;  %v6512_v44 = vld [vmem:[#allocation3 + $0xb0] ss:$44 sps:$4 sm:$0xff]  }
 0x440   : > { %4968 = vmatpush1.bf16.msra.mxu0 %v1067_v1  ;;  %4736 = vmatpush1.bf16.msra.mxu1 %v2633_v3  ;;  %v9280_v22 = vpop.permute.xlu0 %2606  ;;  %v1082_v1 = vsel %vm10956_vm0, %v10967_v35, %v10966_v19  ;;  %vm10973_vm0 = vcmask 875520  }
 0x441   : > { %10963 = vst [vmem:[#allocation19_spill] sm:$0xff] %v9280_v22  ;;  %4969 = vmatprep.subr.bf16.mxu0 %v1075_v57  ;;  %1730 = vrot.lane.b32.xlu1 %v8960_v38, %s6767_s18  ;;  %v2641_v33 = vsel %vm10958_vm2, %v2605_v42, %v9280_v22  ;;  %v2647_v42 = vsel %vm10970_vm5, %v8596_v10, %v2621_v34  ;;  %v10971_v57 = vld [vmem:[#allocation89_spill] sm:$0xff]  ;;  %v10975_v10 = vld [vmem:[#allocation87_spill] sm:$0xff]  ;;  %vm10980_vm4 = vmmov %vm10973_vm0 }
 0x442   : > { %1728 = vrot.lane.b32.xlu0 %v8813_v2, %s6767_s18  ;;  %4737 = vmatprep.subr.bf16.mxu1 %v2641_v33  ;;  %v10972_v33 = vld [vmem:[#allocation86_spill] sm:$0xff]  ;;  %vm10983_vm5 = vmmov %vm10973_vm0  ;;  %v10997_v22 = vld [vmem:[#allocation111_spill] sm:$0xff] }
 0x443   : > { %v2701_v29 = vpop.permute.xlu1 %2700  ;;  %4952 = vmatprep.mubr.bf16.mxu0 %v6511_v24  ;;  %v10977_v24 = vld [vmem:[#allocation46_spill] sm:$0xff] }
 0x444   : > { %4970 = vmatpush1.bf16.msra.mxu0 %v1074_v12  ;;  %4738 = vmatpush1.bf16.msra.mxu1 %v2640_v5  ;;  %v9296_v3 = vpop.permute.xlu0 %2622  ;;  %v1180_v12 = vsel %vm10973_vm0, %v10972_v33, %v10971_v57  ;;  %v2745_v35 = vsel %vm2742_vm7, %v10977_v24, %v2701_v29 }
 0x445   : > { %10968 = vst [vmem:[#allocation22_spill] sm:$0xff] %v9296_v3  ;;  %4971 = vmatprep.subr.bf16.mxu0 %v1082_v1  ;;  %1810 = vrot.lane.b32.xlu1 %v8915_v30, %s6770_s1  ;;  %v2648_v14 = vsel %vm10958_vm2, %v2621_v34, %v9296_v3  ;;  %vm10976_vm2 = vmmov %vm10973_vm0 }
 0x446   : > { %1808 = vrot.lane.b32.xlu0 %v8794_v21, %s6770_s1  ;;  %4739 = vmatprep.subr.bf16.mxu1 %v2648_v14  ;;  %v1179_v34 = vsel %vm10976_vm2, %v10975_v10, %v10972_v33  ;;  %v6513_v14 = vld [vmem:[#allocation3 + $0xc] ss:$44 sps:$4 sm:$0xff]   ;;  %vm10989_vm2 = vmmov %vm10973_vm0 }
 0x447   : > { %v2717_v15 = vpop.permute.xlu1 %2716  ;;  %4953 = vmatmul.mubr.bf16.gmra.mrb[20].mxu0 %v6512_v44  ;;  %v6514_v10 = vld [vmem:[#allocation3 + $0x18] ss:$44 sps:$4 sm:$0xff]  }
 0x448   : > { %4972 = vmatpush1.bf16.msra.mxu0 %v1081_v60  ;;  %4740 = vmatpush1.bf16.msra.mxu1 %v2647_v42  ;;  %v9312_v5 = vpop.permute.xlu0 %2702  ;;  %v10978_v60 = vld [vmem:[#allocation95_spill] sm:$0xff]  ;;  %v10979_v42 = vld [vmem:[#allocation92_spill] sm:$0xff] }
 0x449   : > { %10974 = vst [vmem:[#allocation25_spill] sm:$0xff] %v9312_v5  ;;  %4973 = vmatprep.subr.bf16.mxu0 %v1180_v12  ;;  %1826 = vrot.lane.b32.xlu1 %v8935_v37, %s6770_s1  ;;  %v2746_v0 = vsel %vm2742_vm7, %v2701_v29, %v9312_v5  ;;  %v1187_v44 = vsel %vm10980_vm4, %v10979_v42, %v10978_v60  ;;  %v10982_v29 = vld [vmem:[#allocation93_spill] sm:$0xff]  ;;  %vm10992_vm4 = vcmask 867328  }
 0x44a   : > { %1824 = vrot.lane.b32.xlu0 %v8802_v55, %s6770_s1  ;;  %4741 = vmatprep.subr.bf16.mxu1 %v2746_v0  ;;  %v1186_v0 = vsel %vm10983_vm5, %v10982_v29, %v10979_v42  ;;  %vm10995_vm5 = vmmov %vm10992_vm4 }
 0x44b   : > { %v2733_v1 = vpop.permute.xlu1 %2732  ;;  %4995 = vmatprep.mubr.bf16.mxu0 %v6513_v14  ;;  %v10985_v14 = vld [vmem:[#allocation102_spill] sm:$0xff] }
 0x44c   : > { %4974 = vmatpush1.bf16.msra.mxu0 %v1179_v34  ;;  %4742 = vmatpush1.bf16.msra.mxu1 %v2745_v35  ;;  %v9328_v12 = vpop.permute.xlu0 %2718  ;;  %v10984_v34 = vld [vmem:[#allocation53_spill] sm:$0xff]  ;;  %v2759_v29 = vsel %vm2742_vm7, %v8626_v16, %v2733_v1 }
 0x44d   : > { %10981 = vst [vmem:[#allocation28_spill] sm:$0xff] %v9328_v12  ;;  %4975 = vmatprep.subr.bf16.mxu0 %v1187_v44  ;;  %1842 = vrot.lane.b32.xlu1 %v8960_v38, %s6770_s1  ;;  %v2753_v33 = vsel %vm2742_vm7, %v2717_v15, %v9328_v12  ;;  %v2752_v24 = vsel %vm2742_vm7, %v10984_v34, %v2717_v15  ;;  %v10986_v44 = vld [vmem:[#allocation98_spill] sm:$0xff]  ;;  %v10988_v15 = vld [vmem:[#allocation99_spill] sm:$0xff]  ;;  %v10990_v34 = vld [vmem:[#allocation108_spill] sm:$0xff] }
 0x44e   : > { %1840 = vrot.lane.b32.xlu0 %v8813_v2, %s6770_s1  ;;  %4774 = vmatprep.subr.bf16.mxu1 %v2753_v33  ;;  %v1194_v12 = vsel %vm10973_vm0, %v10986_v44, %v10985_v14  ;;  %v1193_v33 = vsel %vm10989_vm2, %v10988_v15, %v10986_v44  ;;  %vm10998_vm0 = vmmov %vm10992_vm4 }
 0x44f   : > { %4744 = vmatmul.mubr.bf16.vlgmr.msra.gmra.mrb[24].mxu1 %v6514_v10  ;;  %v2813_v35 = vpop.permute.xlu1 %2812  ;;  %v6515_v10 = vld [vmem:[#allocation3 + $0x74] ss:$44 sps:$4 sm:$0xff]   ;;  %vm11001_vm2 = vmmov %vm10998_vm0 }
 0x450   : > { %4976 = vmatpush1.bf16.msra.mxu0 %v1186_v0  ;;  %4775 = vmatpush1.bf16.msra.mxu1 %v2752_v24  ;;  %v9344_v5 = vpop.permute.xlu0 %2734  ;;  %v10991_v24 = vld [vmem:[#allocation105_spill] sm:$0xff] }
 0x451   : > { %10987 = vst [vmem:[#allocation33_spill] sm:$0xff] %v9344_v5  ;;  %4977 = vmatprep.subr.bf16.mxu0 %v1194_v12  ;;  %1922 = vrot.lane.b32.xlu1 %v8915_v30, %s6771_s29  ;;  %v2760_v42 = vsel %vm2742_vm7, %v2733_v1, %v9344_v5  ;;  %v9357_v12 = vpop.f32.mrb[16].mxu1  ;;  %v1292_v5 = vsel %vm10992_vm4, %v10991_v24, %v10990_v34  ;;  %vm11004_vm4 = vmmov %vm10998_vm0 }
 0x452   : > { %1920 = vrot.lane.b32.xlu0 %v8794_v21, %s6771_s29  ;;  %4776 = vmatprep.subr.bf16.mxu1 %v2760_v42  ;;  %v9368_v1 = vpop.f32.mrb[17].mxu1  ;;  %v10994_v42 = vld [vmem:[#allocation106_spill] sm:$0xff] }
 0x453   : > { %v2829_v0 = vpop.permute.xlu1 %2828  ;;  %4753 = vmatprep.mubr.bf16.mxu1 %v6515_v10  ;;  %v9372_v44 = vpop.f32.mrb[18].mxu1  ;;  %v1291_v15 = vsel %vm10995_vm5, %v10994_v42, %v10991_v24  ;;  %vm11007_vm5 = vcmask 228352  }
 0x454   : > { %4978 = vmatpush1.bf16.msra.mxu0 %v1193_v33  ;;  %4777 = vmatpush1.bf16.msra.mxu1 %v2759_v29  ;;  %v9362_v3 = vpop.permute.xlu0 %2814  ;;  %v6516_v29 = vld [vmem:[#allocation3 + $0x70] ss:$44 sps:$4 sm:$0xff]   ;;  %v9379_v10 = vpop.f32.mrb[19].mxu1  ;;  %v2864_v42 = vsel %vm2854_vm6, %v8657_v47, %v2829_v0 }
 0x455   : > { %10993 = vst [vmem:[#allocation31_spill] sm:$0xff] %v9362_v3  ;;  %4979 = vmatprep.subr.bf16.mxu0 %v1292_v5  ;;  %1938 = vrot.lane.b32.xlu1 %v8935_v37, %s6771_s29  ;;  %v2858_v16 = vsel %vm2854_vm6, %v2813_v35, %v9362_v3  ;;  %v2857_v5 = vsel %vm2854_vm6, %v8638_v4, %v2813_v35  ;;  %v10996_v3 = vld [vmem:[#allocation114_spill] sm:$0xff]  ;;  %v11000_v35 = vld [vmem:[#allocation112_spill] sm:$0xff] }
 0x456   : > { %1936 = vrot.lane.b32.xlu0 %v8802_v55, %s6771_s29  ;;  %4778 = vmatprep.subr.bf16.mxu1 %v2858_v16  ;;  %v1299_v16 = vsel %vm10998_vm0, %v10997_v22, %v10996_v3  ;;  %v1298_v24 = vsel %vm11001_vm2, %v11000_v35, %v10997_v22  ;;  %vm11011_vm2 = vmmov %vm11007_vm5 }
 0x457   : > { %v2845_v33 = vpop.permute.xlu1 %2844  ;;  %4754 = vmatmul.mubr.bf16.gmra.mrb[28].mxu1 %v6516_v29  ;;  %v9399_v29 = vpop.f32.mrb[20].mxu1 }
 0x458   : > { %4980 = vmatpush1.bf16.msra.mxu0 %v1291_v15  ;;  %4779 = vmatpush1.bf16.msra.mxu1 %v2857_v5  ;;  %v9384_v25 = vpop.permute.xlu0 %2830  ;;  %v6517_v5 = vld [vmem:[#allocation3 + $0xcc] ss:$44 sps:$4 sm:$0xff]   ;;  %v9410_v22 = vpop.f32.mrb[21].mxu1 }
 0x459   : > { %10999 = vst [vmem:[#allocation36_spill] sm:$0xff] %v9384_v25  ;;  %4981 = vmatprep.subr.bf16.mxu0 %v1299_v16  ;;  %3294 = vrot.lane.b32.xlu1 %v8813_v2, %s6769_s27  ;;  %v2865_v4 = vsel %vm2854_vm6, %v2829_v0, %v9384_v25  ;;  %v11002_v16 = vld [vmem:[#allocation120_spill] sm:$0xff]  ;;  %v11003_v25 = vld [vmem:[#allocation117_spill] sm:$0xff]  ;;  %v11006_v0 = vld [vmem:[#allocation123_spill] sm:$0xff] }
 0x45a   : > { %3292 = vrot.lane.b32.xlu0 %v8979_v7, %s6769_s27  ;;  %4780 = vmatprep.subr.bf16.mxu1 %v2865_v4  ;;  %v1306_v7 = vsel %vm11004_vm4, %v11003_v25, %v11002_v16  ;;  %vm11012_vm4 = vmmov %vm11011_vm2 }
 0x45b   : > { %v9397_v15 = vpop.permute.xlu1 %1362  ;;  %4763 = vmatprep.mubr.bf16.mxu1 %v6517_v5 }
 0x45c   : > { %4982 = vmatpush1.bf16.msra.mxu0 %v1298_v24  ;;  %4781 = vmatpush1.bf16.msra.mxu1 %v2864_v42  ;;  %v9404_v4 = vpop.permute.xlu0 %2846  ;;  %v1404_v35 = vsel %vm11007_vm5, %v11006_v0, %v9397_v15  ;;  %v9417_v24 = vpop.f32.mrb[22].mxu1  ;;  %v11008_v42 = vld [vmem:[#allocation118_spill] sm:$0xff]  ;;  %vm11014_vm5 = vmmov %vm11011_vm2 }
 0x45d   : > { %11005 = vst [vmem:[#allocation34_spill] sm:$0xff] %v9404_v4  ;;  %4983 = vmatprep.subr.bf16.mxu0 %v1306_v7  ;;  %1954 = vrot.lane.b32.xlu1 %v8960_v38, %s6771_s29  ;;  %v2872_v47 = vsel %vm2854_vm6, %v2845_v33, %v9404_v4  ;;  %v1305_v5 = vsel %vm10998_vm0, %v11008_v42, %v11003_v25  ;;  %v9426_v14 = vpop.f32.mrb[23].mxu1  ;;  %vm11016_vm0 = vmmov %vm11011_vm2 }
 0x45e   : > { %1952 = vrot.lane.b32.xlu0 %v8813_v2, %s6771_s29  ;;  %4782 = vmatprep.subr.bf16.mxu1 %v2872_v47  ;;  %v2871_v7 = vsel %vm2854_vm6, %v8680_v56, %v2845_v33  ;;  %v11010_v56 = vld [vmem:[#allocation124_spill] sm:$0xff] }
 0x45f   : > { %v9424_v4 = vpop.permute.xlu1 %2926  ;;  %4764 = vmatmul.mubr.bf16.gmra.mrb[32].mxu1 %v6518_v59  ;;  %v1403_v59 = vsel %vm11011_vm2, %v11010_v56, %v11006_v0  ;;  %vm11018_vm2 = vmmov %vm11016_vm0 }
 0x460   : > { %11009 = vst [vmem:[#allocation39_spill] sm:$0xff] %v9424_v4  ;;  %4984 = vmatpush1.bf16.msra.mxu0 %v1305_v5  ;;  %4783 = vmatpush1.bf16.msra.mxu1 %v2871_v7  ;;  %v2925_v47 = vpop.permute.xlu0 %2924  ;;  %v11013_v5 = vld [vmem:[#allocation50_spill] sm:$0xff] }
 0x461   : > { %4985 = vmatprep.subr.bf16.mxu0 %v1404_v35  ;;  %2034 = vrot.lane.b32.xlu1 %v8915_v30, %s6772_s19  ;;  %v2970_v60 = vsel %vm2966_vm8, %v2925_v47, %v9424_v4  ;;  %v2969_v25 = vsel %vm2966_vm8, %v8699_v26, %v2925_v47  ;;  %v6519_v35 = vld [vmem:[#allocation3 + $0x24] ss:$44 sps:$4 sm:$0xff]  }
 0x462   : > { %2032 = vrot.lane.b32.xlu0 %v8794_v21, %s6772_s19  ;;  %4784 = vmatprep.subr.bf16.mxu1 %v2970_v60  ;;  %v9567_v4 = vld [vmem:[%s7042_s6 + $0x70] ss:$28 sps:$4 sm:$0xff]  }
 0x463   : > { %v9439_v33 = vpop.permute.xlu1 %1378  ;;  %4806 = vmatprep.mubr.bf16.mxu1 %v6519_v35 }
 0x464   : > { %4986 = vmatpush1.bf16.msra.mxu0 %v1403_v59  ;;  %4785 = vmatpush1.bf16.msra.mxu1 %v2969_v25  ;;  %v1377_v42 = vpop.permute.xlu0 %1376  ;;  %v11017_v59 = vld [vmem:[#allocation51_spill] sm:$0xff] }
 0x465   : > { %2050 = vrot.lane.b32.xlu1 %v8935_v37, %s6772_s19  ;;  %v1411_v26 = vsel %vm11012_vm4, %v1377_v42, %v9439_v33  ;;  %v1410_v21 = vsel %vm11014_vm5, %v11013_v5, %v1377_v42  ;;  %v6520_v42 = vld [vmem:[%s7017_s25 + $0x14] ss:$28 sps:$4 sm:$0xff]   ;;  %vm11021_vm4 = vcmask 220160  }
 0x466   : > { %2048 = vrot.lane.b32.xlu0 %v8802_v55, %s6772_s19  ;;  %4987 = vmatprep.subr.bf16.mxu0 %v1411_v26  ;;  %v11020_v5 = vld [vmem:[#allocation65_spill] sm:$0xff]  ;;  %vm11023_vm5 = vmmov %vm11021_vm4 }
 0x467   : > { %v9449_v60 = vpop.permute.xlu1 %2942 }
 0x468   : > { %11015 = vst [vmem:[#allocation37_spill] sm:$0xff] %v9449_v60  ;;  %4988 = vmatpush1.bf16.msra.mxu0 %v1410_v21  ;;  %v2941_v0 = vpop.permute.xlu0 %2940 }
 0x469   : > { %2066 = vrot.lane.b32.xlu1 %v8960_v38, %s6772_s19  ;;  %v2977_v7 = vsel %vm2966_vm8, %v2941_v0, %v9449_v60  ;;  %v2976_v47 = vsel %vm2966_vm8, %v8722_v17, %v2941_v0  ;;  %v6521_v0 = vld [vmem:[%s7017_s25 + $0x4c] ss:$28 sps:$4 sm:$0xff]  }
 0x46a   : > { %2064 = vrot.lane.b32.xlu0 %v8813_v2, %s6772_s19  ;;  %4786 = vmatprep.subr.bf16.mxu1 %v2977_v7 }
 0x46b   : > { %4787 = vmatpush1.bf16.msra.mxu1 %v2976_v47  ;;  %v9459_v55 = vpop.permute.xlu1 %1394 }
 0x46c   : > { %v1393_v25 = vpop.permute.xlu0 %1392 }
 0x46d   : > { %2146 = vrot.lane.b32.xlu1 %v8915_v30, %s6773_s23  ;;  %v1418_v56 = vsel %vm11016_vm0, %v1393_v25, %v9459_v55  ;;  %v1417_v35 = vsel %vm11018_vm2, %v11017_v59, %v1393_v25  ;;  %vm11026_vm0 = vmmov %vm11021_vm4 }
 0x46e   : > { %2144 = vrot.lane.b32.xlu0 %v6520_v42, %s6773_s23  ;;  %4989 = vmatprep.subr.bf16.mxu0 %v1418_v56  ;;  %v11022_v56 = vld [vmem:[#allocation59_spill] sm:$0xff]  ;;  %vm11028_vm2 = vmmov %vm11026_vm0 }
 0x46f   : > { %4990 = vmatpush1.bf16.msra.mxu0 %v1417_v35  ;;  %v9469_v17 = vpop.permute.xlu1 %2958  ;;  %v6522_v35 = vld [vmem:[%s7017_s25 + $0x84] ss:$28 sps:$4 sm:$0xff]  }
 0x470   : > { %11019 = vst [vmem:[#allocation42_spill] sm:$0xff] %v9469_v17  ;;  %v2957_v2 = vpop.permute.xlu0 %2956 }
 0x471   : > { %2162 = vrot.lane.b32.xlu1 %v8935_v37, %s6773_s23  ;;  %v2984_v26 = vsel %vm2966_vm8, %v2957_v2, %v9469_v17  ;;  %v2983_v21 = vsel %vm2966_vm8, %v11020_v5, %v2957_v2 }
 0x472   : > { %2160 = vrot.lane.b32.xlu0 %v6521_v0, %s6773_s23  ;;  %4788 = vmatprep.subr.bf16.mxu1 %v2984_v26 }
 0x473   : > { %4789 = vmatpush1.bf16.msra.mxu1 %v2983_v21  ;;  %v9479_v7 = vpop.permute.xlu1 %1474 }
 0x474   : > { %v1473_v47 = vpop.permute.xlu0 %1472 }
 0x475   : > { %2178 = vrot.lane.b32.xlu1 %v8960_v38, %s6773_s23  ;;  %v1516_v25 = vsel %vm11021_vm4, %v1473_v47, %v9479_v7  ;;  %v1515_v59 = vsel %vm11023_vm5, %v11022_v56, %v1473_v47  ;;  %vm11033_vm4 = vmmov %vm11026_vm0 }
 0x476   : > { %2176 = vrot.lane.b32.xlu0 %v6522_v35, %s6773_s23  ;;  %4991 = vmatprep.subr.bf16.mxu0 %v1516_v25  ;;  %vm11035_vm5 = vmmov %vm11026_vm0 }
 0x477   : > { %4992 = vmatpush1.bf16.msra.mxu0 %v1515_v59  ;;  %v9489_v2 = vpop.permute.xlu1 %3038  ;;  %v11027_v59 = vld [vmem:[#allocation56_spill] sm:$0xff] }
 0x478   : > { %11024 = vst [vmem:[#allocation40_spill] sm:$0xff] %v9489_v2  ;;  %v3037_v26 = vpop.permute.xlu0 %3036 }
 0x479   : > { %2258 = vrot.lane.b32.xlu1 %v8915_v30, %s6774_s5  ;;  %v3082_v5 = vsel %vm3078_vm9, %v3037_v26, %v9489_v2  ;;  %v3081_v21 = vsel %vm3078_vm9, %v8760_v52, %v3037_v26 }
 0x47a   : > { %2256 = vrot.lane.b32.xlu0 %v6520_v42, %s6774_s5  ;;  %4790 = vmatprep.subr.bf16.mxu1 %v3082_v5 }
 0x47b   : > { %4791 = vmatpush1.bf16.msra.mxu1 %v3081_v21  ;;  %v9498_v47 = vpop.permute.xlu1 %1490  ;;  %v9518_v21 = vld [vmem:[#allocation3 + $0x8] ss:$44 sps:$4 sm:$0xff]  }
 0x47c   : > { %11025 = vst [vmem:[#allocation43_spill] sm:$0xff] %v9498_v47  ;;  %v1489_v25 = vpop.permute.xlu0 %1488  ;;  %11031 = vst [vmem:[#allocation52_spill] sm:$0xff] %v9518_v21 }
 0x47d   : > { %2274 = vrot.lane.b32.xlu1 %v8935_v37, %s6774_s5  ;;  %v1523_v56 = vsel %vm11026_vm0, %v1489_v25, %v9498_v47  ;;  %v1522_v17 = vsel %vm11028_vm2, %v11027_v59, %v1489_v25  ;;  %v9521_v25 = vld [vmem:[#allocation3 + $0x64] ss:$44 sps:$4 sm:$0xff]   ;;  %vm11041_vm0 = vcmask 211968  }
 0x47e   : > { %2272 = vrot.lane.b32.xlu0 %v6521_v0, %s6774_s5  ;;  %4993 = vmatprep.subr.bf16.mxu0 %v1523_v56  ;;  %11032 = vst [vmem:[#allocation61_spill] sm:$0xff] %v9521_v25  ;;  %v9525_v56 = vld [vmem:[%s7042_s6] ss:$28 sps:$4 sm:$0xff]   ;;  %vm11043_vm2 = vmmov %vm11041_vm0 }
 0x47f   : > { %4994 = vmatpush1.bf16.msra.mxu0 %v1522_v17  ;;  %v9507_v52 = vpop.permute.xlu1 %3054 }
 0x480   : > { %11029 = vst [vmem:[#allocation47_spill] sm:$0xff] %v9507_v52  ;;  %v3053_v42 = vpop.permute.xlu0 %3052 }
 0x481   : > { %2290 = vrot.lane.b32.xlu1 %v8960_v38, %s6774_s5  ;;  %v3089_v26 = vsel %vm3078_vm9, %v3053_v42, %v9507_v52  ;;  %v3088_v5 = vsel %vm3078_vm9, %v8777_v8, %v3053_v42  ;;  %v11037_v52 = vld [vmem:[#allocation69_spill] sm:$0xff] }
 0x482   : > { %2288 = vrot.lane.b32.xlu0 %v6522_v35, %s6774_s5  ;;  %4792 = vmatprep.subr.bf16.mxu1 %v3089_v26  ;;  %v11034_v35 = vld [vmem:[#allocation57_spill] sm:$0xff] }
 0x483   : > { %4793 = vmatpush1.bf16.msra.mxu1 %v3088_v5  ;;  %v9516_v0 = vpop.permute.xlu1 %1506  ;;  %4996 = vmatmul.mubr.bf16.vlgmr.msra.gmra.mrb[12].mxu0 %v9518_v21 }
 0x484   : > { %11030 = vst [vmem:[#allocation55_spill] sm:$0xff] %v9516_v0  ;;  %v1505_v17 = vpop.permute.xlu0 %1504  ;;  %5005 = vmatprep.mubr.bf16.mxu0 %v9521_v25  ;;  %v11078_v25 = vmov 0  }
 0x485   : > { %2370 = vrot.lane.b32.xlu1 %v9525_v56, %s6775_s8  ;;  %v1530_v8 = vsel %vm11033_vm4, %v1505_v17, %v9516_v0  ;;  %v1529_v59 = vsel %vm11035_vm5, %v11034_v35, %v1505_v17  ;;  %vm11049_vm4 = vmmov %vm11041_vm0 }
 0x486   : > { %2368 = vrot.lane.b32.xlu0 %v8915_v30, %s6775_s8  ;;  %5026 = vmatprep.subr.bf16.mxu0 %v1530_v8  ;;  %v9547_v8 = vld [vmem:[#allocation3 + $0x60] ss:$44 sps:$4 sm:$0xff]   ;;  %vm11051_vm5 = vmmov %vm11041_vm0 }
 0x487   : > { %5027 = vmatpush1.bf16.msra.mxu0 %v1529_v59  ;;  %v9535_v42 = vpop.permute.xlu1 %3070  ;;  %11039 = vst [vmem:[#allocation64_spill] sm:$0xff] %v9547_v8  ;;  %v9550_v59 = vld [vmem:[#allocation3 + $0xbc] ss:$44 sps:$4 sm:$0xff]  }
 0x488   : > { %11036 = vst [vmem:[#allocation58_spill] sm:$0xff] %v9535_v42  ;;  %v3069_v26 = vpop.permute.xlu0 %3068  ;;  %11040 = vst [vmem:[#allocation72_spill] sm:$0xff] %v9550_v59 }
 0x489   : > { %2384 = vrot.lane.b32.xlu1 %v8935_v37, %s6775_s8  ;;  %v3096_v5 = vsel %vm3078_vm9, %v3069_v26, %v9535_v42  ;;  %v3095_v2 = vsel %vm3078_vm9, %v11037_v52, %v3069_v26  ;;  %v9554_v42 = vld [vmem:[%s7042_s6 + $0x38] ss:$28 sps:$4 sm:$0xff]   ;;  %v11042_v52 = vld [vmem:[#allocation62_spill] sm:$0xff] }
 0x48a   : > { %1364 = vrot.lane.b32.xlu0 %v9525_v56, %s6764_s11  ;;  %4794 = vmatprep.subr.bf16.mxu1 %v3096_v5 }
 0x48b   : > { %4795 = vmatpush1.bf16.msra.mxu1 %v3095_v2  ;;  %v9545_v17 = vpop.permute.xlu1 %1586  ;;  %5006 = vmatmul.mubr.bf16.gmra.mrb[16].mxu0 %v9547_v8 }
 0x48c   : > { %11038 = vst [vmem:[#allocation67_spill] sm:$0xff] %v9545_v17  ;;  %v1585_v35 = vpop.permute.xlu0 %1584  ;;  %5015 = vmatprep.mubr.bf16.mxu0 %v9550_v59 }
 0x48d   : > { %1380 = vrot.lane.b32.xlu1 %v9554_v42, %s6764_s11  ;;  %v1628_v2 = vsel %vm11041_vm0, %v1585_v35, %v9545_v17  ;;  %v1627_v26 = vsel %vm11043_vm2, %v11042_v52, %v1585_v35  ;;  %v11045_v17 = vld [vmem:[#allocation80_spill] sm:$0xff]  ;;  %vm11056_vm2 = vmmov %vm11041_vm0 }
 0x48e   : > { %2386 = vrot.lane.b32.xlu0 %v9554_v42, %s6775_s8  ;;  %5028 = vmatprep.subr.bf16.mxu0 %v1628_v2  ;;  %v9579_v2 = vld [vmem:[#allocation3 + $0xb8] ss:$44 sps:$4 sm:$0xff]  }
 0x48f   : > { %5029 = vmatpush1.bf16.msra.mxu0 %v1627_v26  ;;  %v9564_v5 = vpop.permute.xlu1 %3150  ;;  %11047 = vst [vmem:[#allocation73_spill] sm:$0xff] %v9579_v2  ;;  %v9582_v26 = vld [vmem:[#allocation3 + $0x14] ss:$44 sps:$4 sm:$0xff]  }
 0x490   : > { %11044 = vst [vmem:[#allocation70_spill] sm:$0xff] %v9564_v5  ;;  %v3149_v60 = vpop.permute.xlu0 %3148  ;;  %11048 = vst [vmem:[#allocation78_spill] sm:$0xff] %v9582_v26 }
 0x491   : > { %2402 = vrot.lane.b32.xlu1 %v9567_v4, %s6775_s8  ;;  %v3194_v59 = vsel %vm3190_vm10, %v3149_v60, %v9564_v5  ;;  %v3193_v8 = vsel %vm3190_vm10, %v11045_v17, %v3149_v60  ;;  %v11050_v17 = vld [vmem:[#allocation63_spill] sm:$0xff] }
 0x492   : > { %2400 = vrot.lane.b32.xlu0 %v8960_v38, %s6775_s8  ;;  %4796 = vmatprep.subr.bf16.mxu1 %v3194_v59 }
 0x493   : > { %4797 = vmatpush1.bf16.msra.mxu1 %v3193_v8  ;;  %v9577_v35 = vpop.permute.xlu1 %1602  ;;  %5016 = vmatmul.mubr.bf16.gmra.mrb[20].mxu0 %v9579_v2  ;;  %v11070_v2 = vld [vmem:[#allocation91_spill] sm:$0xff] }
 0x494   : > { %11046 = vst [vmem:[#allocation75_spill] sm:$0xff] %v9577_v35  ;;  %v1601_v52 = vpop.permute.xlu0 %1600  ;;  %5058 = vmatprep.mubr.bf16.mxu0 %v9582_v26  ;;  %v11053_v26 = vld [vmem:[#allocation84_spill] sm:$0xff] }
 0x495   : > { %2480 = vrot.lane.b32.xlu1 %v8915_v30, %s6776_s9  ;;  %v1635_v60 = vsel %vm11049_vm4, %v1601_v52, %v9577_v35  ;;  %v1634_v8 = vsel %vm11051_vm5, %v11050_v17, %v1601_v52  ;;  %vm11084_vm4 = vcmask 965632  }
 0x496   : > { %1396 = vrot.lane.b32.xlu0 %v9567_v4, %s6764_s11  ;;  %5030 = vmatprep.subr.bf16.mxu0 %v1635_v60  ;;  %vm11087_vm5 = vmmov %vm11084_vm4 }
 0x497   : > { %5031 = vmatpush1.bf16.msra.mxu0 %v1634_v8  ;;  %v9593_v59 = vpop.permute.xlu1 %3166  ;;  %v11055_v8 = vld [vmem:[#allocation68_spill] sm:$0xff] }
 0x498   : > { %11052 = vst [vmem:[#allocation76_spill] sm:$0xff] %v9593_v59  ;;  %v3165_v5 = vpop.permute.xlu0 %3164 }
 0x499   : > { %1476 = vrot.lane.b32.xlu1 %v9525_v56, %s6765_s21  ;;  %v3201_v30 = vsel %vm3190_vm10, %v3165_v5, %v9593_v59  ;;  %v3200_v35 = vsel %vm3190_vm10, %v11053_v26, %v3165_v5 }
 0x49a   : > { %2482 = vrot.lane.b32.xlu0 %v9525_v56, %s6776_s9  ;;  %4798 = vmatprep.subr.bf16.mxu1 %v3201_v30  ;;  %v11058_v30 = vld [vmem:[#allocation90_spill] sm:$0xff] }
 0x49b   : > { %4799 = vmatpush1.bf16.msra.mxu1 %v3200_v35  ;;  %v9603_v52 = vpop.permute.xlu1 %1618 }
 0x49c   : > { %11054 = vst [vmem:[#allocation83_spill] sm:$0xff] %v9603_v52  ;;  %v1617_v60 = vpop.permute.xlu0 %1616 }
 0x49d   : > { %2498 = vrot.lane.b32.xlu1 %v9554_v42, %s6776_s9  ;;  %v1642_v17 = vsel %vm11041_vm0, %v1617_v60, %v9603_v52  ;;  %v1641_v59 = vsel %vm11056_vm2, %v11055_v8, %v1617_v60  ;;  %v11060_v60 = vld [vmem:[#allocation79_spill] sm:$0xff]  ;;  %vm11089_vm0 = vmmov %vm11084_vm4  ;;  %vm11093_vm2 = vcmask 1039360  }
 0x49e   : > { %2496 = vrot.lane.b32.xlu0 %v8935_v37, %s6776_s9  ;;  %5032 = vmatprep.subr.bf16.mxu0 %v1642_v17 }
 0x49f   : > { %5033 = vmatpush1.bf16.msra.mxu0 %v1641_v59  ;;  %v9613_v5 = vpop.permute.xlu1 %3182 }
 0x4a0   : > { %11057 = vst [vmem:[#allocation81_spill] sm:$0xff] %v9613_v5  ;;  %v3181_v35 = vpop.permute.xlu0 %3180 }
 0x4a1   : > { %2512 = vrot.lane.b32.xlu1 %v8960_v38, %s6776_s9  ;;  %v3208_v26 = vsel %vm3190_vm10, %v3181_v35, %v9613_v5  ;;  %v3207_v52 = vsel %vm3190_vm10, %v11058_v30, %v3181_v35  ;;  %v9642_v5 = vld [vmem:[%s7017_s25 + $0x18] ss:$28 sps:$4 sm:$0xff]  }
 0x4a2   : > { %1492 = vrot.lane.b32.xlu0 %v9554_v42, %s6765_s21  ;;  %4800 = vmatprep.subr.bf16.mxu1 %v3208_v26  ;;  %v11062_v26 = vld [vmem:[#allocation96_spill] sm:$0xff] }
 0x4a3   : > { %4801 = vmatpush1.bf16.msra.mxu1 %v3207_v52  ;;  %v9623_v37 = vpop.permute.xlu1 %1698 }
 0x4a4   : > { %11059 = vst [vmem:[#allocation89_spill] sm:$0xff] %v9623_v37  ;;  %v1697_v59 = vpop.permute.xlu0 %1696 }
 0x4a5   : > { %1828 = vrot.lane.b32.xlu1 %v9554_v42, %s6770_s1  ;;  %v1740_v38 = vsel %vm1734_vm11, %v1697_v59, %v9623_v37  ;;  %v1739_v17 = vsel %vm1734_vm11, %v11060_v60, %v1697_v59  ;;  %v9665_v37 = vld [vmem:[%s7017_s25 + $0x50] ss:$28 sps:$4 sm:$0xff]  }
 0x4a6   : > { %2514 = vrot.lane.b32.xlu0 %v9567_v4, %s6776_s9  ;;  %5034 = vmatprep.subr.bf16.mxu0 %v1740_v38 }
 0x4a7   : > { %5035 = vmatpush1.bf16.msra.mxu0 %v1739_v17  ;;  %v9633_v8 = vpop.permute.xlu1 %3262  ;;  %v11064_v17 = vld [vmem:[#allocation100_spill] sm:$0xff] }
 0x4a8   : > { %11061 = vst [vmem:[#allocation86_spill] sm:$0xff] %v9633_v8  ;;  %v3261_v52 = vpop.permute.xlu0 %3260 }
 0x4a9   : > { %2594 = vrot.lane.b32.xlu1 %v9525_v56, %s6777_s7  ;;  %v3306_v35 = vsel %vm3302_vm12, %v3261_v52, %v9633_v8  ;;  %v3305_v30 = vsel %vm3302_vm12, %v11062_v26, %v3261_v52  ;;  %v11066_v8 = vld [vmem:[#allocation103_spill] sm:$0xff] }
 0x4aa   : > { %2592 = vrot.lane.b32.xlu0 %v9642_v5, %s6777_s7  ;;  %4802 = vmatprep.subr.bf16.mxu1 %v3306_v35 }
 0x4ab   : > { %4803 = vmatpush1.bf16.msra.mxu1 %v3305_v30  ;;  %v9646_v59 = vpop.permute.xlu1 %1714 }
 0x4ac   : > { %11063 = vst [vmem:[#allocation87_spill] sm:$0xff] %v9646_v59  ;;  %v1713_v38 = vpop.permute.xlu0 %1712 }
 0x4ad   : > { %1844 = vrot.lane.b32.xlu1 %v9567_v4, %s6770_s1  ;;  %v1747_v60 = vsel %vm1734_vm11, %v1713_v38, %v9646_v59  ;;  %v1746_v52 = vsel %vm1734_vm11, %v11064_v17, %v1713_v38 }
 0x4ae   : > { %1508 = vrot.lane.b32.xlu0 %v9567_v4, %s6765_s21  ;;  %5036 = vmatprep.subr.bf16.mxu0 %v1747_v60  ;;  %s11154_s21 = smov 36  }
 0x4af   : > { %5037 = vmatpush1.bf16.msra.mxu0 %v1746_v52  ;;  %v9656_v26 = vpop.permute.xlu1 %3278  ;;  %v11068_v52 = vld [vmem:[#allocation85_spill] sm:$0xff] }
 0x4b0   : > { %11065 = vst [vmem:[#allocation46_spill] sm:$0xff] %v9656_v26  ;;  %v3277_v35 = vpop.permute.xlu0 %3276 }
 0x4b1   : > { %2610 = vrot.lane.b32.xlu1 %v9554_v42, %s6777_s7  ;;  %v3313_v30 = vsel %vm3302_vm12, %v3277_v35, %v9656_v26  ;;  %v3312_v59 = vsel %vm3302_vm12, %v11066_v8, %v3277_v35  ;;  %v6535_v26 = vld [vmem:[#allocation3 + $0x7c] ss:$44 sps:$4 sm:$0xff]  }
 0x4b2   : > { %2608 = vrot.lane.b32.xlu0 %v9665_v37, %s6777_s7  ;;  %4804 = vmatprep.subr.bf16.mxu1 %v3313_v30 }
 0x4b3   : > { %4805 = vmatpush1.bf16.msra.mxu1 %v3312_v59  ;;  %v9669_v38 = vpop.permute.xlu1 %1730  ;;  %v6534_v59 = vld [vmem:[#allocation3 + $0x20] ss:$44 sps:$4 sm:$0xff]  }
 0x4b4   : > { %11067 = vst [vmem:[#allocation92_spill] sm:$0xff] %v9669_v38  ;;  %v1729_v60 = vpop.permute.xlu0 %1728 }
 0x4b5   : > { %1924 = vrot.lane.b32.xlu1 %v9525_v56, %s6771_s29  ;;  %v1754_v17 = vsel %vm1734_vm11, %v1729_v60, %v9669_v38  ;;  %v1753_v8 = vsel %vm1734_vm11, %v11068_v52, %v1729_v60  ;;  %v9688_v52 = vld [vmem:[%s7017_s25 + $0x88] ss:$28 sps:$4 sm:$0xff]   ;;  %s6259_s25 = smul.u32 336, %s7014_s30 }
 0x4b6   : > { %1588 = vrot.lane.b32.xlu0 %v9525_v56, %s10916_s26  ;;  %5038 = vmatprep.subr.bf16.mxu0 %v1754_v17 }
 0x4b7   : > { %5039 = vmatpush1.bf16.msra.mxu0 %v1753_v8  ;;  %v9679_v35 = vpop.permute.xlu1 %1810  ;;  %4807 = vmatmul.mubr.bf16.vlgmr.msra.gmra.mrb[24].mxu1 %v6534_v59  ;;  %v11072_v59 = vld [vmem:[#allocation97_spill] sm:$0xff]  ;;  %s9742_s11 = scalar_lea.vmem [#allocation9], %s6259_s25 }
 0x4b8   : > { %11069 = vst [vmem:[#allocation93_spill] sm:$0xff] %v9679_v35  ;;  %v1809_v30 = vpop.permute.xlu0 %1808  ;;  %4816 = vmatprep.mubr.bf16.mxu1 %v6535_v26 }
 0x4b9   : > { %2626 = vrot.lane.b32.xlu1 %v9567_v4, %s6777_s7  ;;  %v1852_v38 = vsel %vm1846_vm14, %v1809_v30, %v9679_v35  ;;  %v1851_v60 = vsel %vm1846_vm14, %v11070_v2, %v1809_v30 }
 0x4ba   : > { %2624 = vrot.lane.b32.xlu0 %v9688_v52, %s6777_s7  ;;  %5040 = vmatprep.subr.bf16.mxu0 %v1852_v38  ;;  %v6537_v38 = vld [vmem:[#allocation3 + $0x78] ss:$44 sps:$4 sm:$0xff]  }
 0x4bb   : > { %5041 = vmatpush1.bf16.msra.mxu0 %v1851_v60  ;;  %v9692_v17 = vpop.permute.xlu1 %1826  ;;  %v6538_v60 = vld [vmem:[#allocation3 + $0xd4] ss:$44 sps:$4 sm:$0xff]  }
 0x4bc   : > { %11071 = vst [vmem:[#allocation53_spill] sm:$0xff] %v9692_v17  ;;  %v1825_v8 = vpop.permute.xlu0 %1824 }
 0x4bd   : > { %1940 = vrot.lane.b32.xlu1 %v9554_v42, %s6771_s29  ;;  %v1859_v26 = vsel %vm1846_vm14, %v1825_v8, %v9692_v17  ;;  %v1858_v35 = vsel %vm1846_vm14, %v11072_v59, %v1825_v8  ;;  %v11074_v8 = vld [vmem:[#allocation104_spill] sm:$0xff] }
 0x4be   : > { %1604 = vrot.lane.b32.xlu0 %v9554_v42, %s10916_s26  ;;  %5042 = vmatprep.subr.bf16.mxu0 %v1859_v26 }
 0x4bf   : > { %5043 = vmatpush1.bf16.msra.mxu0 %v1858_v35  ;;  %v9702_v2 = vpop.permute.xlu1 %1842  ;;  %4817 = vmatmul.mubr.bf16.gmra.mrb[28].mxu1 %v6537_v38 }
 0x4c0   : > { %11073 = vst [vmem:[#allocation98_spill] sm:$0xff] %v9702_v2  ;;  %v1841_v30 = vpop.permute.xlu0 %1840  ;;  %4826 = vmatprep.mubr.bf16.mxu1 %v6538_v60  ;;  %v11076_v60 = vld [vmem:[#allocation109_spill] sm:$0xff] }
 0x4c1   : > { %2706 = vrot.lane.b32.xlu1 %v9525_v56, %s6778_s10  ;;  %v1866_v0 = vsel %vm1846_vm14, %v1841_v30, %v9702_v2  ;;  %v1865_v59 = vsel %vm1846_vm14, %v11074_v8, %v1841_v30  ;;  %v6539_v30 = vld [vmem:[#allocation3 + $0xd0] ss:$44 sps:$4 sm:$0xff]  }
 0x4c2   : > { %2704 = vrot.lane.b32.xlu0 %v9642_v5, %s6778_s10  ;;  %5044 = vmatprep.subr.bf16.mxu0 %v1866_v0 }
 0x4c3   : > { %5045 = vmatpush1.bf16.msra.mxu0 %v1865_v59  ;;  %v9712_v35 = vpop.permute.xlu1 %1922 }
 0x4c4   : > { %11075 = vst [vmem:[#allocation99_spill] sm:$0xff] %v9712_v35  ;;  %v1921_v26 = vpop.permute.xlu0 %1920 }
 0x4c5   : > { %1956 = vrot.lane.b32.xlu1 %v9567_v4, %s6771_s29  ;;  %v1964_v38 = vsel %vm1958_vm13, %v1921_v26, %v9712_v35  ;;  %v1963_v2 = vsel %vm1958_vm13, %v11076_v60, %v1921_v26 }
 0x4c6   : > { %1620 = vrot.lane.b32.xlu0 %v9567_v4, %s10916_s26  ;;  %5046 = vmatprep.subr.bf16.mxu0 %v1964_v38  ;;  %v11079_v38 = vld [vmem:[#allocation110_spill] sm:$0xff] }
 0x4c7   : > { %5047 = vmatpush1.bf16.msra.mxu0 %v1963_v2  ;;  %v9723_v0 = vpop.permute.xlu1 %1938  ;;  %4827 = vmatmul.mubr.bf16.gmra.mrb[32].mxu1 %v6539_v30 }
 0x4c8   : > { %11077 = vst [vmem:[#allocation108_spill] sm:$0xff] %v9723_v0  ;;  %v4430_v8 = vpop.f32.mrb[0].mxu0  ;;  %v1937_v59 = vpop.permute.xlu0 %1936  ;;  %4869 = vmatprep.mubr.bf16.mxu1 %v11078_v25 }
 0x4c9   : > { %v6075_v21 = vadd.f32 %v4430_v8, %v9062_v23  ;;  %v4432_v35 = vpop.f32.mrb[1].mxu0  ;;  %2722 = vrot.lane.b32.xlu1 %v9554_v42, %s6778_s10  ;;  %v1971_v26 = vsel %vm1958_vm13, %v1937_v59, %v9723_v0  ;;  %v1970_v2 = vsel %vm1958_vm13, %v11079_v38, %v1937_v59 }
 0x4ca   : > { %v6077_v60 = vadd.f32 %v4432_v35, %v9069_v11  ;;  %v4434_v17 = vpop.f32.mrb[2].mxu0  ;;  %2720 = vrot.lane.b32.xlu0 %v9665_v37, %s6778_s10  ;;  %5048 = vmatprep.subr.bf16.mxu0 %v1971_v26 }
 0x4cb   : > { %v6076_v30 = vadd.f32 %v6075_v21, %v9182_v50  ;;  %v6079_v23 = vadd.f32 %v4434_v17, %v9076_v53  ;;  %v4436_v8 = vpop.f32.mrb[3].mxu0  ;;  %5049 = vmatpush1.bf16.msra.mxu0 %v1970_v2  ;;  %v9738_v47 = vpop.permute.xlu1 %3294  ;;  %v11080_v50 = vld [vmem:[#allocation133_spill] sm:$0xff] }
 0x4cc   : > { %v6078_v0 = vadd.f32 %v6077_v60, %v9189_v51  ;;  %v6081_v45 = vadd.f32 %v4436_v8, %v9080_v63  ;;  %v3293_v59 = vpop.permute.xlu0 %3292 }
 0x4cd   : > { %5620 = vst [vmem:[%s9742_s11] sm:$0xff] %v6076_v30  ;;  %v6080_v11 = vadd.f32 %v6079_v23, %v9196_v46  ;;  %2036 = vrot.lane.b32.xlu1 %v9525_v56, %s6772_s19  ;;  %v3320_v53 = vsel %vm3302_vm12, %v3293_v59, %v9738_v47  ;;  %v3319_v51 = vsel %vm3302_vm12, %v11080_v50, %v3293_v59  ;;  %v11081_v46 = vld [vmem:[#allocation32_spill] sm:$0xff] }
 0x4ce   : > { %5621 = vst [vmem:[%s9742_s11 + $0x8] sm:$0xff] %v6078_v0  ;;  %v6082_v63 = vadd.f32 %v6081_v45, %v9200_v62  ;;  %1700 = vrot.lane.b32.xlu0 %v9525_v56, %s6767_s18  ;;  %4837 = vmatprep.subr.bf16.mxu1 %v3320_v53  ;;  %v635_v17 = vsel %vm614_vm1, %v10909_v28, %v11081_v46  ;;  %v11082_v45 = vld [vmem:[#allocation115_spill] sm:$0xff] }
 0x4cf   : > { %5627 = vst [vmem:[%s9742_s11 + $0x38] sm:$0xff] %v6080_v11  ;;  %4838 = vmatpush1.bf16.msra.mxu1 %v3319_v51  ;;  %v9757_v21 = vpop.permute.xlu1 %1954  ;;  %v6540_v28 = vld [vmem:[#allocation3 + $0x28] ss:$44 sps:$4 sm:$0xff]  }
 0x4d0   : > { %5628 = vst [vmem:[%s9742_s11 + $0x40] sm:$0xff] %v6082_v63  ;;  %v4440_v35 = vpop.f32.mrb[4].mxu0  ;;  %v1953_v26 = vpop.permute.xlu0 %1952  ;;  %5885 = vmatprep.subr.bf16.mxu1 %v635_v17  ;;  %v11085_v63 = vld [vmem:[#allocation116_spill] sm:$0xff] }
 0x4d1   : > { %v6083_v0 = vadd.f32 %v4440_v35, %v9102_v20  ;;  %v4442_v38 = vpop.f32.mrb[5].mxu0  ;;  %2738 = vrot.lane.b32.xlu1 %v9567_v4, %s6778_s10  ;;  %v1978_v62 = vsel %vm1958_vm13, %v1953_v26, %v9757_v21  ;;  %v1977_v2 = vsel %vm1958_vm13, %v11082_v45, %v1953_v26  ;;  %v6541_v45 = vld [vmem:[#allocation3 + $0x80] ss:$44 sps:$4 sm:$0xff]  }
 0x4d2   : > { %v6085_v60 = vadd.f32 %v4442_v38, %v9109_v31  ;;  %v4444_v30 = vpop.f32.mrb[6].mxu0  ;;  %2736 = vrot.lane.b32.xlu0 %v9688_v52, %s6778_s10  ;;  %5873 = vmatmul.mubr.msk.bf16.vlgmr.msra.gmra.mrb[24].mxu1 %vm1958_vm13, %v6540_v28  ;;  %v11083_v31 = vld [vmem:[#allocation35_spill] sm:$0xff] }
 0x4d3   : > { %v6087_v20 = vadd.f32 %v4444_v30, %v9116_v61  ;;  %v6084_v23 = vadd.f32 %v6083_v0, %v9357_v12  ;;  %5050 = vmatprep.subr.bf16.mxu0 %v1978_v62  ;;  %v4446_v8 = vpop.f32.mrb[7].mxu0  ;;  %5886 = vmatpush3.bf16.msra.mxu1 %v9642_v5  ;;  %v9777_v59 = vpop.permute.xlu1 %2034  ;;  %v733_v11 = vsel %vm11084_vm4, %v10912_v41, %v11083_v31  ;;  %vm11096_vm4 = vcmask 56320  }
 0x4d4   : > { %v6089_v53 = vadd.f32 %v4446_v8, %v9120_v18  ;;  %v6086_v50 = vadd.f32 %v6085_v60, %v9368_v1  ;;  %5051 = vmatpush1.bf16.msra.mxu0 %v1977_v2  ;;  %v2033_v61 = vpop.permute.xlu0 %2032  ;;  %5887 = vmatprep.subr.bf16.mxu1 %v733_v11  ;;  %v11090_v8 = vld [vmem:[#allocation121_spill] sm:$0xff] }
 0x4d5   : > { %5634 = vst [vmem:[%s9742_s11 + $0x70] sm:$0xff] %v6084_v23  ;;  %v6088_v12 = vadd.f32 %v6087_v20, %v9372_v44  ;;  %2052 = vrot.lane.b32.xlu1 %v9554_v42, %s6772_s19  ;;  %v2076_v51 = vsel %vm2070_vm15, %v2033_v61, %v9777_v59  ;;  %v2075_v41 = vsel %vm2070_vm15, %v11085_v63, %v2033_v61  ;;  %v11086_v44 = vld [vmem:[#allocation38_spill] sm:$0xff] }
 0x4d6   : > { %4879 = vmatprep.mubr.bf16.mxu1 %v11078_v25  ;;  %5635 = vst [vmem:[%s9742_s11 + $0x78] sm:$0xff] %v6086_v50  ;;  %v6090_v18 = vadd.f32 %v6089_v53, %v9379_v10  ;;  %1716 = vrot.lane.b32.xlu0 %v9554_v42, %s6767_s18  ;;  %v740_v46 = vsel %vm11087_vm5, %v10917_v32, %v11086_v44  ;;  %v11094_v53 = vld [vmem:[#allocation44_spill] sm:$0xff]  ;;  %v11095_v50 = vld [vmem:[#allocation45_spill] sm:$0xff]  ;;  %vm11098_vm5 = vmmov %vm11096_vm4 }
 0x4d7   : > { %5052 = vmatprep.subr.bf16.mxu0 %v2076_v51  ;;  %5641 = vst [vmem:[%s9742_s11 + $0xa8] sm:$0xff] %v6088_v12  ;;  %5888 = vmatpush3.bf16.msra.mxu1 %v9665_v37  ;;  %v9799_v1 = vpop.permute.xlu1 %2050  ;;  %v845_v61 = vsel %vm838_vm3, %v11095_v50, %v11094_v53  ;;  %v11097_v51 = vld [vmem:[#allocation122_spill] sm:$0xff]  ;;  %v9861_v44 = vld [vmem:[#allocation3 + $0x10] ss:$44 sps:$4 sm:$0xff]   ;;  %v9907_v50 = vld [vmem:[#allocation3 + $0x68] ss:$44 sps:$4 sm:$0xff]  }
 0x4d8   : > { %5642 = vst [vmem:[%s9742_s11 + $0xb0] sm:$0xff] %v6090_v18  ;;  %5053 = vmatpush1.bf16.msra.mxu0 %v2075_v41  ;;  %v4450_v17 = vpop.f32.mrb[8].mxu0  ;;  %v2049_v35 = vpop.permute.xlu0 %2048  ;;  %5889 = vmatprep.subr.bf16.mxu1 %v740_v46  ;;  %v9856_v41 = vld [vmem:[%s7042_s6 + $0x74] ss:$28 sps:$4 sm:$0xff]   ;;  %v6542_v18 = vld [vmem:[#allocation3 + $0xd8] ss:$44 sps:$4 sm:$0xff]  }
 0x4d9   : > { %v6091_v10 = vadd.f32 %v4450_v17, %v9142_v48  ;;  %v4452_v26 = vpop.f32.mrb[9].mxu0  ;;  %2818 = vrot.lane.b32.xlu1 %v9525_v56, %s6779_s20  ;;  %v2083_v0 = vsel %vm2070_vm15, %v2049_v35, %v9799_v1  ;;  %v2082_v38 = vsel %vm2070_vm15, %v9005_v54, %v2049_v35  ;;  %v11099_v46 = vld [vmem:[#allocation20_spill] sm:$0xff]  ;;  %v11100_v17 = vld [vmem:[#allocation21_spill] sm:$0xff] }
 0x4da   : > { %v6093_v62 = vadd.f32 %v4452_v26, %v9149_v6  ;;  %v4454_v32 = vpop.f32.mrb[10].mxu0  ;;  %2816 = vrot.lane.b32.xlu0 %v9642_v5, %s6779_s20  ;;  %5874 = vmatmul.mubr.msk.bf16.gmra.mrb[28].mxu1 %vm1958_vm13, %v6541_v45  ;;  %v11088_v6 = vld [vmem:[#allocation41_spill] sm:$0xff] }
 0x4db   : > { %v6095_v48 = vadd.f32 %v4454_v32, %v9156_v27  ;;  %v6092_v2 = vadd.f32 %v6091_v10, %v9399_v29  ;;  %5054 = vmatprep.subr.bf16.mxu0 %v2083_v0  ;;  %v4456_v60 = vpop.f32.mrb[11].mxu0  ;;  %5890 = vmatpush3.bf16.msra.mxu1 %v9688_v52  ;;  %v9819_v54 = vpop.permute.xlu1 %2066  ;;  %v747_v30 = vsel %vm11089_vm0, %v10922_v49, %v11088_v6  ;;  %vm11101_vm0 = vmmov %vm11093_vm2  ;;  %v11102_v0 = vld [vmem:[#allocation48_spill] sm:$0xff]  ;;  %v11105_v45 = vld [vmem:[#allocation125_spill] sm:$0xff] }
 0x4dc   : > { %v6097_v28 = vadd.f32 %v4456_v60, %v9160_v13  ;;  %v6094_v20 = vadd.f32 %v6093_v62, %v9410_v22  ;;  %5055 = vmatpush1.bf16.msra.mxu0 %v2082_v38  ;;  %v2065_v27 = vpop.permute.xlu0 %2064  ;;  %5891 = vmatprep.subr.bf16.mxu1 %v747_v30  ;;  %v11091_v22 = vld [vmem:[#allocation17_spill] sm:$0xff]  ;;  %v516_v35 = vsel %vm11101_vm0, %v11100_v17, %v11099_v46  ;;  %v11108_v60 = vld [vmem:[#allocation24_spill] sm:$0xff]  ;;  %v11122_v17 = vld [vmem:[#allocation30_spill] sm:$0xff] }
 0x4dd   : > { %5648 = vst [vmem:[%s9742_s11 + $0xe0] sm:$0xff] %v6092_v2  ;;  %v6096_v29 = vadd.f32 %v6095_v48, %v9417_v24  ;;  %2068 = vrot.lane.b32.xlu1 %v9567_v4, %s6772_s19  ;;  %v2090_v23 = vsel %vm2070_vm15, %v2065_v27, %v9819_v54  ;;  %v2089_v49 = vsel %vm2070_vm15, %v11090_v8, %v2065_v27  ;;  %v11092_v24 = vld [vmem:[#allocation18_spill] sm:$0xff]  ;;  %v11103_v38 = vld [vmem:[#allocation49_spill] sm:$0xff]  ;;  %v11107_v2 = vld [vmem:[#allocation23_spill] sm:$0xff]  ;;  %s6785_s19 = smov [#allocation9]  }
 0x4de   : > { %4889 = vmatprep.mubr.bf16.mxu1 %v11078_v25  ;;  %5649 = vst [vmem:[%s9742_s11 + $0xe8] sm:$0xff] %v6094_v20  ;;  %v6098_v13 = vadd.f32 %v6097_v28, %v9426_v14  ;;  %1732 = vrot.lane.b32.xlu0 %v9567_v4, %s6767_s18  ;;  %v509_v31 = vsel %vm11093_vm2, %v11092_v24, %v11091_v22  ;;  %vm11104_vm2 = vmmov %vm11096_vm4  ;;  %v6544_v28 = vld [vmem:[#allocation3 + $0x4] ss:$44 sps:$4 sm:$0xff]   ;;  %v9885_v20 = vld [vmem:[#allocation3 + $0x6c] ss:$44 sps:$4 sm:$0xff]  }
 0x4df   : > { %5056 = vmatprep.subr.bf16.mxu0 %v2090_v23  ;;  %5655 = vst [vmem:[%s9742_s11 + $0x118] sm:$0xff] %v6096_v29  ;;  %5892 = vmatpush3.bf16.msra.mxu1 %v509_v31  ;;  %v9843_v11 = vpop.permute.xlu1 %2146  ;;  %v852_v62 = vsel %vm838_vm3, %v11103_v38, %v11102_v0  ;;  %v11110_v29 = vld [vmem:[#allocation54_spill] sm:$0xff]  ;;  %v11115_v31 = vld [vmem:[#allocation27_spill] sm:$0xff]  ;;  %v11121_v46 = vld [vmem:[#allocation29_spill] sm:$0xff] }
 0x4e0   : > { %5656 = vst [vmem:[%s9742_s11 + $0x120] sm:$0xff] %v6098_v13  ;;  %5057 = vmatpush1.bf16.msra.mxu0 %v2089_v49  ;;  %v2145_v12 = vpop.permute.xlu0 %2144  ;;  %5893 = vmatprep.subr.bf16.mxu1 %v845_v61  ;;  %v859_v23 = vsel %vm838_vm3, %v10932_v40, %v11110_v29  ;;  %v11112_v49 = vld [vmem:[#allocation126_spill] sm:$0xff]  ;;  %vm11117_vm3 = vcmask 949248   ;;  %v11123_v38 = vld [vmem:[#allocation107_spill] sm:$0xff] }
 0x4e1   : > { %2834 = vrot.lane.b32.xlu1 %v9554_v42, %s6779_s20  ;;  %v2188_v14 = vsel %vm11096_vm4, %v2145_v12, %v9843_v11  ;;  %v2187_v63 = vsel %vm11098_vm5, %v11097_v51, %v2145_v12  ;;  %vm11106_vm4 = vmmov %vm11104_vm2  ;;  %v9898_v22 = vld [vmem:[%s7042_s6 + $0x4] ss:$28 sps:$4 sm:$0xff]   ;;  %v11116_v12 = vld [vmem:[#allocation60_spill] sm:$0xff] }
 0x4e2   : > { %2832 = vrot.lane.b32.xlu0 %v9665_v37, %s6779_s20  ;;  %5875 = vmatmul.mubr.msk.bf16.gmra.mrb[32].mxu1 %vm1958_vm13, %v6542_v18  ;;  %vm11109_vm5 = vmmov %vm11101_vm0  ;;  %v11114_v24 = vld [vmem:[#allocation26_spill] sm:$0xff] }
 0x4e3   : > { %5089 = vmatprep.subr.bf16.mxu0 %v2188_v14  ;;  %5059 = vmatmul.mubr.bf16.vlgmr.msra.gmra.mrb[12].mxu0 %v9861_v44  ;;  %v9867_v10 = vpop.permute.xlu1 %2162  ;;  %v523_v6 = vsel %vm11109_vm5, %v11108_v60, %v11107_v2  ;;  %vm11111_vm0 = vmmov %vm11104_vm2  ;;  %v621_v40 = vsel %vm614_vm1, %v11115_v31, %v11114_v24  ;;  %v957_v14 = vsel %vm11117_vm3, %v10935_v9, %v11116_v12  ;;  %v9939_v2 = vld [vmem:[%s7042_s6 + $0x3c] ss:$28 sps:$4 sm:$0xff]   ;;  %v6548_v60 = vld [vmem:[#allocation3] ss:$44 sps:$4 sm:$0xff]  }
 0x4e4   : > { %5090 = vmatpush1.bf16.msra.mxu0 %v2187_v63  ;;  %5894 = vmatpush3.bf16.msra.mxu1 %v516_v35  ;;  %v2161_v26 = vpop.permute.xlu0 %2160  ;;  %v11119_v63 = vld [vmem:[#allocation127_spill] sm:$0xff]  ;;  %v628_v35 = vsel %vm614_vm1, %v11122_v17, %v11121_v46  ;;  %v11141_v46 = vld [vmem:[#allocation74_spill] sm:$0xff] }
 0x4e5   : > { %5895 = vmatprep.subr.bf16.mxu1 %v852_v62  ;;  %2404 = vrot.lane.b32.xlu1 %v9856_v41, %s6775_s8  ;;  %v2195_v32 = vsel %vm11104_vm2, %v2161_v26, %v9867_v10  ;;  %v2194_v48 = vsel %vm11106_vm4, %v11105_v45, %v2161_v26  ;;  %vm11113_vm2 = vmmov %vm11111_vm0  ;;  %vm11118_vm4 = vcmask 48128   ;;  %v9926_v26 = vld [vmem:[#allocation3 + $0xc4] ss:$44 sps:$4 sm:$0xff]   ;;  %v11134_v24 = vld [vmem:[#allocation71_spill] sm:$0xff] }
 0x4e6   : > { %1812 = vrot.lane.b32.xlu0 %v9525_v56, %s6770_s1  ;;  %5091 = vmatprep.subr.bf16.mxu0 %v2195_v32  ;;  %vm11120_vm5 = vmmov %vm11118_vm4  ;;  %v11126_v45 = vld [vmem:[#allocation128_spill] sm:$0xff] }
 0x4e7   : > { %v9883_v30 = vpop.permute.xlu1 %2178  ;;  %5310 = vmatprep.mubr.bf16.mxu1 %v6544_v28  ;;  %5068 = vmatprep.mubr.bf16.mxu0 %v9885_v20 }
 0x4e8   : > { %5092 = vmatpush1.bf16.msra.mxu0 %v2194_v48  ;;  %5896 = vmatpush3.bf16.msra.mxu1 %v523_v6  ;;  %v2177_v27 = vpop.permute.xlu0 %2176  ;;  %v11128_v6 = vld [vmem:[#allocation66_spill] sm:$0xff] }
 0x4e9   : > { %5897 = vmatprep.subr.bf16.mxu1 %v859_v23  ;;  %2850 = vrot.lane.b32.xlu1 %v9567_v4, %s6779_s20  ;;  %v2202_v8 = vsel %vm11111_vm0, %v2177_v27, %v9883_v30  ;;  %v2201_v13 = vsel %vm11113_vm2, %v11112_v49, %v2177_v27  ;;  %vm11124_vm0 = vcmask 867328   ;;  %vm11125_vm2 = vmmov %vm11118_vm4  ;;  %v9948_v27 = vld [vmem:[#allocation3 + $0xc0] ss:$44 sps:$4 sm:$0xff]   ;;  %v11129_v23 = vld [vmem:[#allocation113_spill] sm:$0xff] }
 0x4ea   : > { %2848 = vrot.lane.b32.xlu0 %v9688_v52, %s6779_s20  ;;  %5093 = vmatprep.subr.bf16.mxu0 %v2202_v8  ;;  %v1293_v62 = vsel %vm11124_vm0, %v10990_v34, %v11123_v38  ;;  %vm11127_vm1 = vmmov %vm11125_vm2  ;;  %v964_v34 = vsel %vm11117_vm3, %v10942_v39, %v11128_v6  ;;  %v11132_v49 = vld [vmem:[#allocation129_spill] sm:$0xff]  ;;  %v11147_v6 = vld [vmem:[#allocation131_spill] sm:$0xff] }
 0x4eb   : > { %v9905_v53 = vpop.permute.xlu1 %2258  ;;  %5069 = vmatmul.mubr.bf16.gmra.mrb[16].mxu0 %v9907_v50 }
 0x4ec   : > { %5094 = vmatpush1.bf16.msra.mxu0 %v2201_v13  ;;  %5898 = vmatpush3.bf16.msra.mxu1 %v621_v40  ;;  %v2257_v61 = vpop.permute.xlu0 %2256 }
 0x4ed   : > { %5899 = vmatprep.subr.bf16.mxu1 %v957_v14  ;;  %2484 = vrot.lane.b32.xlu1 %v9898_v22, %s6776_s9  ;;  %v2300_v51 = vsel %vm11118_vm4, %v2257_v61, %v9905_v53  ;;  %v2299_v18 = vsel %vm11120_vm5, %v11119_v63, %v2257_v61  ;;  %vm11130_vm4 = vmmov %vm11124_vm0  ;;  %v9967_v61 = vld [vmem:[#allocation3 + $0x1c] ss:$44 sps:$4 sm:$0xff]   ;;  %v11139_v63 = vld [vmem:[#allocation130_spill] sm:$0xff] }
 0x4ee   : > { %2148 = vrot.lane.b32.xlu0 %v9525_v56, %s6773_s23  ;;  %5095 = vmatprep.subr.bf16.mxu0 %v2300_v51  ;;  %v1300_v8 = vsel %vm11130_vm4, %v10996_v3, %v11129_v23  ;;  %vm11131_vm5 = vmmov %vm11127_vm1  ;;  %v6550_v3 = vld [vmem:[#allocation3 + $0x5c] ss:$44 sps:$4 sm:$0xff]  }
 0x4ef   : > { %v9924_v9 = vpop.permute.xlu1 %2274  ;;  %5078 = vmatprep.mubr.bf16.mxu0 %v9926_v26  ;;  %vm11133_vm0 = vmmov %vm11127_vm1  ;;  %v11136_v14 = vld [vmem:[#allocation119_spill] sm:$0xff]  ;;  %v6554_v23 = vld [vmem:[#allocation3 + $0xb0] ss:$44 sps:$4 sm:$0xff]  }
 0x4f0   : > { %5096 = vmatpush1.bf16.msra.mxu0 %v2299_v18  ;;  %5900 = vmatpush3.bf16.msra.mxu1 %v628_v35  ;;  %v2273_v0 = vpop.permute.xlu0 %2272 }
 0x4f1   : > { %5919 = vmatprep.subr.bf16.mxu1 %v1293_v62  ;;  %2930 = vrot.lane.b32.xlu1 %v9525_v56, %s6780_s22  ;;  %v2307_v32 = vsel %vm11125_vm2, %v2273_v0, %v9924_v9  ;;  %v2306_v48 = vsel %vm11127_vm1, %v11126_v45, %v2273_v0  ;;  %vm11135_vm2 = vmmov %vm11117_vm3  ;;  %vm11138_vm3 = vcmask 457728   ;;  %v6553_v62 = vld [vmem:[#allocation3 + $0xb4] ss:$44 sps:$4 sm:$0xff]  }
 0x4f2   : > { %2928 = vrot.lane.b32.xlu0 %v9642_v5, %s6780_s22  ;;  %5097 = vmatprep.subr.bf16.mxu0 %v2307_v32  ;;  %v971_v31 = vsel %vm11135_vm2, %v10948_v36, %v11134_v24  ;;  %vm11137_vm1 = vmmov %vm11130_vm4  ;;  %v11144_v32 = vld [vmem:[#allocation77_spill] sm:$0xff] }
 0x4f3   : > { %5311 = vmatmul.mubr.bf16.vlgmr.msra.gmra.mrb[36].mxu1 %v6548_v60  ;;  %v9946_v28 = vpop.permute.xlu1 %2290  ;;  %5079 = vmatmul.mubr.bf16.gmra.mrb[20].mxu0 %v9948_v27  ;;  %v1307_v51 = vsel %vm11137_vm1, %v11002_v16, %v11136_v14  ;;  %vm11140_vm4 = vmmov %vm11138_vm3  ;;  %v6552_v16 = vld [vmem:[#allocation3 + $0x58] ss:$44 sps:$4 sm:$0xff]  }
 0x4f4   : > { %5098 = vmatpush1.bf16.msra.mxu0 %v2306_v48  ;;  %5920 = vmatpush3.bf16.msra.mxu1 %v964_v34  ;;  %v2289_v29 = vpop.permute.xlu0 %2288  ;;  %v11149_v34 = vld [vmem:[#allocation82_spill] sm:$0xff] }
 0x4f5   : > { %5921 = vmatprep.subr.bf16.mxu1 %v1300_v8  ;;  %2500 = vrot.lane.b32.xlu1 %v9939_v2, %s6776_s9  ;;  %v2314_v39 = vsel %vm11131_vm5, %v2289_v29, %v9946_v28  ;;  %v2313_v13 = vsel %vm11133_vm0, %v11132_v49, %v2289_v29  ;;  %vm11142_vm5 = vcmask 883712   ;;  %vm11143_vm0 = vcmask 228352  }
 0x4f6   : > { %2164 = vrot.lane.b32.xlu0 %v9554_v42, %s6773_s23  ;;  %5099 = vmatprep.subr.bf16.mxu0 %v2314_v39  ;;  %v1069_v17 = vsel %vm11142_vm5, %v10954_v43, %v11141_v46  ;;  %vm11145_vm2 = vmmov %vm11142_vm5  ;;  %v6555_v39 = vld [vmem:[#allocation3 + $0xc] ss:$44 sps:$4 sm:$0xff]   ;;  %v11161_v46 = vld [vmem:[#allocation94_spill] sm:$0xff] }
 0x4f7   : > { %v9965_v40 = vpop.permute.xlu1 %2370  ;;  %5318 = vmatprep.mubr.bf16.mxu1 %v6550_v3  ;;  %5121 = vmatprep.mubr.bf16.mxu0 %v9967_v61  ;;  %v1076_v43 = vsel %vm11145_vm2, %v10961_v58, %v11144_v32  ;;  %vm11146_vm1 = vmmov %vm11143_vm0 }
 0x4f8   : > { %5100 = vmatpush1.bf16.msra.mxu0 %v2313_v13  ;;  %5922 = vmatpush3.bf16.msra.mxu1 %v971_v31  ;;  %v2369_v12 = vpop.permute.xlu0 %2368  ;;  %vm11150_vm5 = vmmov %vm11145_vm2  ;;  %v11152_v13 = vld [vmem:[#allocation132_spill] sm:$0xff] }
 0x4f9   : > { %5923 = vmatprep.subr.bf16.mxu1 %v1307_v51  ;;  %2946 = vrot.lane.b32.xlu1 %v9554_v42, %s6780_s22  ;;  %v2412_v36 = vsel %vm11138_vm3, %v2369_v12, %v9965_v40  ;;  %v2411_v18 = vsel %vm11140_vm4, %v11139_v63, %v2369_v12  ;;  %vm11148_vm4 = vmmov %vm11138_vm3  ;;  %v1083_v29 = vsel %vm11150_vm5, %v10966_v19, %v11149_v34  ;;  %v11155_v12 = vld [vmem:[#allocation88_spill] sm:$0xff]  ;;  %vm11158_vm5 = vcmask 449536  }
 0x4fa   : > { %2944 = vrot.lane.b32.xlu0 %v9665_v37, %s6780_s22  ;;  %5101 = vmatprep.subr.bf16.mxu0 %v2412_v36 }
 0x4fb   : > { %v2385_v35 = vpop.permute.xlu1 %2384  ;;  %5319 = vmatmul.mubr.bf16.gmra.mrb[40].mxu1 %v6552_v16 }
 0x4fc   : > { %5102 = vmatpush1.bf16.msra.mxu0 %v2411_v18  ;;  %5924 = vmatpush3.bf16.msra.mxu1 %v1069_v17  ;;  %v1365_v0 = vpop.permute.xlu0 %1364  ;;  %v2418_v58 = vsel %vm11148_vm4, %v11147_v6, %v2385_v35  ;;  %vm11157_vm4 = vcmask 220160   ;;  %v11159_v18 = vld [vmem:[#allocation134_spill] sm:$0xff]  ;;  %v11162_v17 = vld [vmem:[#allocation95_spill] sm:$0xff] }
 0x4fd   : > { %2516 = vrot.lane.b32.xlu1 %v9856_v41, %s6776_s9  ;;  %v1405_v38 = vsel %vm11143_vm0, %v9397_v15, %v1365_v0  ;;  %5326 = vmatprep.mubr.bf16.mxu1 %v6553_v62  ;;  %vm11151_vm0 = vmmov %vm11138_vm3  ;;  %v11164_v0 = vld [vmem:[#allocation135_spill] sm:$0xff]  ;;  %v11169_v6 = vld [vmem:[#allocation102_spill] sm:$0xff] }
 0x4fe   : > { %2180 = vrot.lane.b32.xlu0 %v9567_v4, %s6773_s23  ;;  %5925 = vmatprep.subr.bf16.mxu1 %v1405_v38  ;;  %vm11153_vm2 = vmmov %vm11151_vm0  ;;  %s6664_s23 = sshll.u32 %s6785_s19, 4  ;;  %s6665_s23 = int_to_ptr.vmem [resolvable:$false] %s6664_s23 }
 0x4ff   : > { %v1381_v45 = vpop.permute.xlu1 %1380 }
 0x500   : > { %5926 = vmatpush3.bf16.msra.mxu1 %v1076_v43  ;;  %v9993_v48 = vpop.permute.xlu0 %2386  ;;  %v1412_v60 = vsel %vm11146_vm1, %v9439_v33, %v1381_v45  ;;  %v11167_v45 = vld [vmem:[#allocation43_spill] sm:$0xff] }
 0x501   : > { %2962 = vrot.lane.b32.xlu1 %v9567_v4, %s6780_s22  ;;  %v2419_v15 = vsel %vm11138_vm3, %v2385_v35, %v9993_v48  ;;  %5927 = vmatprep.subr.bf16.mxu1 %v1412_v60  ;;  %vm11156_vm3 = vcmask 875520  }
 0x502   : > { %2960 = vrot.lane.b32.xlu0 %v9688_v52, %s6780_s22  ;;  %5103 = vmatprep.subr.bf16.mxu0 %v2419_v15  ;;  %v1181_v14 = vsel %vm11156_vm3, %v10971_v57, %v11155_v12  ;;  %v11168_v15 = vld [vmem:[#allocation101_spill] sm:$0xff]  ;;  %v11176_v12 = vld [vmem:[#allocation16_spill] sm:$0xff] }
 0x503   : > { %5104 = vmatpush1.bf16.msra.mxu0 %v2418_v58  ;;  %v10008_v33 = vpop.permute.xlu1 %2402  ;;  %5327 = vmatmul.mubr.bf16.gmra.mrb[44].mxu1 %v6554_v23  ;;  %v11171_v23 = vld [vmem:[#allocation53_spill] sm:$0xff] }
 0x504   : > { %5928 = vmatpush3.bf16.msra.mxu1 %v1083_v29  ;;  %v2401_v8 = vpop.permute.xlu0 %2400  ;;  %5367 = vmatprep.mubr.bf16.mxu1 %v6555_v39 }
 0x505   : > { %2596 = vrot.lane.b32.xlu1 %v9898_v22, %s6777_s7  ;;  %v2426_v49 = vsel %vm11151_vm0, %v2401_v8, %v10008_v33  ;;  %v2425_v24 = vsel %vm11153_vm2, %v11152_v13, %v2401_v8  ;;  %vm11160_vm0 = vmmov %vm11158_vm5 }
 0x506   : > { %2260 = vrot.lane.b32.xlu0 %v9525_v56, %s6774_s5  ;;  %5105 = vmatprep.subr.bf16.mxu0 %v2426_v49  ;;  %vm11163_vm2 = vmmov %vm11156_vm3  ;;  %v11172_v49 = vld [vmem:[#allocation15_spill] sm:$0xff] }
 0x507   : > { %5106 = vmatpush1.bf16.msra.mxu0 %v2425_v24  ;;  %v2481_v19 = vpop.permute.xlu1 %2480  ;;  %v1188_v35 = vsel %vm11163_vm2, %v11162_v17, %v11161_v46  ;;  %vm11166_vm3 = vmmov %vm11160_vm0  ;;  %v11180_v46 = vld [vmem:[#allocation55_spill] sm:$0xff] }
 0x508   : > { %v1397_v31 = vpop.permute.xlu0 %1396  ;;  %v2523_v57 = vsel %vm11160_vm0, %v11159_v18, %v2481_v19  ;;  %v11179_v18 = vld [vmem:[#allocation98_spill] sm:$0xff] }
 0x509   : > { %3042 = vrot.lane.b32.xlu1 %v9525_v56, %s11154_s21  ;;  %v1419_v3 = vsel %vm11146_vm1, %v9459_v55, %v1397_v31  ;;  %vm11165_vm1 = vmmov %vm11160_vm0 }
 0x50a   : > { %3040 = vrot.lane.b32.xlu0 %v9642_v5, %s11154_s21  ;;  %5929 = vmatprep.subr.bf16.mxu1 %v1419_v3  ;;  %v11175_v3 = vld [vmem:[#allocation61_spill] sm:$0xff] }
 0x50b   : > { %5930 = vmatpush3.bf16.msra.mxu1 %v1181_v14  ;;  %v1477_v51 = vpop.permute.xlu1 %1476 }
 0x50c   : > { %v10027_v36 = vpop.permute.xlu0 %2482  ;;  %v1517_v63 = vsel %vm11157_vm4, %v9479_v7, %v1477_v51 }
 0x50d   : > { %2612 = vrot.lane.b32.xlu1 %v9939_v2, %s6777_s7  ;;  %v2524_v55 = vsel %vm11158_vm5, %v2481_v19, %v10027_v36  ;;  %5931 = vmatprep.subr.bf16.mxu1 %v1517_v63  ;;  %vm11170_vm5 = vmmov %vm11163_vm2  ;;  %v11174_v19 = vld [vmem:[#allocation52_spill] sm:$0xff] }
 0x50e   : > { %2276 = vrot.lane.b32.xlu0 %v9554_v42, %s6774_s5  ;;  %5107 = vmatprep.subr.bf16.mxu0 %v2524_v55  ;;  %v1195_v58 = vsel %vm11170_vm5, %v11169_v6, %v11168_v15  ;;  %vm11173_vm2 = vmmov %vm11160_vm0  ;;  %v11186_v15 = vld [vmem:[#allocation99_spill] sm:$0xff] }
 0x50f   : > { %5108 = vmatpush1.bf16.msra.mxu0 %v2523_v57  ;;  %5932 = vmatpush3.bf16.msra.mxu1 %v1188_v35  ;;  %v10042_v7 = vpop.permute.xlu1 %2498 }
 0x510   : > { %v2497_v16 = vpop.permute.xlu0 %2496 }
 0x511   : > { %v2530_v38 = vsel %vm11165_vm1, %v11164_v0, %v2497_v16  ;;  %3058 = vrot.lane.b32.xlu1 %v9554_v42, %s11154_s21  ;;  %v2531_v62 = vsel %vm11166_vm3, %v2497_v16, %v10042_v7  ;;  %vm11177_vm1 = vcmask 441344   ;;  %v11181_v16 = vld [vmem:[#allocation64_spill] sm:$0xff] }
 0x512   : > { %3056 = vrot.lane.b32.xlu0 %v9665_v37, %s11154_s21  ;;  %5109 = vmatprep.subr.bf16.mxu0 %v2531_v62  ;;  %vm11178_vm3 = vmmov %vm11177_vm1  ;;  %v11183_v62 = vld [vmem:[#allocation19_spill] sm:$0xff] }
 0x513   : > { %5110 = vmatpush1.bf16.msra.mxu0 %v2530_v38  ;;  %v2513_v32 = vpop.permute.xlu1 %2512  ;;  %v11182_v38 = vld [vmem:[#allocation72_spill] sm:$0xff]  ;;  %vm11184_vm5 = vmmov %vm11177_vm1 }
 0x514   : > { %v1493_v43 = vpop.permute.xlu0 %1492  ;;  %v2537_v13 = vsel %vm11173_vm2, %v11172_v49, %v2513_v32  ;;  %vm11188_vm2 = vcmask 211968   ;;  %v11190_v49 = vld [vmem:[#allocation78_spill] sm:$0xff] }
 0x515   : > { %2628 = vrot.lane.b32.xlu1 %v9856_v41, %s6777_s7  ;;  %v1524_v60 = vsel %vm11157_vm4, %v11167_v45, %v1493_v43 }
 0x516   : > { %2292 = vrot.lane.b32.xlu0 %v9567_v4, %s6774_s5  ;;  %5933 = vmatprep.subr.bf16.mxu1 %v1524_v60  ;;  %s6666_s5 = scalar_lea.vmem %s6665_s23, 10752 }
 0x517   : > { %5934 = vmatpush3.bf16.msra.mxu1 %v1195_v58  ;;  %v1829_v34 = vpop.permute.xlu1 %1828  ;;  %v11187_v58 = vld [vmem:[#allocation67_spill] sm:$0xff] }
 0x518   : > { %v10061_v29 = vpop.permute.xlu0 %2514  ;;  %v1860_v8 = vsel %vm1846_vm14, %v11171_v23, %v1829_v34 }
 0x519   : > { %3074 = vrot.lane.b32.xlu1 %v9567_v4, %s11154_s21  ;;  %v2538_v39 = vsel %vm11160_vm0, %v2513_v32, %v10061_v29  ;;  %5953 = vmatprep.subr.bf16.mxu1 %v1860_v8  ;;  %vm11185_vm0 = vmmov %vm11177_vm1  ;;  %v11189_v8 = vld [vmem:[#allocation73_spill] sm:$0xff] }
 0x51a   : > { %3072 = vrot.lane.b32.xlu0 %v9688_v52, %s11154_s21  ;;  %5111 = vmatprep.subr.bf16.mxu0 %v2538_v39 }
 0x51b   : > { %5112 = vmatpush1.bf16.msra.mxu0 %v2537_v13  ;;  %v10073_v24 = vpop.permute.xlu1 %2594  ;;  %5368 = vmatmul.mubr.bf16.vlgmr.msra.gmra.mrb[48].mxu1 %v11174_v19  ;;  %v11191_v13 = vld [vmem:[#allocation22_spill] sm:$0xff] }
 0x51c   : > { %v2593_v31 = vpop.permute.xlu0 %2592  ;;  %5375 = vmatprep.mubr.bf16.mxu1 %v11175_v3 }
 0x51d   : > { %v2635_v14 = vsel %vm11177_vm1, %v11176_v12, %v2593_v31  ;;  %2708 = vrot.lane.b32.xlu1 %v9898_v22, %s6778_s10  ;;  %v2636_v51 = vsel %vm11178_vm3, %v2593_v31, %v10073_v24  ;;  %vm11192_vm1 = vmmov %vm11185_vm0 }
 0x51e   : > { %2372 = vrot.lane.b32.xlu0 %v9898_v22, %s6775_s8  ;;  %5113 = vmatprep.subr.bf16.mxu0 %v2636_v51  ;;  %vm11193_vm3 = vmmov %vm11185_vm0 }
 0x51f   : > { %5114 = vmatpush1.bf16.msra.mxu0 %v2635_v14  ;;  %v1845_v63 = vpop.permute.xlu1 %1844  ;;  %v11194_v14 = vld [vmem:[#allocation108_spill] sm:$0xff] }
 0x520   : > { %v1509_v55 = vpop.permute.xlu0 %1508  ;;  %v1867_v57 = vsel %vm1846_vm14, %v11179_v18, %v1845_v63  ;;  %v11195_v63 = vld [vmem:[#allocation75_spill] sm:$0xff] }
 0x521   : > { %v1531_v17 = vsel %vm11157_vm4, %v11180_v46, %v1509_v55  ;;  %3154 = vrot.lane.b32.xlu1 %v9525_v56, %s6782_s16  ;;  %vm11196_vm4 = vmmov %vm11188_vm2  ;;  %v11197_v46 = vld [vmem:[#allocation25_spill] sm:$0xff] }
 0x522   : > { %3152 = vrot.lane.b32.xlu0 %v9642_v5, %s6782_s16  ;;  %5954 = vmatpush3.bf16.msra.mxu1 %v1531_v17 }
 0x523   : > { %5955 = vmatprep.subr.bf16.mxu1 %v1867_v57  ;;  %v10093_v35 = vpop.permute.xlu1 %2610  ;;  %5376 = vmatmul.mubr.bf16.gmra.mrb[52].mxu1 %v11181_v16 }
 0x524   : > { %v2609_v0 = vpop.permute.xlu0 %2608  ;;  %5383 = vmatprep.mubr.bf16.mxu1 %v11182_v38 }
 0x525   : > { %v2642_v32 = vsel %vm11184_vm5, %v11183_v62, %v2609_v0  ;;  %3044 = vrot.lane.b32.xlu1 %v9898_v22, %s11154_s21  ;;  %v2643_v43 = vsel %vm11185_vm0, %v2609_v0, %v10093_v35  ;;  %v11198_v62 = vld [vmem:[#allocation83_spill] sm:$0xff]  ;;  %vm11199_vm5 = vmmov %vm11188_vm2 }
 0x526   : > { %2388 = vrot.lane.b32.xlu0 %v9939_v2, %s6775_s8  ;;  %5115 = vmatprep.subr.bf16.mxu0 %v2643_v43 }
 0x527   : > { %5116 = vmatpush1.bf16.msra.mxu0 %v2642_v32  ;;  %v1925_v45 = vpop.permute.xlu1 %1924 }
 0x528   : > { %v1589_v60 = vpop.permute.xlu0 %1588  ;;  %v1965_v6 = vsel %vm1958_vm13, %v11186_v15, %v1925_v45  ;;  %v10153_v45 = vld [vmem:[#allocation3 + $0x18] ss:$44 sps:$4 sm:$0xff]   ;;  %v10156_v15 = vld [vmem:[#allocation3 + $0x74] ss:$44 sps:$4 sm:$0xff]  }
 0x529   : > { %v1629_v34 = vsel %vm11188_vm2, %v11187_v58, %v1589_v60  ;;  %3170 = vrot.lane.b32.xlu1 %v9554_v42, %s6782_s16 }
 0x52a   : > { %3168 = vrot.lane.b32.xlu0 %v9665_v37, %s6782_s16  ;;  %5956 = vmatpush3.bf16.msra.mxu1 %v1629_v34 }
 0x52b   : > { %5957 = vmatprep.subr.bf16.mxu1 %v1965_v6  ;;  %v10113_v23 = vpop.permute.xlu1 %2626  ;;  %5384 = vmatmul.mubr.bf16.gmra.mrb[56].mxu1 %v11189_v8  ;;  %v11201_v8 = vld [vmem:[#allocation89_spill] sm:$0xff] }
 0x52c   : > { %v2625_v39 = vpop.permute.xlu0 %2624  ;;  %5424 = vmatprep.mubr.bf16.mxu1 %v11190_v49 }
 0x52d   : > { %v2649_v19 = vsel %vm11192_vm1, %v11191_v13, %v2625_v39  ;;  %3060 = vrot.lane.b32.xlu1 %v9939_v2, %s11154_s21  ;;  %v2650_v31 = vsel %vm11193_vm3, %v2625_v39, %v10113_v23  ;;  %v10177_v13 = vld [vmem:[#allocation3 + $0x70] ss:$44 sps:$4 sm:$0xff]  }
 0x52e   : > { %2724 = vrot.lane.b32.xlu0 %v9939_v2, %s6778_s10  ;;  %5117 = vmatprep.subr.bf16.mxu0 %v2650_v31  ;;  %v10180_v31 = vld [vmem:[#allocation3 + $0xcc] ss:$44 sps:$4 sm:$0xff]  }
 0x52f   : > { %5118 = vmatpush1.bf16.msra.mxu0 %v2649_v19  ;;  %v1941_v3 = vpop.permute.xlu1 %1940 }
 0x530   : > { %v1605_v12 = vpop.permute.xlu0 %1604  ;;  %v1972_v51 = vsel %vm1958_vm13, %v11194_v14, %v1941_v3 }
 0x531   : > { %v1636_v55 = vsel %vm11196_vm4, %v11195_v63, %v1605_v12  ;;  %3186 = vrot.lane.b32.xlu1 %v9567_v4, %s6782_s16  ;;  %vm11219_vm4 = vcmask 441344  }
 0x532   : > { %3184 = vrot.lane.b32.xlu0 %v9688_v52, %s6782_s16  ;;  %5958 = vmatpush3.bf16.msra.mxu1 %v1636_v55 }
 0x533   : > { %5959 = vmatprep.subr.bf16.mxu1 %v1972_v51  ;;  %v10133_v18 = vpop.permute.xlu1 %2706  ;;  %v11203_v51 = vld [vmem:[#allocation87_spill] sm:$0xff] }
 0x534   : > { %v2705_v57 = vpop.permute.xlu0 %2704 }
 0x535   : > { %v2747_v17 = vsel %vm2742_vm7, %v11197_v46, %v2705_v57  ;;  %3076 = vrot.lane.b32.xlu1 %v9856_v41, %s11154_s21  ;;  %v2748_v16 = vsel %vm2742_vm7, %v2705_v57, %v10133_v18  ;;  %v10201_v57 = vld [vmem:[#allocation3 + $0xc8] ss:$44 sps:$4 sm:$0xff]  }
 0x536   : > { %2740 = vrot.lane.b32.xlu0 %v9856_v41, %s6778_s10  ;;  %5119 = vmatprep.subr.bf16.mxu0 %v2748_v16 }
 0x537   : > { %5120 = vmatpush1.bf16.msra.mxu0 %v2747_v17  ;;  %v1957_v4 = vpop.permute.xlu1 %1956  ;;  %v10204_v17 = vld [vmem:[#allocation3 + $0x24] ss:$44 sps:$4 sm:$0xff]  }
 0x538   : > { %v1621_v0 = vpop.permute.xlu0 %1620  ;;  %v1979_v38 = vsel %vm1958_vm13, %v9757_v21, %v1957_v4  ;;  %v11200_v21 = vld [vmem:[#allocation28_spill] sm:$0xff] }
 0x539   : > { %v1643_v32 = vsel %vm11199_vm5, %v11198_v62, %v1621_v0  ;;  %3266 = vrot.lane.b32.xlu1 %v9525_v56, %s6769_s27  ;;  %vm11220_vm5 = vcmask 48128  }
 0x53a   : > { %3264 = vrot.lane.b32.xlu0 %v9642_v5, %s6769_s27  ;;  %5960 = vmatpush3.bf16.msra.mxu1 %v1643_v32  ;;  %v11205_v32 = vld [vmem:[#allocation92_spill] sm:$0xff] }
 0x53b   : > { %5961 = vmatprep.subr.bf16.mxu1 %v1979_v38  ;;  %v10151_v43 = vpop.permute.xlu1 %2722  ;;  %5122 = vmatmul.mubr.bf16.vlgmr.msra.gmra.mrb[12].mxu0 %v10153_v45 }
 0x53c   : > { %v2721_v60 = vpop.permute.xlu0 %2720  ;;  %5131 = vmatprep.mubr.bf16.mxu0 %v10156_v15 }
 0x53d   : > { %v2754_v6 = vsel %vm2742_vm7, %v11200_v21, %v2721_v60  ;;  %3156 = vrot.lane.b32.xlu1 %v9898_v22, %s6782_s16  ;;  %v2755_v56 = vsel %vm2742_vm7, %v2721_v60, %v10151_v43 }
 0x53e   : > { %2820 = vrot.lane.b32.xlu0 %v9898_v22, %s6779_s20  ;;  %5152 = vmatprep.subr.bf16.mxu0 %v2755_v56 }
 0x53f   : > { %5153 = vmatpush1.bf16.msra.mxu0 %v2754_v6  ;;  %v2037_v5 = vpop.permute.xlu1 %2036  ;;  %v11206_v6 = vld [vmem:[#allocation36_spill] sm:$0xff] }
 0x540   : > { %v1701_v58 = vpop.permute.xlu0 %1700  ;;  %v2077_v34 = vsel %vm2070_vm15, %v9777_v59, %v2037_v5  ;;  %v11202_v59 = vld [vmem:[#allocation33_spill] sm:$0xff] }
 0x541   : > { %v1741_v39 = vsel %vm1734_vm11, %v11201_v8, %v1701_v58  ;;  %3282 = vrot.lane.b32.xlu1 %v9554_v42, %s6769_s27 }
 0x542   : > { %3280 = vrot.lane.b32.xlu0 %v9665_v37, %s6769_s27  ;;  %5962 = vmatpush3.bf16.msra.mxu1 %v1741_v39 }
 0x543   : > { %5963 = vmatprep.subr.bf16.mxu1 %v2077_v34  ;;  %v10175_v49 = vpop.permute.xlu1 %2738  ;;  %5132 = vmatmul.mubr.bf16.gmra.mrb[16].mxu0 %v10177_v13  ;;  %v11208_v34 = vld [vmem:[#allocation93_spill] sm:$0xff] }
 0x544   : > { %v2737_v19 = vpop.permute.xlu0 %2736  ;;  %5141 = vmatprep.mubr.bf16.mxu0 %v10180_v31 }
 0x545   : > { %v2761_v3 = vsel %vm2742_vm7, %v11202_v59, %v2737_v19  ;;  %3172 = vrot.lane.b32.xlu1 %v9939_v2, %s6782_s16  ;;  %v2762_v42 = vsel %vm2742_vm7, %v2737_v19, %v10175_v49  ;;  %v11209_v59 = vld [vmem:[#allocation34_spill] sm:$0xff] }
 0x546   : > { %2836 = vrot.lane.b32.xlu0 %v9939_v2, %s6779_s20  ;;  %5154 = vmatprep.subr.bf16.mxu0 %v2762_v42 }
 0x547   : > { %5155 = vmatpush1.bf16.msra.mxu0 %v2761_v3  ;;  %v2053_v37 = vpop.permute.xlu1 %2052 }
 0x548   : > { %v1717_v12 = vpop.permute.xlu0 %1716  ;;  %v2084_v14 = vsel %vm2070_vm15, %v9799_v1, %v2053_v37  ;;  %v11204_v1 = vld [vmem:[#allocation31_spill] sm:$0xff] }
 0x549   : > { %v1748_v63 = vsel %vm1734_vm11, %v11203_v51, %v1717_v12  ;;  %3188 = vrot.lane.b32.xlu1 %v9856_v41, %s6782_s16  ;;  %s5678_s16 = sshll.u32 %s9742_s11, 4  ;;  %s10416_s16 = int_to_ptr.vmem [resolvable:$true] %s5678_s16 }
 0x54a   : > { %2852 = vrot.lane.b32.xlu0 %v9856_v41, %s6779_s20  ;;  %5964 = vmatpush3.bf16.msra.mxu1 %v1748_v63  ;;  %v11212_v63 = vld [vmem:[#allocation39_spill] sm:$0xff]  ;;  %s6660_s29 = scalar_lea.vmem %s10416_s16, 5376  ;;  %p6667_p0 = scmp.lt.s32.totalorder %s10416_s16, %s6665_s23 }
 0x54b   : > { %5965 = vmatprep.subr.bf16.mxu1 %v2084_v14  ;;  %v10199_v55 = vpop.permute.xlu1 %2818  ;;  %5142 = vmatmul.mubr.bf16.gmra.mrb[20].mxu0 %v10201_v57  ;;  %p6661_p4 = scmp.ne.s32.totalorder %s10416_s16, %s6660_s29  ;;  %p6668_p9 = scmp.lt.s32.totalorder %s6666_s5, %s6660_s29 }
 0x54c   : > { %v2817_v46 = vpop.permute.xlu0 %2816  ;;  %5184 = vmatprep.mubr.bf16.mxu0 %v10204_v17 }
 0x54d   : > { %v2859_v16 = vsel %vm2854_vm6, %v11204_v1, %v2817_v46  ;;  %3268 = vrot.lane.b32.xlu1 %v9898_v22, %s6769_s27  ;;  %v2860_v4 = vsel %vm2854_vm6, %v2817_v46, %v10199_v55  ;;  %p6662_p1 = pnand %p6661_p4, %p11235_p6  ;;  %p6669_p5 = por %p6668_p9, %p6667_p0 }
 0x54e   : > { %2932 = vrot.lane.b32.xlu0 %v9898_v22, %s6780_s22  ;;  %5156 = vmatprep.subr.bf16.mxu0 %v2860_v4 }
 0x54f   : > { %5157 = vmatpush1.bf16.msra.mxu0 %v2859_v16  ;;  %v2069_v0 = vpop.permute.xlu1 %2068  ;;  %p6663_p12 = pneg %p6662_p1 }
 0x550   : > { %v1733_v38 = vpop.permute.xlu0 %1732  ;;  %v2091_v62 = vsel %vm2070_vm15, %v9819_v54, %v2069_v0  ;;  %vm11211_vm15 = vcmask 56320   ;;  %v11215_v0 = vld [vmem:[#allocation37_spill] sm:$0xff] }
 0x551   : > { %v1755_v60 = vsel %vm1734_vm11, %v11205_v32, %v1733_v38  ;;  %3284 = vrot.lane.b32.xlu1 %v9939_v2, %s6769_s27  ;;  %vm11207_vm11 = vcmask 457728   ;;  %vm11214_vm2 = vmmov %vm11211_vm15  ;;  %p6670_p8 = pnand %p6669_p5, %p6663_p12 }
 0x552   : > { %2948 = vrot.lane.b32.xlu0 %v9939_v2, %s6780_s22  ;;  %5966 = vmatpush3.bf16.msra.mxu1 %v1755_v60  ;;  %vm11217_vm3 = vmmov %vm11214_vm2 }
 0x553   : > { %5967 = vmatprep.subr.bf16.mxu1 %v2091_v62  ;;  %v10223_v22 = vpop.permute.xlu1 %2834 }
 0x554   : > { %v2833_v21 = vpop.permute.xlu0 %2832 }
 0x555   : > { %v2866_v56 = vsel %vm2854_vm6, %v11206_v6, %v2833_v21  ;;  %3296 = vrot.lane.b32.xlu1 %v9688_v52, %s6769_s27  ;;  %v2867_v54 = vsel %vm2854_vm6, %v2833_v21, %v10223_v22  ;;  %v6562_v52 = vld [vmem:[%s7042_s6 + $0x70] ss:$28 sps:$4 sm:$0xff]   ;;  %s6260_s6 = smul.u32 5376, %s6738_s15  ;;  %s5663_s15 = scalar_lea.sflag [#allocation5], %s7014_s30 }
 0x556   : > { %2964 = vrot.lane.b32.xlu0 %v9856_v41, %s6780_s22  ;;  %5158 = vmatprep.subr.bf16.mxu0 %v2867_v54  ;;  %v11218_v21 = vld [vmem:[#allocation42_spill] sm:$0xff] }
 0x557   : > { %5159 = vmatpush1.bf16.msra.mxu0 %v2866_v56  ;;  %v2405_v2 = vpop.permute.xlu1 %2404  ;;  %s10414_s1 = scalar_lea.hbm %s10470_s3, %s6260_s6 }
 0x558   : > { %v1813_v5 = vpop.permute.xlu0 %1812  ;;  %v2427_v58 = vsel %vm11207_vm11, %v10008_v33, %v2405_v2  ;;  %vm11222_vm11 = vmmov %vm11219_vm4 }
 0x559   : > { %v1853_v8 = vsel %vm1846_vm14, %v11208_v34, %v1813_v5  ;;  %3300 = vrot.lane.b32.xlu1 %v9856_v41, %s6769_s27  ;;  %vm11210_vm14 = vcmask 449536   ;;  %v11221_v5 = vld [vmem:[#allocation40_spill] sm:$0xff] }
 0x55a   : > { %3298 = vrot.lane.b32.xlu0 %v6562_v52, %s6769_s27  ;;  %5968 = vmatpush3.bf16.msra.mxu1 %v1853_v8  ;;  %vm11213_vm0 = vmmov %vm11210_vm14 }
 0x55b   : > { %5987 = vmatprep.subr.bf16.mxu1 %v2427_v58  ;;  %v10241_v39 = vpop.permute.xlu1 %2850  ;;  %vm11216_vm1 = vmmov %vm11213_vm0 }
 0x55c   : > { %v2849_v19 = vpop.permute.xlu0 %2848 }
 0x55d   : > { %v2873_v3 = vsel %vm2854_vm6, %v11209_v59, %v2849_v19  ;;  %v2874_v33 = vsel %vm2854_vm6, %v2849_v19, %v10241_v39  ;;  %5425 = vmatmul.mubr.bf16.vlgmr.msra.gmra.mrb[60].mxu1 %v9861_v44 }
 0x55e   : > { %5160 = vmatprep.subr.bf16.mxu0 %v2874_v33  ;;  %5432 = vmatprep.mubr.bf16.mxu1 %v9885_v20 }
 0x55f   : > { %5161 = vmatpush1.bf16.msra.mxu0 %v2873_v3  ;;  %v2485_v41 = vpop.permute.xlu1 %2484  ;;  %v11224_v3 = vld [vmem:[#allocation47_spill] sm:$0xff] }
 0x560   : > { %v2149_v42 = vpop.permute.xlu0 %2148  ;;  %v2525_v37 = vsel %vm11210_vm14, %v10027_v36, %v2485_v41  ;;  %vm11223_vm14 = vmmov %vm11220_vm5 }
 0x561   : > { %v2189_v12 = vsel %vm11211_vm15, %v9843_v11, %v2149_v42  ;;  %vm11225_vm15 = vmmov %vm11219_vm4 }
 0x562   : > { %5988 = vmatpush3.bf16.msra.mxu1 %v2189_v12 }
 0x563   : > { %5989 = vmatprep.subr.bf16.mxu1 %v2525_v37  ;;  %v10253_v14 = vpop.permute.xlu1 %2930 }
 0x564   : > { %v2929_v51 = vpop.permute.xlu0 %2928 }
 0x565   : > { %v2971_v44 = vsel %vm2966_vm8, %v11212_v63, %v2929_v51  ;;  %v2972_v20 = vsel %vm2966_vm8, %v2929_v51, %v10253_v14  ;;  %5433 = vmatmul.mubr.bf16.gmra.mrb[64].mxu1 %v9907_v50  ;;  %v11227_v63 = vld [vmem:[#allocation58_spill] sm:$0xff] }
 0x566   : > { %5162 = vmatprep.subr.bf16.mxu0 %v2972_v20  ;;  %5440 = vmatprep.mubr.bf16.mxu1 %v9926_v26 }
 0x567   : > { %5163 = vmatpush1.bf16.msra.mxu0 %v2971_v44  ;;  %v2501_v36 = vpop.permute.xlu1 %2500 }
 0x568   : > { %v2165_v46 = vpop.permute.xlu0 %2164  ;;  %v2532_v11 = vsel %vm11213_vm0, %v10042_v7, %v2501_v36  ;;  %vm11226_vm0 = vmmov %vm11220_vm5 }
 0x569   : > { %v2196_v1 = vsel %vm11214_vm2, %v9867_v10, %v2165_v46  ;;  %vm11228_vm2 = vcmask 457728  }
 0x56a   : > { %5990 = vmatpush3.bf16.msra.mxu1 %v2196_v1 }
 0x56b   : > { %5991 = vmatprep.subr.bf16.mxu1 %v2532_v11  ;;  %v10265_v16 = vpop.permute.xlu1 %2946 }
 0x56c   : > { %v2945_v4 = vpop.permute.xlu0 %2944 }
 0x56d   : > { %v2978_v50 = vsel %vm2966_vm8, %v11215_v0, %v2945_v4  ;;  %v2979_v26 = vsel %vm2966_vm8, %v2945_v4, %v10265_v16  ;;  %5441 = vmatmul.mubr.bf16.gmra.mrb[68].mxu1 %v9948_v27  ;;  %v11229_v4 = vld [vmem:[#allocation70_spill] sm:$0xff] }
 0x56e   : > { %5164 = vmatprep.subr.bf16.mxu0 %v2979_v26  ;;  %5481 = vmatprep.mubr.bf16.mxu1 %v9967_v61 }
 0x56f   : > { %5165 = vmatpush1.bf16.msra.mxu0 %v2978_v50  ;;  %v2517_v7 = vpop.permute.xlu1 %2516 }
 0x570   : > { %v2181_v38 = vpop.permute.xlu0 %2180  ;;  %v2539_v10 = vsel %vm11216_vm1, %v10061_v29, %v2517_v7  ;;  %vm11230_vm1 = vmmov %vm11228_vm2 }
 0x571   : > { %v2203_v62 = vsel %vm11217_vm3, %v9883_v30, %v2181_v38 }
 0x572   : > { %5992 = vmatpush3.bf16.msra.mxu1 %v2203_v62  ;;  %v11231_v62 = vld [vmem:[#allocation76_spill] sm:$0xff] }
 0x573   : > { %5993 = vmatprep.subr.bf16.mxu1 %v2539_v10  ;;  %v10277_v32 = vpop.permute.xlu1 %2962 }
 0x574   : > { %v2961_v60 = vpop.permute.xlu0 %2960 }
 0x575   : > { %v2985_v27 = vsel %vm2966_vm8, %v11218_v21, %v2961_v60  ;;  %v2986_v61 = vsel %vm2966_vm8, %v2961_v60, %v10277_v32 }
 0x576   : > { %5166 = vmatprep.subr.bf16.mxu0 %v2986_v61 }
 0x577   : > { %5167 = vmatpush1.bf16.msra.mxu0 %v2985_v27  ;;  %v2597_v6 = vpop.permute.xlu1 %2596 }
 0x578   : > { %v2261_v56 = vpop.permute.xlu0 %2260  ;;  %v2637_v29 = vsel %vm11219_vm4, %v10073_v24, %v2597_v6 }
 0x579   : > { %v2301_v30 = vsel %vm11220_vm5, %v9905_v53, %v2261_v56 }
 0x57a   : > { %5994 = vmatpush3.bf16.msra.mxu1 %v2301_v30 }
 0x57b   : > { %5995 = vmatprep.subr.bf16.mxu1 %v2637_v29  ;;  %v3043_v54 = vpop.permute.xlu1 %3042  ;;  %v11232_v29 = vld [vmem:[#allocation81_spill] sm:$0xff] }
 0x57c   : > { %v3041_v2 = vpop.permute.xlu0 %3040 }
 0x57d   : > { %v3083_v58 = vsel %vm3078_vm9, %v11221_v5, %v3041_v2  ;;  %v3084_v34 = vsel %vm3078_vm9, %v3041_v2, %v3043_v54 }
 0x57e   : > { %5168 = vmatprep.subr.bf16.mxu0 %v3084_v34 }
 0x57f   : > { %5169 = vmatpush1.bf16.msra.mxu0 %v3083_v58  ;;  %v2613_v8 = vpop.permute.xlu1 %2612 }
 0x580   : > { %v2277_v52 = vpop.permute.xlu0 %2276  ;;  %v2644_v19 = vsel %vm11222_vm11, %v10093_v35, %v2613_v8 }
 0x581   : > { %v2308_v24 = vsel %vm11223_vm14, %v9924_v9, %v2277_v52 }
 0x582   : > { %5996 = vmatpush3.bf16.msra.mxu1 %v2308_v24 }
 0x583   : > { %5997 = vmatprep.subr.bf16.mxu1 %v2644_v19  ;;  %v3059_v53 = vpop.permute.xlu1 %3058  ;;  %v11233_v19 = vld [vmem:[#allocation86_spill] sm:$0xff] }
 0x584   : > { %v3057_v59 = vpop.permute.xlu0 %3056 }
 0x585   : > { %v3090_v33 = vsel %vm3078_vm9, %v11224_v3, %v3057_v59  ;;  %v3091_v41 = vsel %vm3078_vm9, %v3057_v59, %v3059_v53 }
 0x586   : > { %5170 = vmatprep.subr.bf16.mxu0 %v3091_v41 }
 0x587   : > { %5171 = vmatpush1.bf16.msra.mxu0 %v3090_v33  ;;  %v2629_v42 = vpop.permute.xlu1 %2628 }
 0x588   : > { %v2293_v37 = vpop.permute.xlu0 %2292  ;;  %v2651_v12 = vsel %vm11225_vm15, %v10113_v23, %v2629_v42 }
 0x589   : > { %v2315_v35 = vsel %vm11226_vm0, %v9946_v28, %v2293_v37 }
 0x58a   : > { %5998 = vmatpush3.bf16.msra.mxu1 %v2315_v35  ;;  %v11234_v35 = vld [vmem:[#allocation46_spill] sm:$0xff] }
 0x58b   : > { %5999 = vmatprep.subr.bf16.mxu1 %v2651_v12  ;;  %v3075_v9 = vpop.permute.xlu1 %3074 }
 0x58c   : > { %v3073_v51 = vpop.permute.xlu0 %3072 }
 0x58d   : > { %v3097_v44 = vsel %vm3078_vm9, %v11227_v63, %v3073_v51  ;;  %v3098_v20 = vsel %vm3078_vm9, %v3073_v51, %v3075_v9 }
 0x58e   : > { %5172 = vmatprep.subr.bf16.mxu0 %v3098_v20 }
 0x58f   : > { %5173 = vmatpush1.bf16.msra.mxu0 %v3097_v44  ;;  %v2709_v36 = vpop.permute.xlu1 %2708 }
 0x590   : > { %v2373_v46 = vpop.permute.xlu0 %2372  ;;  %v2749_v11 = vsel %vm2742_vm7, %v10133_v18, %v2709_v36 }
 0x591   : > { %v2413_v23 = vsel %vm11228_vm2, %v9965_v40, %v2373_v46 }
 0x592   : > { %6000 = vmatpush3.bf16.msra.mxu1 %v2413_v23 }
 0x593   : > { %6001 = vmatprep.subr.bf16.mxu1 %v2749_v11  ;;  %v10308_v28 = vpop.permute.xlu1 %3154 }
 0x594   : > { %v3153_v1 = vpop.permute.xlu0 %3152 }
 0x595   : > { %v3195_v0 = vsel %vm3190_vm10, %v11229_v4, %v3153_v1  ;;  %v3196_v50 = vsel %vm3190_vm10, %v3153_v1, %v10308_v28  ;;  %v6564_v4 = vld [vmem:[#allocation3 + $0x7c] ss:$44 sps:$4 sm:$0xff]  }
 0x596   : > { %5174 = vmatprep.subr.bf16.mxu0 %v3196_v50 }
 0x597   : > { %5175 = vmatpush1.bf16.msra.mxu0 %v3195_v0  ;;  %v3045_v26 = vpop.permute.xlu1 %3044 }
 0x598   : > { %v2389_v7 = vpop.permute.xlu0 %2388  ;;  %v3085_v18 = vsel %vm3078_vm9, %v3043_v54, %v3045_v26 }
 0x599   : > { %v2420_v40 = vsel %vm11230_vm1, %v9993_v48, %v2389_v7 }
 0x59a   : > { %6002 = vmatpush3.bf16.msra.mxu1 %v2420_v40 }
 0x59b   : > { %6021 = vmatprep.subr.bf16.mxu1 %v3085_v18  ;;  %v10317_v38 = vpop.permute.xlu1 %3170 }
 0x59c   : > { %v3169_v10 = vpop.permute.xlu0 %3168 }
 0x59d   : > { %v3202_v60 = vsel %vm3190_vm10, %v11231_v62, %v3169_v10  ;;  %5482 = vmatmul.mubr.bf16.vlgmr.msra.gmra.mrb[72].mxu1 %v10153_v45  ;;  %v3203_v21 = vsel %vm3190_vm10, %v3169_v10, %v10317_v38  ;;  %v6566_v62 = vld [vmem:[#allocation3 + $0xd4] ss:$44 sps:$4 sm:$0xff]  }
 0x59e   : > { %5176 = vmatprep.subr.bf16.mxu0 %v3203_v21  ;;  %5489 = vmatprep.mubr.bf16.mxu1 %v10156_v15 }
 0x59f   : > { %5177 = vmatpush1.bf16.msra.mxu0 %v3202_v60  ;;  %v3061_v27 = vpop.permute.xlu1 %3060 }
 0x5a0   : > { %v2725_v48 = vpop.permute.xlu0 %2724  ;;  %v3092_v61 = vsel %vm3078_vm9, %v3059_v53, %v3061_v27 }
 0x5a1   : > { %v2756_v6 = vsel %vm2742_vm7, %v10151_v43, %v2725_v48 }
 0x5a2   : > { %6022 = vmatpush3.bf16.msra.mxu1 %v2756_v6 }
 0x5a3   : > { %6023 = vmatprep.subr.bf16.mxu1 %v3092_v61  ;;  %v10328_v45 = vpop.permute.xlu1 %3186 }
 0x5a4   : > { %v3185_v56 = vpop.permute.xlu0 %3184 }
 0x5a5   : > { %v3209_v30 = vsel %vm3190_vm10, %v11232_v29, %v3185_v56  ;;  %v4871_v54 = vpop.f32.mrb[24].mxu1  ;;  %5490 = vmatmul.mubr.bf16.gmra.mrb[76].mxu1 %v10177_v13  ;;  %v3210_v15 = vsel %vm3190_vm10, %v3185_v56, %v10328_v45 }
 0x5a6   : > { %5622 = vst [vmem:[%s9742_s11 + $0x10] sm:$0xff] %v4871_v54  ;;  %v4873_v2 = vpop.f32.mrb[25].mxu1  ;;  %5178 = vmatprep.subr.bf16.mxu0 %v3210_v15  ;;  %5497 = vmatprep.mubr.bf16.mxu1 %v10180_v31 }
 0x5a7   : > { %5623 = vst [vmem:[%s9742_s11 + $0x18] sm:$0xff] %v4873_v2  ;;  %v4875_v43 = vpop.f32.mrb[26].mxu1  ;;  %5179 = vmatpush1.bf16.msra.mxu0 %v3209_v30  ;;  %v3077_v5 = vpop.permute.xlu1 %3076  ;;  %v6567_v30 = vld [vmem:[#allocation3 + $0xd0] ss:$44 sps:$4 sm:$0xff]   ;;  %v6783_v2 = vmov 0.0  }
 0x5a8   : > { %5629 = vst [vmem:[%s9742_s11 + $0x48] sm:$0xff] %v4875_v43  ;;  %v2741_v58 = vpop.permute.xlu0 %2740  ;;  %v4877_v34 = vpop.f32.mrb[27].mxu1  ;;  %v3099_v8 = vsel %vm3078_vm9, %v3075_v9, %v3077_v5 }
 0x5a9   : > { %v2763_v13 = vsel %vm2742_vm7, %v10175_v49, %v2741_v58  ;;  %5630 = vst [vmem:[%s9742_s11 + $0x50] sm:$0xff] %v4877_v34 }
 0x5aa   : > { %6024 = vmatpush3.bf16.msra.mxu1 %v2763_v13 }
 0x5ab   : > { %6025 = vmatprep.subr.bf16.mxu1 %v3099_v8  ;;  %v3267_v52 = vpop.permute.xlu1 %3266 }
 0x5ac   : > { %v3265_v31 = vpop.permute.xlu0 %3264 }
 0x5ad   : > { %v3307_v24 = vsel %vm3302_vm12, %v11233_v19, %v3265_v31  ;;  %v4881_v53 = vpop.f32.mrb[28].mxu1  ;;  %5498 = vmatmul.mubr.bf16.gmra.mrb[80].mxu1 %v10201_v57  ;;  %v3308_v59 = vsel %vm3302_vm12, %v3265_v31, %v3267_v52  ;;  %v6568_v31 = vld [vmem:[#allocation3 + $0x28] ss:$44 sps:$4 sm:$0xff]  }
 0x5ae   : > { %5636 = vst [vmem:[%s9742_s11 + $0x80] sm:$0xff] %v4881_v53  ;;  %v4883_v3 = vpop.f32.mrb[29].mxu1  ;;  %5180 = vmatprep.subr.bf16.mxu0 %v3308_v59  ;;  %5538 = vmatprep.mubr.bf16.mxu1 %v10204_v17 }
 0x5af   : > { %5637 = vst [vmem:[%s9742_s11 + $0x88] sm:$0xff] %v4883_v3  ;;  %v4885_v49 = vpop.f32.mrb[30].mxu1  ;;  %5181 = vmatpush1.bf16.msra.mxu0 %v3307_v24  ;;  %v3157_v33 = vpop.permute.xlu1 %3156 }
 0x5b0   : > { %5643 = vst [vmem:[%s9742_s11 + $0xb8] sm:$0xff] %v4885_v49  ;;  %v2821_v41 = vpop.permute.xlu0 %2820  ;;  %v4887_v42 = vpop.f32.mrb[31].mxu1  ;;  %v3197_v37 = vsel %vm3190_vm10, %v10308_v28, %v3157_v33  ;;  %v6563_v28 = vld [vmem:[#allocation3 + $0x20] ss:$44 sps:$4 sm:$0xff]  }
 0x5b1   : > { %v2861_v57 = vsel %vm2854_vm6, %v10199_v55, %v2821_v41  ;;  %5644 = vst [vmem:[%s9742_s11 + $0xc0] sm:$0xff] %v4887_v42  ;;  %v6569_v49 = vld [vmem:[#allocation3 + $0x80] ss:$44 sps:$4 sm:$0xff]   ;;  %v6570_v41 = vld [vmem:[#allocation3 + $0xd8] ss:$44 sps:$4 sm:$0xff]  }
 0x5b2   : > { %6026 = vmatpush3.bf16.msra.mxu1 %v2861_v57 }
 0x5b3   : > { %6027 = vmatprep.subr.bf16.mxu1 %v3197_v37  ;;  %v3283_v17 = vpop.permute.xlu1 %3282 }
 0x5b4   : > { %v3281_v12 = vpop.permute.xlu0 %3280 }
 0x5b5   : > { %v3314_v9 = vsel %vm3302_vm12, %v11234_v35, %v3281_v12  ;;  %v4891_v51 = vpop.f32.mrb[32].mxu1  ;;  %v3315_v63 = vsel %vm3302_vm12, %v3281_v12, %v3283_v17 }
 0x5b6   : > { %5650 = vst [vmem:[%s9742_s11 + $0xf0] sm:$0xff] %v4891_v51  ;;  %v4893_v44 = vpop.f32.mrb[33].mxu1  ;;  %5182 = vmatprep.subr.bf16.mxu0 %v3315_v63 }
 0x5b7   : > { %5651 = vst [vmem:[%s9742_s11 + $0xf8] sm:$0xff] %v4893_v44  ;;  %v4895_v20 = vpop.f32.mrb[34].mxu1  ;;  %5183 = vmatpush1.bf16.msra.mxu0 %v3314_v9  ;;  %v3173_v55 = vpop.permute.xlu1 %3172 }
 0x5b8   : > { %5657 = vst [vmem:[%s9742_s11 + $0x128] sm:$0xff] %v4895_v20  ;;  %v2837_v36 = vpop.permute.xlu0 %2836  ;;  %v4897_v46 = vpop.f32.mrb[35].mxu1  ;;  %v3204_v11 = vsel %vm3190_vm10, %v10317_v38, %v3173_v55  ;;  %v6565_v38 = vld [vmem:[#allocation3 + $0x78] ss:$44 sps:$4 sm:$0xff]  }
 0x5b9   : > { %v2868_v23 = vsel %vm2854_vm6, %v10223_v22, %v2837_v36  ;;  %5658 = vst [vmem:[%s9742_s11 + $0x130] sm:$0xff] %v4897_v46 }
 0x5ba   : > { %5185 = vmatmul.mubr.bf16.vlgmr.msra.gmra.mrb[12].mxu0 %v6563_v28  ;;  %6028 = vmatpush3.bf16.msra.mxu1 %v2868_v23 }
 0x5bb   : > { %6029 = vmatprep.subr.bf16.mxu1 %v3204_v11  ;;  %v3189_v1 = vpop.permute.xlu1 %3188  ;;  %5194 = vmatprep.mubr.bf16.mxu0 %v6564_v4 }
 0x5bc   : > { %v2853_v0 = vpop.permute.xlu0 %2852  ;;  %v3211_v50 = vsel %vm3190_vm10, %v10328_v45, %v3189_v1 }
 0x5bd   : > { %v2875_v26 = vsel %vm2854_vm6, %v10241_v39, %v2853_v0  ;;  %vm6784_vm6 = vmmov 0  }
 0x5be   : > { %6030 = vmatpush3.bf16.msra.mxu1 %v2875_v26 }
 0x5bf   : > { %6031 = vmatprep.subr.bf16.mxu1 %v3211_v50  ;;  %v3269_v7 = vpop.permute.xlu1 %3268 }
 0x5c0   : > { %v2933_v18 = vpop.permute.xlu0 %2932  ;;  %v3309_v22 = vsel %vm3302_vm12, %v3267_v52, %v3269_v7 }
 0x5c1   : > { %v2973_v40 = vsel %vm2966_vm8, %v10253_v14, %v2933_v18 }
 0x5c2   : > { %5195 = vmatmul.mubr.bf16.gmra.mrb[16].mxu0 %v6565_v38  ;;  %6032 = vmatpush3.bf16.msra.mxu1 %v2973_v40 }
 0x5c3   : > { %6033 = vmatprep.subr.bf16.mxu1 %v3309_v22  ;;  %v3285_v10 = vpop.permute.xlu1 %3284  ;;  %5204 = vmatprep.mubr.bf16.mxu0 %v6566_v62 }
 0x5c4   : > { %v2949_v60 = vpop.permute.xlu0 %2948  ;;  %v3316_v21 = vsel %vm3302_vm12, %v3283_v17, %v3285_v10 }
 0x5c5   : > { %v2980_v39 = vsel %vm2966_vm8, %v10265_v16, %v2949_v60 }
 0x5c6   : > { %6034 = vmatpush3.bf16.msra.mxu1 %v2980_v39  ;;  %v5901_v27 = vpop.f32.mrb[36].mxu1 }
 0x5c7   : > { %6035 = vmatprep.subr.bf16.mxu1 %v3316_v21  ;;  %v3297_v48 = vpop.permute.xlu1 %3296  ;;  %v5902_v61 = vpop.f32.mrb[37].mxu1 }
 0x5c8   : > { %v2965_v6 = vpop.permute.xlu0 %2964  ;;  %v5903_v14 = vadd.f32 %v5902_v61, %v5901_v27  ;;  %v5904_v45 = vpop.f32.mrb[38].mxu1  ;;  %v3321_v58 = vsel %vm3302_vm12, %v9738_v47, %v3297_v48 }
 0x5c9   : > { %v2987_v56 = vsel %vm2966_vm8, %v10277_v32, %v2965_v6  ;;  %v5905_v29 = vpop.f32.mrb[39].mxu1 }
 0x5ca   : > { %5205 = vmatmul.mubr.bf16.gmra.mrb[20].mxu0 %v6567_v30  ;;  %6036 = vmatpush3.bf16.msra.mxu1 %v2987_v56  ;;  %v5906_v54 = vadd.f32 %v5905_v29, %v5904_v45 }
 0x5cb   : > { %v3301_v15 = vpop.permute.xlu1 %3300  ;;  %6073 = vmatprep.subr.bf16.mxu1 %v6783_v2  ;;  %5247 = vmatprep.mubr.bf16.mxu0 %v11078_v25 }
 0x5cc   : > { %v3299_v16 = vpop.permute.xlu0 %3298 }
 0x5cd   : > { %v3323_v43 = vsel %vm3302_vm12, %v3299_v16, %v3301_v15  ;;  %5539 = vmatmul.mubr.bf16.vlgmr.msra.gmra.mrb[84].mxu1 %v6563_v28  ;;  %v3322_v5 = vsel %vm3302_vm12, %v3297_v48, %v3299_v16 }
 0x5ce   : > { %5215 = vmatprep.subr.bf16.mxu0 %v3322_v5  ;;  %6074 = vmatpush3.bf16.msra.mxu1 %v3323_v43  ;;  %v5907_v32 = vpop.f32.mrb[40].mxu1 }
 0x5cf   : > { %5216 = vmatpush1.bf16.msra.mxu0 %v3321_v58  ;;  %5546 = vmatprep.mubr.bf16.mxu1 %v6564_v4  ;;  %v5908_v34 = vpop.f32.mrb[41].mxu1 }
 0x5d0   : > { %6059 = vmatprep.subr.bf16.mxu0 %v6783_v2  ;;  %v5909_v8 = vadd.f32 %v5908_v34, %v5907_v32  ;;  %v5910_v13 = vpop.f32.mrb[42].mxu1 }
 0x5d1   : > { %v5911_v52 = vpop.f32.mrb[43].mxu1 }
 0x5d2   : > { %5876 = vmatmul.mubr.msk.bf16.vlgmr.msra.gmra.mrb[12].mxu0 %vm1958_vm13, %v6568_v31  ;;  %v5912_v19 = vadd.f32 %v5911_v52, %v5910_v13 }
 0x5d3   : > { %6060 = vmatpush3.bf16.msra.mxu0 %v3323_v43  ;;  %5257 = vmatprep.mubr.bf16.mxu0 %v11078_v25 }
 0x5d5   : > { %5547 = vmatmul.mubr.bf16.gmra.mrb[88].mxu1 %v6565_v38 }
 0x5d6   : > { %5554 = vmatprep.mubr.bf16.mxu1 %v6566_v62  ;;  %v5913_v47 = vpop.f32.mrb[44].mxu1 }
 0x5d7   : > { %v5914_v24 = vpop.f32.mrb[45].mxu1 }
 0x5d8   : > { %v5915_v53 = vadd.f32 %v5914_v24, %v5913_v47  ;;  %v5916_v59 = vpop.f32.mrb[46].mxu1 }
 0x5d9   : > { %v5917_v3 = vpop.f32.mrb[47].mxu1 }
 0x5da   : > { %5877 = vmatmul.mubr.msk.bf16.gmra.mrb[16].mxu0 %vm1958_vm13, %v6569_v49  ;;  %v5918_v33 = vadd.f32 %v5917_v3, %v5916_v59 }
 0x5db   : > { %5267 = vmatprep.mubr.bf16.mxu0 %v11078_v25 }
 0x5dd   : > { %5555 = vmatmul.mubr.bf16.gmra.mrb[92].mxu1 %v6567_v30 }
 0x5de   : > { %6065 = vmatprep.mubr.msk.bf16.mxu1 %vm6784_vm6, %v6783_v2 }
 0x5e2   : > { %5878 = vmatmul.mubr.msk.bf16.gmra.mrb[20].mxu0 %vm1958_vm13, %v6570_v41 }
 0x5e3   : > { %6061 = vmatprep.mubr.msk.bf16.mxu0 %vm6784_vm6, %v6783_v2 }
 0x5e5   : > { %6066 = vmatmul.mubr.msk.bf16.vlgmr.msra.gmra.mrb[96].mxu1 %vm1958_vm13, %v6569_v49 }
 0x5e6   : > { %6069 = vmatprep.mubr.msk.bf16.mxu1 %vm6784_vm6, %v6783_v2 }
 0x5ea   : > { %6062 = vmatmul.mubr.msk.bf16.vlgmr.msra.gmra.mrb[24].mxu0 %vm1958_vm13, %v6568_v31 }
 0x5ed   : > { %6070 = vmatmul.mubr.msk.bf16.gmra.mrb[100].mxu1 %vm1958_vm13, %v6570_v41 }
 0x5ee   : > { %v5935_v42 = vpop.f32.mrb[48].mxu1 }
 0x5ef   : > { %v5936_v37 = vpop.f32.mrb[49].mxu1 }
 0x5f0   : > { %v5937_v57 = vadd.f32 %v5936_v37, %v5935_v42  ;;  %v5938_v17 = vpop.f32.mrb[50].mxu1 }
 0x5f1   : > { %v5939_v12 = vpop.f32.mrb[51].mxu1 }
 0x5f2   : > { %v5370_v25 = vadd.f32 %v5937_v57, %v5903_v14  ;;  %v5940_v35 = vadd.f32 %v5939_v12, %v5938_v17 }
 0x5f4   : > { %v5373_v9 = vadd.f32 %v5940_v35, %v5906_v54 }
 0x5f6   : > { %v5941_v51 = vpop.f32.mrb[52].mxu1 }
 0x5f7   : > { %v5942_v63 = vpop.f32.mrb[53].mxu1 }
 0x5f8   : > { %v5943_v44 = vadd.f32 %v5942_v63, %v5941_v51  ;;  %v5944_v20 = vpop.f32.mrb[54].mxu1 }
 0x5f9   : > { %v5945_v55 = vpop.f32.mrb[55].mxu1 }
 0x5fa   : > { %v5378_v36 = vadd.f32 %v5943_v44, %v5909_v8  ;;  %v5946_v46 = vadd.f32 %v5945_v55, %v5944_v20 }
 0x5fc   : > { %v5381_v11 = vadd.f32 %v5946_v46, %v5912_v19 }
 0x5fe   : > { %v5947_v23 = vpop.f32.mrb[56].mxu1 }
 0x5ff   : > { %v5948_v28 = vpop.f32.mrb[57].mxu1 }
 0x600   : > { %v5949_v1 = vadd.f32 %v5948_v28, %v5947_v23  ;;  %v5950_v4 = vpop.f32.mrb[58].mxu1 }
 0x601   : > { %v5951_v0 = vpop.f32.mrb[59].mxu1 }
 0x602   : > { %v5386_v50 = vadd.f32 %v5949_v1, %v5915_v53  ;;  %v5952_v26 = vadd.f32 %v5951_v0, %v5950_v4 }
 0x604   : > { %v5389_v7 = vadd.f32 %v5952_v26, %v5918_v33 }
 0x630   : > { %v5969_v18 = vpop.f32.mrb[60].mxu1 }
 0x631   : > { %v5970_v22 = vpop.f32.mrb[61].mxu1 }
 0x632   : > { %v5971_v40 = vadd.f32 %v5970_v22, %v5969_v18  ;;  %v5972_v38 = vpop.f32.mrb[62].mxu1 }
 0x633   : > { %v5973_v10 = vpop.f32.mrb[63].mxu1 }
 0x634   : > { %v5427_v62 = vadd.f32 %v5971_v40, %v5370_v25  ;;  %v5974_v60 = vadd.f32 %v5973_v10, %v5972_v38 }
 0x636   : > { %v5430_v21 = vadd.f32 %v5974_v60, %v5373_v9 }
 0x638   : > { %v5975_v39 = vpop.f32.mrb[64].mxu1 }
 0x639   : > { %v5976_v27 = vpop.f32.mrb[65].mxu1 }
 0x63a   : > { %v5977_v48 = vadd.f32 %v5976_v27, %v5975_v39  ;;  %v5978_v61 = vpop.f32.mrb[66].mxu1 }
 0x63b   : > { %v5979_v6 = vpop.f32.mrb[67].mxu1 }
 0x63c   : > { %v5435_v14 = vadd.f32 %v5977_v48, %v5378_v36  ;;  %v5980_v45 = vadd.f32 %v5979_v6, %v5978_v61 }
 0x63e   : > { %v5438_v56 = vadd.f32 %v5980_v45, %v5381_v11 }
 0x640   : > { %v5981_v29 = vpop.f32.mrb[68].mxu1 }
 0x641   : > { %v5982_v30 = vpop.f32.mrb[69].mxu1 }
 0x642   : > { %v5983_v54 = vadd.f32 %v5982_v30, %v5981_v29  ;;  %v5984_v15 = vpop.f32.mrb[70].mxu1 }
 0x643   : > { %v5985_v2 = vpop.f32.mrb[71].mxu1 }
 0x644   : > { %v5443_v16 = vadd.f32 %v5983_v54, %v5386_v50  ;;  %v5986_v43 = vadd.f32 %v5985_v2, %v5984_v15 }
 0x646   : > { %v5446_v5 = vadd.f32 %v5986_v43, %v5389_v7 }
 0x670   : > { %v6003_v58 = vpop.f32.mrb[72].mxu1 }
 0x671   : > { %v6004_v32 = vpop.f32.mrb[73].mxu1 }
 0x672   : > { %v6005_v34 = vadd.f32 %v6004_v32, %v6003_v58  ;;  %v6006_v8 = vpop.f32.mrb[74].mxu1 }
 0x673   : > { %v6007_v13 = vpop.f32.mrb[75].mxu1 }
 0x674   : > { %v5484_v52 = vadd.f32 %v6005_v34, %v5427_v62  ;;  %v6008_v31 = vadd.f32 %v6007_v13, %v6006_v8 }
 0x676   : > { %v5487_v19 = vadd.f32 %v6008_v31, %v5430_v21 }
 0x678   : > { %v6009_v47 = vpop.f32.mrb[76].mxu1 }
 0x679   : > { %v6010_v24 = vpop.f32.mrb[77].mxu1 }
 0x67a   : > { %v6011_v53 = vadd.f32 %v6010_v24, %v6009_v47  ;;  %v6012_v59 = vpop.f32.mrb[78].mxu1 }
 0x67b   : > { %v6013_v3 = vpop.f32.mrb[79].mxu1 }
 0x67c   : > { %v5492_v49 = vadd.f32 %v6011_v53, %v5435_v14  ;;  %v6014_v33 = vadd.f32 %v6013_v3, %v6012_v59 }
 0x67e   : > { %v5495_v41 = vadd.f32 %v6014_v33, %v5438_v56 }
 0x680   : > { %v6015_v42 = vpop.f32.mrb[80].mxu1 }
 0x681   : > { %v6016_v37 = vpop.f32.mrb[81].mxu1 }
 0x682   : > { %v6017_v57 = vadd.f32 %v6016_v37, %v6015_v42  ;;  %v6018_v17 = vpop.f32.mrb[82].mxu1 }
 0x683   : > { %v6019_v12 = vpop.f32.mrb[83].mxu1 }
 0x684   : > { %v5500_v25 = vadd.f32 %v6017_v57, %v5443_v16  ;;  %v6020_v35 = vadd.f32 %v6019_v12, %v6018_v17 }
 0x686   : > { %v5503_v9 = vadd.f32 %v6020_v35, %v5446_v5 }
 0x6a0   : > { %v6037_v51 = vpop.f32.mrb[84].mxu1 }
 0x6a1   : > { %v6038_v63 = vpop.f32.mrb[85].mxu1 }
 0x6a2   : > { %v6039_v44 = vadd.f32 %v6038_v63, %v6037_v51  ;;  %v6040_v20 = vpop.f32.mrb[86].mxu1 }
 0x6a3   : > { %v6041_v55 = vpop.f32.mrb[87].mxu1 }
 0x6a4   : > { %v6042_v36 = vadd.f32 %v6041_v55, %v6040_v20  ;;  %v5541_v46 = vadd.f32 %v6039_v44, %v5484_v52 }
 0x6a5   : > { %v5249_v11 = vpop.f32.mrb[12].mxu0 }
 0x6a6   : > { %5624 = vst [vmem:[%s9742_s11 + $0x20] sm:$0xff] %v5249_v11  ;;  %v5251_v23 = vpop.f32.mrb[13].mxu0  ;;  %v5544_v28 = vadd.f32 %v6042_v36, %v5487_v19 }
 0x6a7   : > { %5625 = vst [vmem:[%s9742_s11 + $0x28] sm:$0xff] %v5251_v23  ;;  %v5253_v1 = vpop.f32.mrb[14].mxu0 }
 0x6a8   : > { %5631 = vst [vmem:[%s9742_s11 + $0x58] sm:$0xff] %v5253_v1  ;;  %v5255_v4 = vpop.f32.mrb[15].mxu0  ;;  %v6043_v0 = vpop.f32.mrb[88].mxu1 }
 0x6a9   : > { %5632 = vst [vmem:[%s9742_s11 + $0x60] sm:$0xff] %v5255_v4  ;;  %v6044_v50 = vpop.f32.mrb[89].mxu1 }
 0x6aa   : > { %v6045_v26 = vadd.f32 %v6044_v50, %v6043_v0  ;;  %v6046_v7 = vpop.f32.mrb[90].mxu1 }
 0x6ab   : > { %v6047_v18 = vpop.f32.mrb[91].mxu1 }
 0x6ac   : > { %v6048_v22 = vadd.f32 %v6047_v18, %v6046_v7  ;;  %v5549_v40 = vadd.f32 %v6045_v26, %v5492_v49 }
 0x6ad   : > { %v5259_v38 = vpop.f32.mrb[16].mxu0 }
 0x6ae   : > { %5638 = vst [vmem:[%s9742_s11 + $0x90] sm:$0xff] %v5259_v38  ;;  %v5261_v10 = vpop.f32.mrb[17].mxu0  ;;  %v5552_v62 = vadd.f32 %v6048_v22, %v5495_v41 }
 0x6af   : > { %5639 = vst [vmem:[%s9742_s11 + $0x98] sm:$0xff] %v5261_v10  ;;  %v5263_v60 = vpop.f32.mrb[18].mxu0 }
 0x6b0   : > { %5645 = vst [vmem:[%s9742_s11 + $0xc8] sm:$0xff] %v5263_v60  ;;  %v5265_v21 = vpop.f32.mrb[19].mxu0  ;;  %v6049_v39 = vpop.f32.mrb[92].mxu1 }
 0x6b1   : > { %5646 = vst [vmem:[%s9742_s11 + $0xd0] sm:$0xff] %v5265_v21  ;;  %v6050_v27 = vpop.f32.mrb[93].mxu1 }
 0x6b2   : > { %v6051_v48 = vadd.f32 %v6050_v27, %v6049_v39  ;;  %v6052_v61 = vpop.f32.mrb[94].mxu1 }
 0x6b3   : > { %v6053_v6 = vpop.f32.mrb[95].mxu1 }
 0x6b4   : > { %v6054_v14 = vadd.f32 %v6053_v6, %v6052_v61  ;;  %v5557_v45 = vadd.f32 %v6051_v48, %v5500_v25 }
 0x6b5   : > { %v5269_v56 = vpop.f32.mrb[20].mxu0 }
 0x6b6   : > { %5652 = vst [vmem:[%s9742_s11 + $0x100] sm:$0xff] %v5269_v56  ;;  %v5271_v29 = vpop.f32.mrb[21].mxu0  ;;  %v5560_v30 = vadd.f32 %v6054_v14, %v5503_v9 }
 0x6b7   : > { %5653 = vst [vmem:[%s9742_s11 + $0x108] sm:$0xff] %v5271_v29  ;;  %v5273_v54 = vpop.f32.mrb[22].mxu0 }
 0x6b8   : > { %5659 = vst [vmem:[%s9742_s11 + $0x138] sm:$0xff] %v5273_v54  ;;  %v5275_v15 = vpop.f32.mrb[23].mxu0  ;;  %v5605_v2 = vpop.f32.mrb[96].mxu1 }
 0x6b9   : > { %5660 = vst [vmem:[%s9742_s11 + $0x140] sm:$0xff] %v5275_v15  ;;  %v5606_v16 = vadd.f32 %v5605_v2, %v5549_v40  ;;  %v6067_v43 = vpop.f32.mrb[97].mxu1 }
 0x6ba   : > { %v5608_v5 = vpop.f32.mrb[98].mxu1 }
 0x6bb   : > { %5640 = vst [vmem:[%s9742_s11 + $0xa0] sm:$0xff] %v5606_v16  ;;  %v5609_v58 = vadd.f32 %v5608_v5, %v5552_v62  ;;  %v6068_v32 = vpop.f32.mrb[99].mxu1 }
 0x6bd   : > { %5647 = vst [vmem:[%s9742_s11 + $0xd8] sm:$0xff] %v5609_v58  ;;  %v5597_v34 = vpop.f32.mrb[24].mxu0 }
 0x6be   : > { %v5598_v8 = vadd.f32 %v5597_v34, %v5541_v46  ;;  %v6063_v13 = vpop.f32.mrb[25].mxu0 }
 0x6bf   : > { %v5600_v52 = vpop.f32.mrb[26].mxu0 }
 0x6c0   : > { %5626 = vst [vmem:[%s9742_s11 + $0x30] sm:$0xff] %v5598_v8  ;;  %v5601_v31 = vadd.f32 %v5600_v52, %v5544_v28  ;;  %v5613_v19 = vpop.f32.mrb[100].mxu1  ;;  %v6064_v47 = vpop.f32.mrb[27].mxu0 }
 0x6c1   : > { %v5614_v24 = vadd.f32 %v5613_v19, %v5557_v45  ;;  %v6071_v53 = vpop.f32.mrb[101].mxu1 }
 0x6c2   : > { %5633 = vst [vmem:[%s9742_s11 + $0x68] sm:$0xff] %v5601_v31  ;;  %v5616_v59 = vpop.f32.mrb[102].mxu1 }
 0x6c3   : > { %5654 = vst [vmem:[%s9742_s11 + $0x110] sm:$0xff] %v5614_v24  ;;  %v5617_v3 = vadd.f32 %v5616_v59, %v5560_v30  ;;  %v6072_v49 = vpop.f32.mrb[103].mxu1 }
 0x6c5   : > { %5661 = vst [vmem:[%s9742_s11 + $0x148] sm:$0xff] %v5617_v3 }
 0x6c6   : > { %6673 = shalt.err (!%p6670_p8)
}
 0x6c7   : > { %s6674_s9 = scalar_lea.hbm %s10414_s1, 5376  ;;  %s6678_s20 = scalar_lea.hbm %s10470_s3, 10752 }
 0x6c8   : > { %p6675_p10 = scmp.ne.s32.totalorder %s10414_s1, %s6674_s9  ;;  %p6679_p3 = scmp.lt.u32.totalorder %s10414_s1, %s10470_s3 }
 0x6c9   : > { %p6680_p2 = scmp.lt.u32.totalorder %s6678_s20, %s6674_s9  ;;  %p6682_p4 = scmp.lt.u32.totalorder %s6674_s9, %s10414_s1 }
 0x6ca   : > { %p6676_p13 = pnand %p6675_p10, %p11235_p6 }
 0x6cb   : > { %p6681_p11 = por %p6680_p2, %p6679_p3 }
 0x6cc   : > { %p6677_p7 = pneg %p6676_p13 }
 0x6cd   : > { %p6683_p1 = por %p6682_p4, %p6681_p11 }
 0x6cf   : > { %p6684_p12 = pnand %p6683_p1, %p6677_p7 }
 0x6d1   : > { %6687 = shalt.err (!%p6684_p12)
}
 0x6d2   : > { %s6786_s25 = smov 896  }
 0x6d3   : > { %6269 = dma.vmem_to_hbm [thread:$0]  (%p11235_p6), %s10416_s16, 5376, %s10414_s1, %s5663_s15, %s6786_s25, %s6786_s25, %s6775_s8  }
 0x6d4 PF: > { %s5693_s11 = sand.u32 1, %s6726_s12   ;;  %p11236_p0 = scmp.ne.s32.totalorder %s10687_s4, 0 }
 0x6d5   : > { %p11237_p9 = scmp.ge.s32.totalorder %s6746_s17, 2  ;;  %s5694_s21 = scalar_lea.sflag [#allocation5], %s5693_s11 }
 0x6d7   : > { %p6283_p5 = pnand %p11237_p9, %p11236_p0 }
 0x6d9   : > { %6721 = dma.done.wait (!%p6283_p5), %s5694_s21, 5376  }
 0x6da   : > { %6723 = vsyncadd (!%p6283_p5), %s5694_s21, 4294961920  ;;  %s20_s17 = sadd.s32 1, %s6746_s17   ;;  %s11238_s15 = sld [smem:[#allocation13_spill]] }
 0x6db   : > { %p17_p8 = scmp.ge.s32.totalorder %s20_s17, 4   ;;  %s11239_s16 = sld [smem:[#allocation14_spill]] }
 0x6dc   : > { %s11240_s12 = smov %s6730_s13  ;;  %s11241_s13 = smov %s6734_s14 }
 0x6dd   : > { %s11242_s14 = smov %s6855_s24  ;;  %19 = sbr.rel (!%p17_p8) target bundleno = 9 (0x9), region = 93 }
 0x6e4   :  { %5699 = vsyncpa [#allocation4], 1 }
 0x6e5   :  { %5701 = vsyncpa [#allocation4 + $0x1], 1 }
 0x6e6   :  { %5702 = vsyncpa [#allocation7], 1 }
 0x6e7   :  { %5704 = vsyncpa [#allocation7 + $0x1], 1 }
 0x6e8   :  { %5705 = vsyncpa [#allocation5], 1 }
 0x6e9   :  { %5707 = vsyncpa [#allocation5 + $0x1], 1 }

</bundles_post_ra>
